<compile_context>
chip_gen: v7x
topology: tpu7x:2x2x1
jax: 0.10.0
libtpu: 0.0.40
codegen_flags: <defaults>
</compile_context>

<pallas_src>
import functools

import jax
import jax.numpy as jnp
from jax import lax
from jax.experimental import pallas as pl
from jax.experimental.pallas import tpu as pltpu


def _gat_layer_kernel(x_dst_ref, x_src_ref, adj_ref, wp_ref, was_ref, o_ref,
                      m_sc, l_sc, acc_sc, lin_sc, ad_sc, *, apply_relu):
    """One GAT layer (GATConv + Linear residual [+ReLU]) for one (dst, src) tile."""
    cp = o_ref.shape[1]                      # padded output channels
    k = pl.program_id(1)                     # src-tile (reduction) index

    @pl.when(k == 0)
    def _init():
        f_pad = x_dst_ref.shape[1]
        w_lin = wp_ref[:, cp:]                                    # [Fp, Cp] bf16
        # Residual Linear projection of the dst rows; fused bias lives in the spare
        # row f_pad-1 of w_lin, the folded dst-attention vector in column cp-2.
        lin = jnp.dot(x_dst_ref[...].astype(jnp.bfloat16), w_lin,
                      preferred_element_type=jnp.float32)         # [tm, Cp]
        lin = lin + w_lin[f_pad - 1:f_pad, :].astype(jnp.float32)  # fused bias row
        lin_sc[...] = lin
        ad_sc[...] = lin[:, cp - 2:cp - 1]                        # a_dst logits [tm,1]
        m_sc[...] = jnp.full_like(m_sc, -1e30)
        l_sc[...] = jnp.zeros_like(l_sc)
        acc_sc[...] = jnp.zeros_like(acc_sc)

    # --- per src-tile work -------------------------------------------------------
    x_src = x_src_ref[...]                                        # [tn, Fp] f32
    xs = jnp.dot(x_src.astype(jnp.bfloat16), wp_ref[:, :cp],
                 preferred_element_type=jnp.float32)              # src projection [tn,Cp]
    a_src = lax.dot_general(was_ref[...], x_src,
                            dimension_numbers=(((1,), (1,)), ((), ())),
                            preferred_element_type=jnp.float32)   # [1, tn]

    mask = adj_ref[...] != 0                                      # [tm, tn] (dst, src)
    e = ad_sc[...] + a_src                                        # broadcast [tm, tn]
    e = jnp.where(e > 0, e, 0.2 * e)                              # leaky_relu(0.2)
    e = jnp.where(mask, e, -1e30)

    # online (flash-style) masked softmax over the src axis
    m_prev = m_sc[...]
    m_new = jnp.maximum(m_prev, jnp.max(e, axis=-1, keepdims=True))
    alpha = jnp.exp(m_prev - m_new)
    # TODO(synk): on v6e/v7x, exp on bf16 logits roughly doubles EUP throughput;
    # kept f32 so the identical kernel also lowers on v5e (no bf16 EUP).
    p = jnp.where(mask, jnp.exp(e - m_new), 0.0)
    l_sc[...] = alpha * l_sc[...] + jnp.sum(p, axis=-1, keepdims=True)
    acc_sc[...] = alpha * acc_sc[...] + jnp.dot(
        p.astype(jnp.bfloat16), xs.astype(jnp.bfloat16),
        preferred_element_type=jnp.float32)
    m_sc[...] = m_new

    @pl.when(k == pl.num_programs(1) - 1)
    def _finalize():
        denom = l_sc[...]
        inv = pl.reciprocal(jnp.where(denom > 0.0, denom, 1.0), approx=True)
        out = acc_sc[...] * inv + lin_sc[...]      # attention agg + Linear + fused bias
        if apply_relu:
            out = jnp.maximum(out, 0.0)
        o_ref[...] = out.astype(o_ref.dtype)


def gat_layer(x_pad, adj, params, *, apply_relu, tm=128, tn=128):
    """One fused GAT layer as a tiled pallas_call over (dst_tiles, src_tiles)."""
    n_pad, f_pad = x_pad.shape
    wp, was = params["wp"], params["was"]
    cp = wp.shape[1] // 2
    assert wp.shape[0] == f_pad and adj.shape == (n_pad, n_pad)
    assert n_pad % tm == 0 and n_pad % tn == 0
    grid = (n_pad // tm, n_pad // tn)

    flops = int(2 * n_pad * f_pad * cp * (1 + grid[0])   # dst proj + src proj per dst tile
                + 2 * n_pad * f_pad * grid[0]            # a_src row matmuls
                + 2 * n_pad * n_pad * cp                 # attention aggregation
                + 12 * n_pad * n_pad)                    # masked online softmax (VPU)
    bytes_accessed = int(4 * x_pad.size * (1 + grid[0]) + adj.size
                         + 2 * wp.size + 4 * was.size + 4 * n_pad * cp)
    cost = pl.CostEstimate(flops=flops,
                           transcendentals=int(2 * n_pad * n_pad),
                           bytes_accessed=bytes_accessed)

    kernel = functools.partial(_gat_layer_kernel, apply_relu=apply_relu)
    return pl.pallas_call(
        kernel,
        out_shape=jax.ShapeDtypeStruct((n_pad, cp), jnp.float32),
        grid=grid,
        in_specs=[
            pl.BlockSpec((tm, f_pad), lambda i, k: (i, 0)),   # x, destination rows
            pl.BlockSpec((tn, f_pad), lambda i, k: (k, 0)),   # x, source rows
            pl.BlockSpec((tm, tn), lambda i, k: (i, k)),      # int8 adjacency tile
            pl.BlockSpec(wp.shape, lambda i, k: (0, 0)),      # fused packed weights
            pl.BlockSpec(was.shape, lambda i, k: (0, 0)),     # folded src-attn vector
        ],
        out_specs=pl.BlockSpec((tm, cp), lambda i, k: (i, 0)),
        scratch_shapes=[
            pltpu.VMEM((tm, 1), jnp.float32),    # running max m
            pltpu.VMEM((tm, 1), jnp.float32),    # running denom l
            pltpu.VMEM((tm, cp), jnp.float32),   # weighted-message accumulator
            pltpu.VMEM((tm, cp), jnp.float32),   # residual Linear proj (+ fused bias)
            pltpu.VMEM((tm, 1), jnp.float32),    # folded dst-attention logits
        ],
        compiler_params=pltpu.CompilerParams(
            dimension_semantics=("parallel", "arbitrary"),
            vmem_limit_bytes=32 * 1024 * 1024),
        cost_estimate=cost,
    )(x_pad, x_pad, adj, wp, was)


@jax.jit
def gat_forward(x_pad, adj, p1, p2):
    h = gat_layer(x_pad, adj, p1, apply_relu=True)    # conv1 + lin1, relu
    return gat_layer(h, adj, p2, apply_relu=False)    # conv2 + lin2


# ----------------------------- host-side parameters ---------------------------------
def _glorot(key, shape):
    fan = shape[0] + shape[-1]
    lim = jnp.sqrt(6.0 / fan)
    return jax.random.uniform(key, shape, jnp.float32, -lim, lim)


def make_layer_params(key, f_in, c_out):
    """Raw parameters matching PyG GATConv(heads=1, bias) + Linear."""
    ks = jax.random.split(key, 6)
    return dict(
        ws=_glorot(ks[0], (c_out, f_in)),        # GATConv lin_src weight (bias=False)
        wd=_glorot(ks[1], (c_out, f_in)),        # GATConv lin_dst weight (bias=False)
        att_s=_glorot(ks[2], (1, c_out)),        # att_src (heads=1)
        att_d=_glorot(ks[3], (1, c_out)),        # att_dst (heads=1)
        bc=jnp.zeros((1, c_out), jnp.float32),   # GATConv bias
        wl=_glorot(ks[4], (c_out, f_in)),        # Linear weight
        bl=_glorot(ks[5], (1, c_out)) * 0.1,     # Linear bias
    )


def pack_layer_params(ws, wd, att_s, att_d, bc, wl, bl, *, f_pad, c_pad):
    """Fuse + pad: wp = [ws^T | wl^T] with folded a_dst column and fused bias row."""
    c_out, f_in = ws.shape
    assert c_out <= c_pad - 2 and f_in <= f_pad - 1
    wp = jnp.zeros((f_pad, 2 * c_pad), jnp.float32)
    wp = wp.at[:f_in, :c_out].set(ws.T)                             # conv src projection
    wp = wp.at[:f_in, c_pad:c_pad + c_out].set(wl.T)                # residual Linear
    wp = wp.at[:f_in, 2 * c_pad - 2].set(wd.T @ att_d[0])           # folded a_dst column
    wp = wp.at[f_pad - 1, c_pad:c_pad + c_out].set(bc[0] + bl[0])   # fused bias row
    was = jnp.zeros((1, f_pad), jnp.float32).at[0, :f_in].set(ws.T @ att_s[0])
    return dict(wp=wp.astype(jnp.bfloat16), was=was)


if __name__ == "__main__":
    N, F_IN, HIDDEN, OUT, E = 16, 8, 32, 16, 48
    LANE = 128
    N_PAD = max(LANE, ((N + LANE - 1) // LANE) * LANE)   # lane-dense node dimension

    key = jax.random.PRNGKey(0)
    k_x, k_src, k_dst, k_p1, k_p2 = jax.random.split(key, 5)

    x = jax.random.normal(k_x, (N, F_IN), jnp.float32)
    x_pad = jnp.zeros((N_PAD, LANE), jnp.float32).at[:N, :F_IN].set(x)

    # synthetic edge_index [2, E]; densify to int8 adjacency adj[dst, src] = 1.
    # TODO(synk): duplicate (src, dst) pairs collapse to a single entry here; PyG's
    # GATConv counts duplicate edges separately in the softmax (multigraph semantics).
    src = jax.random.randint(k_src, (E,), 0, N)
    dst = jax.random.randint(k_dst, (E,), 0, N)
    edge_index = jnp.stack([src, dst], axis=0)
    adj = jnp.zeros((N_PAD, N_PAD), jnp.int8).at[edge_index[1], edge_index[0]].set(1)

    p1 = pack_layer_params(**make_layer_params(k_p1, F_IN, HIDDEN),
                           f_pad=LANE, c_pad=LANE)
    p2 = pack_layer_params(**make_layer_params(k_p2, HIDDEN, OUT),
                           f_pad=LANE, c_pad=LANE)

    out_pad = gat_forward(x_pad, adj, p1, p2)
    out_pad = jax.block_until_ready(out_pad)
    out = out_pad[:N, :OUT]

    assert out.shape == (N, OUT), out.shape
    assert bool(jnp.all(jnp.isfinite(out)))
    print("KERNEL_OK")
</pallas_src>

<mosaic_0001>
module attributes {stable_mosaic.version = 11 : i64} {
  func.func @_gat_layer_kernel(%arg0: i32, %arg1: i32, %arg2: memref<128x128xf32, #tpu.memory_space<vmem>>, %arg3: memref<128x128xf32, #tpu.memory_space<vmem>>, %arg4: memref<128x128xi8, #tpu.memory_space<vmem>>, %arg5: memref<128x256xbf16, #tpu.memory_space<vmem>>, %arg6: memref<1x128xf32, #tpu.memory_space<vmem>>, %arg7: memref<128x128xf32, #tpu.memory_space<vmem>>, %arg8: memref<128x1xf32, #tpu.memory_space<vmem>>, %arg9: memref<128x1xf32, #tpu.memory_space<vmem>>, %arg10: memref<128x128xf32, #tpu.memory_space<vmem>>, %arg11: memref<128x128xf32, #tpu.memory_space<vmem>>, %arg12: memref<128x1xf32, #tpu.memory_space<vmem>>) attributes {dimension_semantics = [#tpu.dimension_semantics<parallel>, #tpu.dimension_semantics<arbitrary>], iteration_bounds = array<i64: 1, 1>, scalar_prefetch = 0 : i64, scratch_operands = 5 : i64, tpu.core_type = #tpu.core_type<tc>, window_params = [{transform_indices = @transform_0, window_bounds = array<i64: 128, 128>}, {transform_indices = @transform_1, window_bounds = array<i64: 128, 128>}, {transform_indices = @transform_2, window_bounds = array<i64: 128, 128>}, {pipeline_mode = #tpu.pipeline_mode<synchronous>, transform_indices = @transform_3, window_bounds = array<i64: 128, 256>}, {pipeline_mode = #tpu.pipeline_mode<synchronous>, transform_indices = @transform_4, window_bounds = array<i64: 1, 128>}, {transform_indices = @transform_5, window_bounds = array<i64: 128, 128>}]} {
    %c0_i32 = arith.constant 0 : i32
    %0 = arith.cmpi eq, %arg1, %c0_i32 : i32
    %1 = arith.extui %0 : i1 to i32
    %c0_i32_0 = arith.constant 0 : i32
    %2 = arith.cmpi ne, %1, %c0_i32_0 : i32
    scf.if %2 {
      %c0_32 = arith.constant 0 : index
      %c128 = arith.constant 128 : index
      %52 = vector.load %arg5[%c0_32, %c128] : memref<128x256xbf16, #tpu.memory_space<vmem>>, vector<128x128xbf16>
      %c0_33 = arith.constant 0 : index
      %c0_34 = arith.constant 0 : index
      %53 = vector.load %arg2[%c0_33, %c0_34] : memref<128x128xf32, #tpu.memory_space<vmem>>, vector<128x128xf32>
      %54 = arith.truncf %53 : vector<128x128xf32> to vector<128x128xbf16>
      %cst_35 = arith.constant dense<0.000000e+00> : vector<128x128xf32>
      %55 = tpu.matmul %54, %52, %cst_35 {dimension_numbers = #tpu.dot_dimension_numbers<[1], [0], [0], [1], [0, 0, 1, 1], [], []>} : vector<128x128xbf16>, vector<128x128xbf16>, vector<128x128xf32> -> vector<128x128xf32>
      %56 = vector.extract_strided_slice %52 {offsets = [127, 0], sizes = [1, 128], strides = [1, 1]} : vector<128x128xbf16> to vector<1x128xbf16>
      %57 = arith.extf %56 : vector<1x128xbf16> to vector<1x128xf32>
      %58 = vector.broadcast %57 : vector<1x128xf32> to vector<128x128xf32>
      %59 = arith.addf %55, %58 : vector<128x128xf32>
      %c0_36 = arith.constant 0 : index
      %c0_37 = arith.constant 0 : index
      %60 = vector.load %arg11[%c0_36, %c0_37] : memref<128x128xf32, #tpu.memory_space<vmem>>, vector<128x128xf32>
      tpu.vector_store %arg11[%c0_36, %c0_37], %59 {strides = array<i32>} : memref<128x128xf32, #tpu.memory_space<vmem>>, vector<128x128xf32>,
      %61 = vector.extract_strided_slice %59 {offsets = [0, 126], sizes = [128, 1], strides = [1, 1]} : vector<128x128xf32> to vector<128x1xf32>
      %c0_38 = arith.constant 0 : index
      %c0_39 = arith.constant 0 : index
      %62 = vector.load %arg12[%c0_38, %c0_39] : memref<128x1xf32, #tpu.memory_space<vmem>>, vector<128x1xf32>
      tpu.vector_store %arg12[%c0_38, %c0_39], %61 {strides = array<i32>} : memref<128x1xf32, #tpu.memory_space<vmem>>, vector<128x1xf32>,
      %cst_40 = arith.constant -1.000000e+30 : f32
      %63 = vector.broadcast %cst_40 : f32 to vector<128x1xf32>
      %c0_41 = arith.constant 0 : index
      %c0_42 = arith.constant 0 : index
      %64 = vector.load %arg8[%c0_41, %c0_42] : memref<128x1xf32, #tpu.memory_space<vmem>>, vector<128x1xf32>
      tpu.vector_store %arg8[%c0_41, %c0_42], %63 {strides = array<i32>} : memref<128x1xf32, #tpu.memory_space<vmem>>, vector<128x1xf32>,
      %cst_43 = arith.constant 0.000000e+00 : f32
      %65 = vector.broadcast %cst_43 : f32 to vector<128x1xf32>
      %c0_44 = arith.constant 0 : index
      %c0_45 = arith.constant 0 : index
      %66 = vector.load %arg9[%c0_44, %c0_45] : memref<128x1xf32, #tpu.memory_space<vmem>>, vector<128x1xf32>
      tpu.vector_store %arg9[%c0_44, %c0_45], %65 {strides = array<i32>} : memref<128x1xf32, #tpu.memory_space<vmem>>, vector<128x1xf32>,
      %cst_46 = arith.constant 0.000000e+00 : f32
      %67 = vector.broadcast %cst_46 : f32 to vector<128x128xf32>
      %c0_47 = arith.constant 0 : index
      %c0_48 = arith.constant 0 : index
      %68 = vector.load %arg10[%c0_47, %c0_48] : memref<128x128xf32, #tpu.memory_space<vmem>>, vector<128x128xf32>
      tpu.vector_store %arg10[%c0_47, %c0_48], %67 {strides = array<i32>} : memref<128x128xf32, #tpu.memory_space<vmem>>, vector<128x128xf32>,
    } else {
    }
    %c0 = arith.constant 0 : index
    %c0_1 = arith.constant 0 : index
    %3 = vector.load %arg3[%c0, %c0_1] : memref<128x128xf32, #tpu.memory_space<vmem>>, vector<128x128xf32>
    %4 = arith.truncf %3 : vector<128x128xf32> to vector<128x128xbf16>
    %c0_2 = arith.constant 0 : index
    %c0_3 = arith.constant 0 : index
    %5 = vector.load %arg5[%c0_2, %c0_3] : memref<128x256xbf16, #tpu.memory_space<vmem>>, vector<128x128xbf16>
    %cst = arith.constant dense<0.000000e+00> : vector<128x128xf32>
    %6 = tpu.matmul %4, %5, %cst {dimension_numbers = #tpu.dot_dimension_numbers<[1], [0], [0], [1], [0, 0, 1, 1], [], []>} : vector<128x128xbf16>, vector<128x128xbf16>, vector<128x128xf32> -> vector<128x128xf32>
    %c0_4 = arith.constant 0 : index
    %c0_5 = arith.constant 0 : index
    %7 = vector.load %arg6[%c0_4, %c0_5] : memref<1x128xf32, #tpu.memory_space<vmem>>, vector<1x128xf32>
    %cst_6 = arith.constant dense<0.000000e+00> : vector<1x128xf32>
    %8 = tpu.matmul %7, %3, %cst_6 {dimension_numbers = #tpu.dot_dimension_numbers<[1], [1], [0], [0], [0, 0, 1, 0], [], []>} : vector<1x128xf32>, vector<128x128xf32>, vector<1x128xf32> -> vector<1x128xf32>
    %c0_7 = arith.constant 0 : index
    %c0_8 = arith.constant 0 : index
    %9 = vector.load %arg4[%c0_7, %c0_8] : memref<128x128xi8, #tpu.memory_space<vmem>>, vector<128x128xi8>
    %c0_i8 = arith.constant 0 : i8
    %10 = vector.broadcast %c0_i8 : i8 to vector<128x128xi8>
    %11 = arith.cmpi ne, %9, %10 : vector<128x128xi8>
    %c0_9 = arith.constant 0 : index
    %c0_10 = arith.constant 0 : index
    %12 = vector.load %arg12[%c0_9, %c0_10] : memref<128x1xf32, #tpu.memory_space<vmem>>, vector<128x1xf32>
    %13 = vector.broadcast %12 : vector<128x1xf32> to vector<128x128xf32>
    %14 = vector.broadcast %8 : vector<1x128xf32> to vector<128x128xf32>
    %15 = arith.addf %13, %14 : vector<128x128xf32>
    %cst_11 = arith.constant 0.000000e+00 : f32
    %16 = vector.broadcast %cst_11 : f32 to vector<128x128xf32>
    %17 = arith.cmpf ogt, %15, %16 : vector<128x128xf32>
    %cst_12 = arith.constant 2.000000e-01 : f32
    %18 = vector.broadcast %cst_12 : f32 to vector<128x128xf32>
    %19 = arith.mulf %18, %15 : vector<128x128xf32>
    %20 = arith.select %17, %15, %19 : vector<128x128xi1>, vector<128x128xf32>
    %cst_13 = arith.constant -1.000000e+30 : f32
    %21 = vector.broadcast %cst_13 : f32 to vector<128x128xf32>
    %22 = arith.select %11, %20, %21 : vector<128x128xi1>, vector<128x128xf32>
    %c0_14 = arith.constant 0 : index
    %c0_15 = arith.constant 0 : index
    %23 = vector.load %arg8[%c0_14, %c0_15] : memref<128x1xf32, #tpu.memory_space<vmem>>, vector<128x1xf32>
    %cst_16 = arith.constant dense<0xFF800000> : vector<128xf32>
    %24 = vector.multi_reduction <maximumf>, %22, %cst_16 [1] : vector<128x128xf32> to vector<128xf32>
    %25 = vector.shape_cast %24 : vector<128xf32> to vector<128x1xf32>
    %26 = arith.maximumf %23, %25 : vector<128x1xf32>
    %27 = arith.subf %23, %26 : vector<128x1xf32>
    %28 = math.exp %27 : vector<128x1xf32>
    %29 = vector.broadcast %26 : vector<128x1xf32> to vector<128x128xf32>
    %30 = arith.subf %22, %29 : vector<128x128xf32>
    %31 = math.exp %30 : vector<128x128xf32>
    %cst_17 = arith.constant 0.000000e+00 : f32
    %32 = vector.broadcast %cst_17 : f32 to vector<128x128xf32>
    %33 = arith.select %11, %31, %32 : vector<128x128xi1>, vector<128x128xf32>
    %c0_18 = arith.constant 0 : index
    %c0_19 = arith.constant 0 : index
    %34 = vector.load %arg9[%c0_18, %c0_19] : memref<128x1xf32, #tpu.memory_space<vmem>>, vector<128x1xf32>
    %35 = arith.mulf %28, %34 : vector<128x1xf32>
    %cst_20 = arith.constant dense<0.000000e+00> : vector<128xf32>
    %36 = vector.multi_reduction <add>, %33, %cst_20 [1] : vector<128x128xf32> to vector<128xf32>
    %37 = vector.shape_cast %36 : vector<128xf32> to vector<128x1xf32>
    %38 = arith.addf %35, %37 : vector<128x1xf32>
    %c0_21 = arith.constant 0 : index
    %c0_22 = arith.constant 0 : index
    %39 = vector.load %arg9[%c0_21, %c0_22] : memref<128x1xf32, #tpu.memory_space<vmem>>, vector<128x1xf32>
    tpu.vector_store %arg9[%c0_21, %c0_22], %38 {strides = array<i32>} : memref<128x1xf32, #tpu.memory_space<vmem>>, vector<128x1xf32>,
    %c0_23 = arith.constant 0 : index
    %c0_24 = arith.constant 0 : index
    %40 = vector.load %arg10[%c0_23, %c0_24] : memref<128x128xf32, #tpu.memory_space<vmem>>, vector<128x128xf32>
    %41 = vector.broadcast %28 : vector<128x1xf32> to vector<128x128xf32>
    %42 = arith.mulf %41, %40 : vector<128x128xf32>
    %43 = arith.truncf %33 : vector<128x128xf32> to vector<128x128xbf16>
    %44 = arith.truncf %6 : vector<128x128xf32> to vector<128x128xbf16>
    %cst_25 = arith.constant dense<0.000000e+00> : vector<128x128xf32>
    %45 = tpu.matmul %43, %44, %cst_25 {dimension_numbers = #tpu.dot_dimension_numbers<[1], [0], [0], [1], [0, 0, 1, 1], [], []>} : vector<128x128xbf16>, vector<128x128xbf16>, vector<128x128xf32> -> vector<128x128xf32>
    %46 = arith.addf %42, %45 : vector<128x128xf32>
    %c0_26 = arith.constant 0 : index
    %c0_27 = arith.constant 0 : index
    %47 = vector.load %arg10[%c0_26, %c0_27] : memref<128x128xf32, #tpu.memory_space<vmem>>, vector<128x128xf32>
    tpu.vector_store %arg10[%c0_26, %c0_27], %46 {strides = array<i32>} : memref<128x128xf32, #tpu.memory_space<vmem>>, vector<128x128xf32>,
    %c0_28 = arith.constant 0 : index
    %c0_29 = arith.constant 0 : index
    %48 = vector.load %arg8[%c0_28, %c0_29] : memref<128x1xf32, #tpu.memory_space<vmem>>, vector<128x1xf32>
    tpu.vector_store %arg8[%c0_28, %c0_29], %26 {strides = array<i32>} : memref<128x1xf32, #tpu.memory_space<vmem>>, vector<128x1xf32>,
    %c0_i32_30 = arith.constant 0 : i32
    %49 = arith.cmpi eq, %arg1, %c0_i32_30 : i32
    %50 = arith.extui %49 : i1 to i32
    %c0_i32_31 = arith.constant 0 : i32
    %51 = arith.cmpi ne, %50, %c0_i32_31 : i32
    scf.if %51 {
      %c0_32 = arith.constant 0 : index
      %c0_33 = arith.constant 0 : index
      %52 = vector.load %arg9[%c0_32, %c0_33] : memref<128x1xf32, #tpu.memory_space<vmem>>, vector<128x1xf32>
      %cst_34 = arith.constant 0.000000e+00 : f32
      %53 = vector.broadcast %cst_34 : f32 to vector<128x1xf32>
      %54 = arith.cmpf ogt, %52, %53 : vector<128x1xf32>
      %cst_35 = arith.constant 1.000000e+00 : f32
      %55 = vector.broadcast %cst_35 : f32 to vector<128x1xf32>
      %56 = arith.select %54, %52, %55 : vector<128x1xi1>, vector<128x1xf32>
      %57 = tpu.reciprocal %56 {approx = true} : vector<128x1xf32> -> vector<128x1xf32>
      %c0_36 = arith.constant 0 : index
      %c0_37 = arith.constant 0 : index
      %58 = vector.load %arg10[%c0_36, %c0_37] : memref<128x128xf32, #tpu.memory_space<vmem>>, vector<128x128xf32>
      %59 = vector.broadcast %57 : vector<128x1xf32> to vector<128x128xf32>
      %60 = arith.mulf %58, %59 : vector<128x128xf32>
      %c0_38 = arith.constant 0 : index
      %c0_39 = arith.constant 0 : index
      %61 = vector.load %arg11[%c0_38, %c0_39] : memref<128x128xf32, #tpu.memory_space<vmem>>, vector<128x128xf32>
      %62 = arith.addf %60, %61 : vector<128x128xf32>
      %c0_40 = arith.constant 0 : index
      %c0_41 = arith.constant 0 : index
      %63 = vector.load %arg7[%c0_40, %c0_41] : memref<128x128xf32, #tpu.memory_space<vmem>>, vector<128x128xf32>
      tpu.vector_store %arg7[%c0_40, %c0_41], %62 {strides = array<i32>} : memref<128x128xf32, #tpu.memory_space<vmem>>, vector<128x128xf32>,
    } else {
    }
    return
  }
  func.func @transform_0(%arg0: i32, %arg1: i32) -> (i32, i32) {
    %c0_i32 = arith.constant 0 : i32
    %c0_i32_0 = arith.constant 0 : i32
    return %arg0, %c0_i32 : i32, i32
  }
  func.func @transform_1(%arg0: i32, %arg1: i32) -> (i32, i32) {
    %c0_i32 = arith.constant 0 : i32
    %c0_i32_0 = arith.constant 0 : i32
    return %arg1, %c0_i32 : i32, i32
  }
  func.func @transform_2(%arg0: i32, %arg1: i32) -> (i32, i32) {
    %c0_i32 = arith.constant 0 : i32
    return %arg0, %arg1 : i32, i32
  }
  func.func @transform_3(%arg0: i32, %arg1: i32) -> (i32, i32) {
    %c0_i32 = arith.constant 0 : i32
    %c0_i32_0 = arith.constant 0 : i32
    %c0_i32_1 = arith.constant 0 : i32
    return %c0_i32, %c0_i32_0 : i32, i32
  }
  func.func @transform_4(%arg0: i32, %arg1: i32) -> (i32, i32) {
    %c0_i32 = arith.constant 0 : i32
    %c0_i32_0 = arith.constant 0 : i32
    %c0_i32_1 = arith.constant 0 : i32
    return %c0_i32, %c0_i32_0 : i32, i32
  }
  func.func @transform_5(%arg0: i32, %arg1: i32) -> (i32, i32) {
    %c0_i32 = arith.constant 0 : i32
    %c0_i32_0 = arith.constant 0 : i32
    return %arg0, %c0_i32 : i32, i32
  }
}

module attributes {stable_mosaic.version = 11 : i64} {
  func.func @_gat_layer_kernel(%arg0: i32, %arg1: i32, %arg2: memref<128x128xf32, #tpu.memory_space<vmem>>, %arg3: memref<128x128xf32, #tpu.memory_space<vmem>>, %arg4: memref<128x128xi8, #tpu.memory_space<vmem>>, %arg5: memref<128x256xbf16, #tpu.memory_space<vmem>>, %arg6: memref<1x128xf32, #tpu.memory_space<vmem>>, %arg7: memref<128x128xf32, #tpu.memory_space<vmem>>, %arg8: memref<128x1xf32, #tpu.memory_space<vmem>>, %arg9: memref<128x1xf32, #tpu.memory_space<vmem>>, %arg10: memref<128x128xf32, #tpu.memory_space<vmem>>, %arg11: memref<128x128xf32, #tpu.memory_space<vmem>>, %arg12: memref<128x1xf32, #tpu.memory_space<vmem>>) attributes {dimension_semantics = [#tpu.dimension_semantics<parallel>, #tpu.dimension_semantics<arbitrary>], iteration_bounds = array<i64: 1, 1>, scalar_prefetch = 0 : i64, scratch_operands = 5 : i64, tpu.core_type = #tpu.core_type<tc>, window_params = [{transform_indices = @transform_0, window_bounds = array<i64: 128, 128>}, {transform_indices = @transform_1, window_bounds = array<i64: 128, 128>}, {transform_indices = @transform_2, window_bounds = array<i64: 128, 128>}, {pipeline_mode = #tpu.pipeline_mode<synchronous>, transform_indices = @transform_3, window_bounds = array<i64: 128, 256>}, {pipeline_mode = #tpu.pipeline_mode<synchronous>, transform_indices = @transform_4, window_bounds = array<i64: 1, 128>}, {transform_indices = @transform_5, window_bounds = array<i64: 128, 128>}]} {
    %c0_i32 = arith.constant 0 : i32
    %0 = arith.cmpi eq, %arg1, %c0_i32 : i32
    %1 = arith.extui %0 : i1 to i32
    %c0_i32_0 = arith.constant 0 : i32
    %2 = arith.cmpi ne, %1, %c0_i32_0 : i32
    scf.if %2 {
      %c0_32 = arith.constant 0 : index
      %c128 = arith.constant 128 : index
      %52 = vector.load %arg5[%c0_32, %c128] : memref<128x256xbf16, #tpu.memory_space<vmem>>, vector<128x128xbf16>
      %c0_33 = arith.constant 0 : index
      %c0_34 = arith.constant 0 : index
      %53 = vector.load %arg2[%c0_33, %c0_34] : memref<128x128xf32, #tpu.memory_space<vmem>>, vector<128x128xf32>
      %54 = arith.truncf %53 : vector<128x128xf32> to vector<128x128xbf16>
      %cst_35 = arith.constant dense<0.000000e+00> : vector<128x128xf32>
      %55 = tpu.matmul %54, %52, %cst_35 {dimension_numbers = #tpu.dot_dimension_numbers<[1], [0], [0], [1], [0, 0, 1, 1], [], []>} : vector<128x128xbf16>, vector<128x128xbf16>, vector<128x128xf32> -> vector<128x128xf32>
      %56 = vector.extract_strided_slice %52 {offsets = [127, 0], sizes = [1, 128], strides = [1, 1]} : vector<128x128xbf16> to vector<1x128xbf16>
      %57 = arith.extf %56 : vector<1x128xbf16> to vector<1x128xf32>
      %58 = vector.broadcast %57 : vector<1x128xf32> to vector<128x128xf32>
      %59 = arith.addf %55, %58 : vector<128x128xf32>
      %c0_36 = arith.constant 0 : index
      %c0_37 = arith.constant 0 : index
      %60 = vector.load %arg11[%c0_36, %c0_37] : memref<128x128xf32, #tpu.memory_space<vmem>>, vector<128x128xf32>
      tpu.vector_store %arg11[%c0_36, %c0_37], %59 {strides = array<i32>} : memref<128x128xf32, #tpu.memory_space<vmem>>, vector<128x128xf32>,
      %61 = vector.extract_strided_slice %59 {offsets = [0, 126], sizes = [128, 1], strides = [1, 1]} : vector<128x128xf32> to vector<128x1xf32>
      %c0_38 = arith.constant 0 : index
      %c0_39 = arith.constant 0 : index
      %62 = vector.load %arg12[%c0_38, %c0_39] : memref<128x1xf32, #tpu.memory_space<vmem>>, vector<128x1xf32>
      tpu.vector_store %arg12[%c0_38, %c0_39], %61 {strides = array<i32>} : memref<128x1xf32, #tpu.memory_space<vmem>>, vector<128x1xf32>,
      %cst_40 = arith.constant -1.000000e+30 : f32
      %63 = vector.broadcast %cst_40 : f32 to vector<128x1xf32>
      %c0_41 = arith.constant 0 : index
      %c0_42 = arith.constant 0 : index
      %64 = vector.load %arg8[%c0_41, %c0_42] : memref<128x1xf32, #tpu.memory_space<vmem>>, vector<128x1xf32>
      tpu.vector_store %arg8[%c0_41, %c0_42], %63 {strides = array<i32>} : memref<128x1xf32, #tpu.memory_space<vmem>>, vector<128x1xf32>,
      %cst_43 = arith.constant 0.000000e+00 : f32
      %65 = vector.broadcast %cst_43 : f32 to vector<128x1xf32>
      %c0_44 = arith.constant 0 : index
      %c0_45 = arith.constant 0 : index
      %66 = vector.load %arg9[%c0_44, %c0_45] : memref<128x1xf32, #tpu.memory_space<vmem>>, vector<128x1xf32>
      tpu.vector_store %arg9[%c0_44, %c0_45], %65 {strides = array<i32>} : memref<128x1xf32, #tpu.memory_space<vmem>>, vector<128x1xf32>,
      %cst_46 = arith.constant 0.000000e+00 : f32
      %67 = vector.broadcast %cst_46 : f32 to vector<128x128xf32>
      %c0_47 = arith.constant 0 : index
      %c0_48 = arith.constant 0 : index
      %68 = vector.load %arg10[%c0_47, %c0_48] : memref<128x128xf32, #tpu.memory_space<vmem>>, vector<128x128xf32>
      tpu.vector_store %arg10[%c0_47, %c0_48], %67 {strides = array<i32>} : memref<128x128xf32, #tpu.memory_space<vmem>>, vector<128x128xf32>,
    } else {
    }
    %c0 = arith.constant 0 : index
    %c0_1 = arith.constant 0 : index
    %3 = vector.load %arg3[%c0, %c0_1] : memref<128x128xf32, #tpu.memory_space<vmem>>, vector<128x128xf32>
    %4 = arith.truncf %3 : vector<128x128xf32> to vector<128x128xbf16>
    %c0_2 = arith.constant 0 : index
    %c0_3 = arith.constant 0 : index
    %5 = vector.load %arg5[%c0_2, %c0_3] : memref<128x256xbf16, #tpu.memory_space<vmem>>, vector<128x128xbf16>
    %cst = arith.constant dense<0.000000e+00> : vector<128x128xf32>
    %6 = tpu.matmul %4, %5, %cst {dimension_numbers = #tpu.dot_dimension_numbers<[1], [0], [0], [1], [0, 0, 1, 1], [], []>} : vector<128x128xbf16>, vector<128x128xbf16>, vector<128x128xf32> -> vector<128x128xf32>
    %c0_4 = arith.constant 0 : index
    %c0_5 = arith.constant 0 : index
    %7 = vector.load %arg6[%c0_4, %c0_5] : memref<1x128xf32, #tpu.memory_space<vmem>>, vector<1x128xf32>
    %cst_6 = arith.constant dense<0.000000e+00> : vector<1x128xf32>
    %8 = tpu.matmul %7, %3, %cst_6 {dimension_numbers = #tpu.dot_dimension_numbers<[1], [1], [0], [0], [0, 0, 1, 0], [], []>} : vector<1x128xf32>, vector<128x128xf32>, vector<1x128xf32> -> vector<1x128xf32>
    %c0_7 = arith.constant 0 : index
    %c0_8 = arith.constant 0 : index
    %9 = vector.load %arg4[%c0_7, %c0_8] : memref<128x128xi8, #tpu.memory_space<vmem>>, vector<128x128xi8>
    %c0_i8 = arith.constant 0 : i8
    %10 = vector.broadcast %c0_i8 : i8 to vector<128x128xi8>
    %11 = arith.cmpi ne, %9, %10 : vector<128x128xi8>
    %c0_9 = arith.constant 0 : index
    %c0_10 = arith.constant 0 : index
    %12 = vector.load %arg12[%c0_9, %c0_10] : memref<128x1xf32, #tpu.memory_space<vmem>>, vector<128x1xf32>
    %13 = vector.broadcast %12 : vector<128x1xf32> to vector<128x128xf32>
    %14 = vector.broadcast %8 : vector<1x128xf32> to vector<128x128xf32>
    %15 = arith.addf %13, %14 : vector<128x128xf32>
    %cst_11 = arith.constant 0.000000e+00 : f32
    %16 = vector.broadcast %cst_11 : f32 to vector<128x128xf32>
    %17 = arith.cmpf ogt, %15, %16 : vector<128x128xf32>
    %cst_12 = arith.constant 2.000000e-01 : f32
    %18 = vector.broadcast %cst_12 : f32 to vector<128x128xf32>
    %19 = arith.mulf %18, %15 : vector<128x128xf32>
    %20 = arith.select %17, %15, %19 : vector<128x128xi1>, vector<128x128xf32>
    %cst_13 = arith.constant -1.000000e+30 : f32
    %21 = vector.broadcast %cst_13 : f32 to vector<128x128xf32>
    %22 = arith.select %11, %20, %21 : vector<128x128xi1>, vector<128x128xf32>
    %c0_14 = arith.constant 0 : index
    %c0_15 = arith.constant 0 : index
    %23 = vector.load %arg8[%c0_14, %c0_15] : memref<128x1xf32, #tpu.memory_space<vmem>>, vector<128x1xf32>
    %cst_16 = arith.constant dense<0xFF800000> : vector<128xf32>
    %24 = vector.multi_reduction <maximumf>, %22, %cst_16 [1] : vector<128x128xf32> to vector<128xf32>
    %25 = vector.shape_cast %24 : vector<128xf32> to vector<128x1xf32>
    %26 = arith.maximumf %23, %25 : vector<128x1xf32>
    %27 = arith.subf %23, %26 : vector<128x1xf32>
    %28 = math.exp %27 : vector<128x1xf32>
    %29 = vector.broadcast %26 : vector<128x1xf32> to vector<128x128xf32>
    %30 = arith.subf %22, %29 : vector<128x128xf32>
    %31 = math.exp %30 : vector<128x128xf32>
    %cst_17 = arith.constant 0.000000e+00 : f32
    %32 = vector.broadcast %cst_17 : f32 to vector<128x128xf32>
    %33 = arith.select %11, %31, %32 : vector<128x128xi1>, vector<128x128xf32>
    %c0_18 = arith.constant 0 : index
    %c0_19 = arith.constant 0 : index
    %34 = vector.load %arg9[%c0_18, %c0_19] : memref<128x1xf32, #tpu.memory_space<vmem>>, vector<128x1xf32>
    %35 = arith.mulf %28, %34 : vector<128x1xf32>
    %cst_20 = arith.constant dense<0.000000e+00> : vector<128xf32>
    %36 = vector.multi_reduction <add>, %33, %cst_20 [1] : vector<128x128xf32> to vector<128xf32>
    %37 = vector.shape_cast %36 : vector<128xf32> to vector<128x1xf32>
    %38 = arith.addf %35, %37 : vector<128x1xf32>
    %c0_21 = arith.constant 0 : index
    %c0_22 = arith.constant 0 : index
    %39 = vector.load %arg9[%c0_21, %c0_22] : memref<128x1xf32, #tpu.memory_space<vmem>>, vector<128x1xf32>
    tpu.vector_store %arg9[%c0_21, %c0_22], %38 {strides = array<i32>} : memref<128x1xf32, #tpu.memory_space<vmem>>, vector<128x1xf32>,
    %c0_23 = arith.constant 0 : index
    %c0_24 = arith.constant 0 : index
    %40 = vector.load %arg10[%c0_23, %c0_24] : memref<128x128xf32, #tpu.memory_space<vmem>>, vector<128x128xf32>
    %41 = vector.broadcast %28 : vector<128x1xf32> to vector<128x128xf32>
    %42 = arith.mulf %41, %40 : vector<128x128xf32>
    %43 = arith.truncf %33 : vector<128x128xf32> to vector<128x128xbf16>
    %44 = arith.truncf %6 : vector<128x128xf32> to vector<128x128xbf16>
    %cst_25 = arith.constant dense<0.000000e+00> : vector<128x128xf32>
    %45 = tpu.matmul %43, %44, %cst_25 {dimension_numbers = #tpu.dot_dimension_numbers<[1], [0], [0], [1], [0, 0, 1, 1], [], []>} : vector<128x128xbf16>, vector<128x128xbf16>, vector<128x128xf32> -> vector<128x128xf32>
    %46 = arith.addf %42, %45 : vector<128x128xf32>
    %c0_26 = arith.constant 0 : index
    %c0_27 = arith.constant 0 : index
    %47 = vector.load %arg10[%c0_26, %c0_27] : memref<128x128xf32, #tpu.memory_space<vmem>>, vector<128x128xf32>
    tpu.vector_store %arg10[%c0_26, %c0_27], %46 {strides = array<i32>} : memref<128x128xf32, #tpu.memory_space<vmem>>, vector<128x128xf32>,
    %c0_28 = arith.constant 0 : index
    %c0_29 = arith.constant 0 : index
    %48 = vector.load %arg8[%c0_28, %c0_29] : memref<128x1xf32, #tpu.memory_space<vmem>>, vector<128x1xf32>
    tpu.vector_store %arg8[%c0_28, %c0_29], %26 {strides = array<i32>} : memref<128x1xf32, #tpu.memory_space<vmem>>, vector<128x1xf32>,
    %c0_i32_30 = arith.constant 0 : i32
    %49 = arith.cmpi eq, %arg1, %c0_i32_30 : i32
    %50 = arith.extui %49 : i1 to i32
    %c0_i32_31 = arith.constant 0 : i32
    %51 = arith.cmpi ne, %50, %c0_i32_31 : i32
    scf.if %51 {
      %c0_32 = arith.constant 0 : index
      %c0_33 = arith.constant 0 : index
      %52 = vector.load %arg9[%c0_32, %c0_33] : memref<128x1xf32, #tpu.memory_space<vmem>>, vector<128x1xf32>
      %cst_34 = arith.constant 0.000000e+00 : f32
      %53 = vector.broadcast %cst_34 : f32 to vector<128x1xf32>
      %54 = arith.cmpf ogt, %52, %53 : vector<128x1xf32>
      %cst_35 = arith.constant 1.000000e+00 : f32
      %55 = vector.broadcast %cst_35 : f32 to vector<128x1xf32>
      %56 = arith.select %54, %52, %55 : vector<128x1xi1>, vector<128x1xf32>
      %57 = tpu.reciprocal %56 {approx = true} : vector<128x1xf32> -> vector<128x1xf32>
      %c0_36 = arith.constant 0 : index
      %c0_37 = arith.constant 0 : index
      %58 = vector.load %arg10[%c0_36, %c0_37] : memref<128x128xf32, #tpu.memory_space<vmem>>, vector<128x128xf32>
      %59 = vector.broadcast %57 : vector<128x1xf32> to vector<128x128xf32>
      %60 = arith.mulf %58, %59 : vector<128x128xf32>
      %c0_38 = arith.constant 0 : index
      %c0_39 = arith.constant 0 : index
      %61 = vector.load %arg11[%c0_38, %c0_39] : memref<128x128xf32, #tpu.memory_space<vmem>>, vector<128x128xf32>
      %62 = arith.addf %60, %61 : vector<128x128xf32>
      %cst_40 = arith.constant 0.000000e+00 : f32
      %63 = vector.broadcast %cst_40 : f32 to vector<128x128xf32>
      %64 = arith.maximumf %62, %63 : vector<128x128xf32>
      %c0_41 = arith.constant 0 : index
      %c0_42 = arith.constant 0 : index
      %65 = vector.load %arg7[%c0_41, %c0_42] : memref<128x128xf32, #tpu.memory_space<vmem>>, vector<128x128xf32>
      tpu.vector_store %arg7[%c0_41, %c0_42], %64 {strides = array<i32>} : memref<128x128xf32, #tpu.memory_space<vmem>>, vector<128x128xf32>,
    } else {
    }
    return
  }
  func.func @transform_0(%arg0: i32, %arg1: i32) -> (i32, i32) {
    %c0_i32 = arith.constant 0 : i32
    %c0_i32_0 = arith.constant 0 : i32
    return %arg0, %c0_i32 : i32, i32
  }
  func.func @transform_1(%arg0: i32, %arg1: i32) -> (i32, i32) {
    %c0_i32 = arith.constant 0 : i32
    %c0_i32_0 = arith.constant 0 : i32
    return %arg1, %c0_i32 : i32, i32
  }
  func.func @transform_2(%arg0: i32, %arg1: i32) -> (i32, i32) {
    %c0_i32 = arith.constant 0 : i32
    return %arg0, %arg1 : i32, i32
  }
  func.func @transform_3(%arg0: i32, %arg1: i32) -> (i32, i32) {
    %c0_i32 = arith.constant 0 : i32
    %c0_i32_0 = arith.constant 0 : i32
    %c0_i32_1 = arith.constant 0 : i32
    return %c0_i32, %c0_i32_0 : i32, i32
  }
  func.func @transform_4(%arg0: i32, %arg1: i32) -> (i32, i32) {
    %c0_i32 = arith.constant 0 : i32
    %c0_i32_0 = arith.constant 0 : i32
    %c0_i32_1 = arith.constant 0 : i32
    return %c0_i32, %c0_i32_0 : i32, i32
  }
  func.func @transform_5(%arg0: i32, %arg1: i32) -> (i32, i32) {
    %c0_i32 = arith.constant 0 : i32
    %c0_i32_0 = arith.constant 0 : i32
    return %arg0, %c0_i32 : i32, i32
  }
}

</mosaic_0001>

<bundles_post_ra>
// kernel: gat_forward.3
= control target key start
LH: loop header
LB: loop body
LE: loop exit
PB: predicated region body
PF: predicated region fallthrough
CT: control target
= control target key end

     0   :  { %s3187_s0 = inlined_call_operand.vmem [shape: f32[128,128], index: 0, kind: input, shape index: {}, may-alias: {0,1}]   ;;  %s3188_s1 = inlined_call_operand.vmem [shape: f32[128,128], index: 1, kind: input, shape index: {}, may-alias: {0,1}]   ;;  %s3189_s2 = inlined_call_operand.vmem [shape: s8[128,128], index: 2, kind: input, shape index: {}]   ;;  %s3190_s3 = inlined_call_operand.vmem [shape: bf16[128,256], index: 3, kind: input, shape index: {}]   ;;  %s3191_s4 = inlined_call_operand.vmem [shape: f32[1,128], index: 4, kind: input, shape index: {}]   ;;  %s3192_s5 = inlined_call_operand.hbm [shape: f32[128,128], index: 5, kind: output, shape index: {}]  }
   0x1   :  { %v2063_v0 = vld [vmem:[%s3190_s3 + $0x4] ss:$8 sps:$4 sm:$0xff]   ;;  %v2064_v1 = vld [vmem:[%s3190_s3 + $0x14] ss:$8 sps:$4 sm:$0xff]  }
   0x2   :  { %1897 = vmatprep.subr.bf16.mxu0 %v2063_v0  ;;  %v2065_v2 = vld [vmem:[%s3190_s3 + $0x24] ss:$8 sps:$4 sm:$0xff]   ;;  %v2066_v4 = vld [vmem:[%s3190_s3 + $0x34] ss:$8 sps:$4 sm:$0xff]  }
   0x3   :  { %1898 = vmatpush3.bf16.msra.mxu0 %v2063_v0  ;;  %v44_v3 = vld [vmem:[%s3187_s0] sm:$0xff]  ;;  %v45_v5 = vld [vmem:[%s3187_s0 + $0x8] sm:$0xff]  ;;  %v2068_v10 = vld [vmem:[%s3190_s3 + $0x54] ss:$8 sps:$4 sm:$0xff]  }
   0x4   :  { %1899 = vmatprep.subr.bf16.mxu0 %v2064_v1  ;;  %v60_v6 = vpack.c.bf16 %v45_v5, %v44_v3  ;;  %v2067_v7 = vld [vmem:[%s3190_s3 + $0x44] ss:$8 sps:$4 sm:$0xff]  }
   0x5   :  { %v363_v8 = vld [vmem:[%s3188_s1] sm:$0xff]  ;;  %v364_v9 = vld [vmem:[%s3188_s1 + $0x8] sm:$0xff] }
   0x6   :  { %1913 = vmatprep.mubr.bf16.mxu0 %v60_v6  ;;  %v379_v11 = vpack.c.bf16 %v364_v9, %v363_v8  ;;  %v2069_v12 = vld [vmem:[%s3190_s3 + $0x64] ss:$8 sps:$4 sm:$0xff]  }
   0x7   :  { %1900 = vmatpush3.bf16.msra.mxu0 %v2064_v1 }
   0x8   :  { %1901 = vmatprep.subr.bf16.mxu0 %v2065_v2  ;;  %1945 = vmatprep.mubr.bf16.mxu1 %v379_v11 }
   0xb   :  { %1902 = vmatpush3.bf16.msra.mxu0 %v2065_v2 }
   0xc   :  { %1903 = vmatprep.subr.bf16.mxu0 %v2066_v4 }
   0xf   :  { %1904 = vmatpush3.bf16.msra.mxu0 %v2066_v4 }
  0x10   :  { %1905 = vmatprep.subr.bf16.mxu0 %v2067_v7 }
  0x13   :  { %1906 = vmatpush3.bf16.msra.mxu0 %v2067_v7 }
  0x14   :  { %1907 = vmatprep.subr.bf16.mxu0 %v2068_v10 }
  0x15   :  { %10 = vsyncpa [#allocation8], 0  ;;  %v42_v13 = vld [vmem:[%s3190_s3 + $0x74] sm:$0xf]  ;;  %v2277_v14 = vld [vmem:[%s3190_s3 + $0x7c] sm:$0xf]  ;;  %v69_v61 = vlaneseq }
  0x16   :  { %v1799_v15 = vcombine.low %v42_v13, %v2277_v14  ;;  %v46_v16 = vld [vmem:[%s3187_s0 + $0x10] sm:$0xff]  ;;  %v47_v17 = vld [vmem:[%s3187_s0 + $0x18] sm:$0xff]  ;;  %v48_v18 = vld [vmem:[%s3187_s0 + $0x20] sm:$0xff]  ;;  %v2199_v22 = vmov 0.0|0.0   ;;  %vm3193_vm0 = vcmask 7168   ;;  %vm2200_vm1 = vmmov 0  }
  0x17   :  { %1908 = vmatpush3.bf16.msra.mxu0 %v2068_v10  ;;  %v49_v19 = vld [vmem:[%s3187_s0 + $0x28] sm:$0xff]  ;;  %v61_v20 = vpack.c.bf16 %v47_v17, %v46_v16  ;;  %v50_v23 = vld [vmem:[%s3187_s0 + $0x30] sm:$0xff]  ;;  %v51_v24 = vld [vmem:[%s3187_s0 + $0x38] sm:$0xff]  ;;  %v2201_v59 = vmov 0.0   ;;  %v2404_v62 = vshrl.u32 %v69_v61, 7  ;;  %v68_v63 = vunpack.c.l.bf16 %v2277_v14 }
  0x18   :  { %1909 = vmatprep.subr.bf16.mxu0 %v2069_v12  ;;  %v62_v21 = vpack.c.bf16 %v49_v19, %v48_v18  ;;  %v52_v25 = vld [vmem:[%s3187_s0 + $0x40] sm:$0xff]  ;;  %v53_v26 = vld [vmem:[%s3187_s0 + $0x48] sm:$0xff]  ;;  %v63_v27 = vpack.c.bf16 %v51_v24, %v50_v23  ;;  %v365_v29 = vld [vmem:[%s3188_s1 + $0x10] sm:$0xff]  ;;  %331 = vst.msk [vmem:[#allocation3] sm:$0xff] %vm3193_vm0, %v2201_v59  ;;  %v2202_v1 = vmov 0  }
  0x19   :  { %v64_v28 = vpack.c.bf16 %v53_v26, %v52_v25  ;;  %v366_v30 = vld [vmem:[%s3188_s1 + $0x18] sm:$0xff]  ;;  %v54_v31 = vld [vmem:[%s3187_s0 + $0x50] sm:$0xff]  ;;  %v56_v33 = vld [vmem:[%s3187_s0 + $0x60] sm:$0xff]  ;;  %332 = vst.msk [vmem:[#allocation3 + $0x8] sm:$0xff] %vm3193_vm0, %v2201_v59  ;;  %v71_v0 = vsub.s32 7, %v2404_v62  ;;  %2061 = vset.pattern.permute.xlu0 %v2202_v1  ;;  %2062 = vset.pattern.permute.xlu1 %v2202_v1 }
  0x1a   :  { %v55_v32 = vld [vmem:[%s3187_s0 + $0x58] sm:$0xff]  ;;  %v57_v34 = vld [vmem:[%s3187_s0 + $0x68] sm:$0xff]  ;;  %v2322_v35 = vpack.c.bf16 %v366_v30, %v365_v29  ;;  %v367_v38 = vld [vmem:[%s3188_s1 + $0x20] sm:$0xff]  ;;  %333 = vst.msk [vmem:[#allocation3 + $0x10] sm:$0xff] %vm3193_vm0, %v2201_v59 }
  0x1b   :  { %1910 = vmatpush3.bf16.msra.mxu0 %v2069_v12  ;;  %v65_v36 = vpack.c.bf16 %v55_v32, %v54_v31  ;;  %v66_v37 = vpack.c.bf16 %v57_v34, %v56_v33  ;;  %v368_v39 = vld [vmem:[%s3188_s1 + $0x28] sm:$0xff]  ;;  %v58_v40 = vld [vmem:[%s3187_s0 + $0x70] sm:$0xff]  ;;  %v59_v41 = vld [vmem:[%s3187_s0 + $0x78] sm:$0xff]  ;;  %334 = vst.msk [vmem:[#allocation3 + $0x18] sm:$0xff] %vm3193_vm0, %v2201_v59  ;;  %v72_v2 = vrot.slane %v68_v63, %v71_v0 }
  0x1c   :  { %1911 = vmatprep.subr.bf16.mxu0 %v1799_v15  ;;  %v2337_v42 = vpack.c.bf16 %v368_v39, %v367_v38  ;;  %v67_v43 = vpack.c.bf16 %v59_v41, %v58_v40  ;;  %v369_v44 = vld [vmem:[%s3188_s1 + $0x30] sm:$0xff]  ;;  %v370_v45 = vld [vmem:[%s3188_s1 + $0x38] sm:$0xff]  ;;  %v371_v47 = vld [vmem:[%s3188_s1 + $0x40] sm:$0xff]  ;;  %335 = vst.msk [vmem:[#allocation3 + $0x20] sm:$0xff] %vm3193_vm0, %v2201_v59 }
  0x1d   :  { %v2346_v46 = vpack.c.bf16 %v370_v45, %v369_v44  ;;  %v372_v48 = vld [vmem:[%s3188_s1 + $0x48] sm:$0xff]  ;;  %v373_v50 = vld [vmem:[%s3188_s1 + $0x50] sm:$0xff]  ;;  %v374_v51 = vld [vmem:[%s3188_s1 + $0x58] sm:$0xff]  ;;  %336 = vst.msk [vmem:[#allocation3 + $0x28] sm:$0xff] %vm3193_vm0, %v2201_v59 }
  0x1e   :  { %v2355_v49 = vpack.c.bf16 %v372_v48, %v371_v47  ;;  %v2364_v52 = vpack.c.bf16 %v374_v51, %v373_v50  ;;  %v375_v53 = vld [vmem:[%s3188_s1 + $0x60] sm:$0xff]  ;;  %v376_v54 = vld [vmem:[%s3188_s1 + $0x68] sm:$0xff]  ;;  %v377_v56 = vld [vmem:[%s3188_s1 + $0x70] sm:$0xff]  ;;  %337 = vst.msk [vmem:[#allocation3 + $0x30] sm:$0xff] %vm3193_vm0, %v2201_v59 }
  0x1f   :  { %1912 = vmatpush3.bf16.msra.mxu0 %v1799_v15  ;;  %v2373_v55 = vpack.c.bf16 %v376_v54, %v375_v53  ;;  %v378_v57 = vld [vmem:[%s3188_s1 + $0x78] sm:$0xff]  ;;  %338 = vst.msk [vmem:[#allocation3 + $0x38] sm:$0xff] %vm3193_vm0, %v2201_v59  ;;  %339 = vst.msk [vmem:[#allocation3 + $0x40] sm:$0xff] %vm3193_vm0, %v2201_v59  ;;  %v548_v60 = vld [vmem:[%s3191_s4] sm:$0x1]  ;;  %s2203_s4 = smov 2  }
  0x20   :  { %2028 = vmatprep.subr.bf16.mxu0 %v2199_v22  ;;  %v2382_v58 = vpack.c.bf16 %v378_v57, %v377_v56  ;;  %340 = vst.msk [vmem:[#allocation3 + $0x48] sm:$0xff] %vm3193_vm0, %v2201_v59  ;;  %341 = vst.msk [vmem:[#allocation3 + $0x50] sm:$0xff] %vm3193_vm0, %v2201_v59 }
  0x21   :  { %342 = vst.msk [vmem:[#allocation3 + $0x58] sm:$0xff] %vm3193_vm0, %v2201_v59  ;;  %343 = vst.msk [vmem:[#allocation3 + $0x60] sm:$0xff] %vm3193_vm0, %v2201_v59 }
  0x22   :  { %1914 = vmatmul.mubr.bf16.vlgmr.msra.gmra.mrb[0].mxu0 %v61_v20  ;;  %344 = vst.msk [vmem:[#allocation3 + $0x68] sm:$0xff] %vm3193_vm0, %v2201_v59  ;;  %345 = vst.msk [vmem:[#allocation3 + $0x70] sm:$0xff] %vm3193_vm0, %v2201_v59 }
  0x23   :  { %1917 = vmatprep.mubr.bf16.mxu0 %v62_v21  ;;  %346 = vst.msk [vmem:[#allocation3 + $0x78] sm:$0xff] %vm3193_vm0, %v2201_v59 }
  0x28   :  { %2030 = vmatpush3.bf16.xpose.msra.mxu0 %v379_v11 }
  0x29   :  { %2031 = vmatprep.subr.bf16.mxu0 %v2199_v22 }
  0x2a   :  { %1918 = vmatmul.mubr.bf16.gmra.mrb[4].mxu0 %v63_v27 }
  0x2b   :  { %1921 = vmatprep.mubr.bf16.mxu0 %v64_v28 }
  0x30   :  { %2033 = vmatpush3.bf16.xpose.msra.mxu0 %v2322_v35 }
  0x31   :  { %2034 = vmatprep.subr.bf16.mxu0 %v2199_v22 }
  0x32   :  { %1922 = vmatmul.mubr.bf16.gmra.mrb[8].mxu0 %v65_v36 }
  0x33   :  { %1925 = vmatprep.mubr.bf16.mxu0 %v66_v37 }
  0x38   :  { %2036 = vmatpush3.bf16.xpose.msra.mxu0 %v2337_v42 }
  0x39   :  { %2037 = vmatprep.subr.bf16.mxu0 %v2199_v22 }
  0x3a   :  { %1926 = vmatmul.mubr.bf16.gmra.mrb[12].mxu0 %v67_v43 }
  0x3b   :  { %1993 = vmatprep.mubr.msk.f32.mxu0 %vm2200_vm1, %v2201_v59 }
  0x40   :  { %2039 = vmatpush3.bf16.xpose.msra.mxu0 %v2346_v46 }
  0x41   :  { %2040 = vmatprep.subr.bf16.mxu0 %v2199_v22 }
  0x48   :  { %2042 = vmatpush3.bf16.xpose.msra.mxu0 %v2355_v49 }
  0x49   :  { %2043 = vmatprep.subr.bf16.mxu0 %v2199_v22 }
  0x50   :  { %2045 = vmatpush3.bf16.xpose.msra.mxu0 %v2364_v52 }
  0x51   :  { %2046 = vmatprep.subr.bf16.mxu0 %v2199_v22 }
  0x58   :  { %2048 = vmatpush3.bf16.xpose.msra.mxu0 %v2373_v55 }
  0x59   :  { %2049 = vmatprep.subr.bf16.mxu0 %v2199_v22 }
  0x60   :  { %2051 = vmatpush3.bf16.xpose.msra.mxu0 %v2382_v58 }
  0x67   :  { %1994 = vmatmul.mubr.f32.vlgmr.msra.gmra.mrb[16].mxu0 %v548_v60 }
  0xf5   :  { %v1915_v3 = vpop.f32.mrb[0].mxu0 }
  0xf6   :  { %v2410_v4 = vadd.f32 %v1915_v3, %v72_v2  ;;  %v155_v5 = vpop.f32.mrb[1].mxu0 }
  0xf7   :  { %v2412_v6 = vadd.f32 %v155_v5, %v72_v2  ;;  %v1916_v7 = vpop.f32.mrb[2].mxu0 }
  0xf8   :  { %3230 = vst [vmem:[#allocation10_spill] sm:$0xff] %v2410_v4  ;;  %v2414_v8 = vadd.f32 %v1916_v7, %v72_v2  ;;  %254 = vrot.lane.b32.xlu1 %v2410_v4, %s2203_s4  ;;  %v158_v9 = vpop.f32.mrb[3].mxu0 }
  0xf9   :  { %3231 = vst [vmem:[#allocation11_spill] sm:$0xff] %v2412_v6  ;;  %v2418_v10 = vadd.f32 %v158_v9, %v72_v2  ;;  %250 = vrot.lane.b32.xlu0 %v2412_v6, %s2203_s4 }
  0xfa   :  { %3232 = vst [vmem:[#allocation12_spill] sm:$0xff] %v2414_v8 }
  0xfb   :  { %3233 = vst [vmem:[#allocation13_spill] sm:$0xff] %v2418_v10 }
  0xfc   :  { %256 = vrot.lane.b32.xlu1 %v2414_v8, %s2203_s4 }
  0xfd   :  { %v1919_v11 = vpop.f32.mrb[4].mxu0  ;;  %252 = vrot.lane.b32.xlu0 %v2418_v10, %s2203_s4 }
  0xfe   :  { %v2426_v12 = vadd.f32 %v1919_v11, %v72_v2  ;;  %v171_v13 = vpop.f32.mrb[5].mxu0  ;;  %v2071_v11 = vld [vmem:[%s3190_s3] ss:$8 sps:$4 sm:$0xff]  }
  0xff   :  { %v2428_v14 = vadd.f32 %v171_v13, %v72_v2  ;;  %v1920_v15 = vpop.f32.mrb[6].mxu0  ;;  %1929 = vmatprep.subr.bf16.mxu1 %v2071_v11 }
 0x100   :  { %3234 = vst [vmem:[#allocation14_spill] sm:$0xff] %v2426_v12  ;;  %v2430_v16 = vadd.f32 %v1920_v15, %v72_v2  ;;  %v174_v17 = vpop.f32.mrb[7].mxu0  ;;  %1930 = vmatpush3.bf16.msra.mxu1 %v2071_v11 }
 0x101   :  { %3235 = vst [vmem:[#allocation15_spill] sm:$0xff] %v2428_v14  ;;  %v2432_v18 = vadd.f32 %v174_v17, %v72_v2  ;;  %258 = vrot.lane.b32.xlu0 %v2428_v14, %s2203_s4 }
 0x102   :  { %3236 = vst [vmem:[#allocation16_spill] sm:$0xff] %v2430_v16 }
 0x103   :  { %3237 = vst [vmem:[#allocation17_spill] sm:$0xff] %v2432_v18  ;;  %260 = vrot.lane.b32.xlu1 %v2432_v18, %s2203_s4 }
 0x105   :  { %v1923_v19 = vpop.f32.mrb[8].mxu0  ;;  %262 = vrot.lane.b32.xlu0 %v2426_v12, %s2203_s4 }
 0x106   :  { %v2440_v20 = vadd.f32 %v1923_v19, %v72_v2  ;;  %v187_v21 = vpop.f32.mrb[9].mxu0  ;;  %v2072_v19 = vld [vmem:[%s3190_s3 + $0x10] ss:$8 sps:$4 sm:$0xff]  }
 0x107   :  { %v2442_v22 = vadd.f32 %v187_v21, %v72_v2  ;;  %v1924_v23 = vpop.f32.mrb[10].mxu0  ;;  %264 = vrot.lane.b32.xlu1 %v2430_v16, %s2203_s4  ;;  %1931 = vmatprep.subr.bf16.mxu1 %v2072_v19 }
 0x108   :  { %3238 = vst [vmem:[#allocation18_spill] sm:$0xff] %v2440_v20  ;;  %v2446_v24 = vadd.f32 %v1924_v23, %v72_v2  ;;  %v190_v25 = vpop.f32.mrb[11].mxu0  ;;  %1932 = vmatpush3.bf16.msra.mxu1 %v2072_v19 }
 0x109   :  { %3239 = vst [vmem:[#allocation19_spill] sm:$0xff] %v2442_v22  ;;  %v2448_v26 = vadd.f32 %v190_v25, %v72_v2  ;;  %266 = vrot.lane.b32.xlu0 %v2442_v22, %s2203_s4  ;;  %v2073_v25 = vld [vmem:[%s3190_s3 + $0x20] ss:$8 sps:$4 sm:$0xff]  }
 0x10a   :  { %3240 = vst [vmem:[#allocation20_spill] sm:$0xff] %v2446_v24  ;;  %1933 = vmatprep.subr.bf16.mxu1 %v2073_v25 }
 0x10b   :  { %3241 = vst [vmem:[#allocation21_spill] sm:$0xff] %v2448_v26  ;;  %268 = vrot.lane.b32.xlu1 %v2448_v26, %s2203_s4 }
 0x10c   :  { %1934 = vmatpush3.bf16.msra.mxu1 %v2073_v25 }
 0x10d   :  { %v1927_v27 = vpop.f32.mrb[12].mxu0  ;;  %270 = vrot.lane.b32.xlu0 %v2440_v20, %s2203_s4 }
 0x10e   :  { %v2456_v28 = vadd.f32 %v1927_v27, %v72_v2  ;;  %v203_v29 = vpop.f32.mrb[13].mxu0 }
 0x10f   :  { %v2458_v30 = vadd.f32 %v203_v29, %v72_v2  ;;  %v1928_v31 = vpop.f32.mrb[14].mxu0  ;;  %272 = vrot.lane.b32.xlu1 %v2446_v24, %s2203_s4 }
 0x110   :  { %3242 = vst [vmem:[#allocation22_spill] sm:$0xff] %v2456_v28  ;;  %v2462_v32 = vadd.f32 %v1928_v31, %v72_v2  ;;  %v206_v33 = vpop.f32.mrb[15].mxu0  ;;  %v2074_v31 = vld [vmem:[%s3190_s3 + $0x30] ss:$8 sps:$4 sm:$0xff]  }
 0x111   :  { %3243 = vst [vmem:[#allocation23_spill] sm:$0xff] %v2458_v30  ;;  %v2464_v34 = vadd.f32 %v206_v33, %v72_v2  ;;  %274 = vrot.lane.b32.xlu0 %v2458_v30, %s2203_s4  ;;  %1935 = vmatprep.subr.bf16.mxu1 %v2074_v31  ;;  %v2075_v33 = vld [vmem:[%s3190_s3 + $0x40] ss:$8 sps:$4 sm:$0xff]  }
 0x112   :  { %3244 = vst [vmem:[#allocation24_spill] sm:$0xff] %v2462_v32  ;;  %1936 = vmatpush3.bf16.msra.mxu1 %v2074_v31 }
 0x113   :  { %3245 = vst [vmem:[#allocation25_spill] sm:$0xff] %v2464_v34  ;;  %276 = vrot.lane.b32.xlu1 %v2464_v34, %s2203_s4  ;;  %1937 = vmatprep.subr.bf16.mxu1 %v2075_v33 }
 0x115   :  { %278 = vrot.lane.b32.xlu0 %v2456_v28, %s2203_s4 }
 0x116   :  { %1938 = vmatpush3.bf16.msra.mxu1 %v2075_v33 }
 0x117   :  { %280 = vrot.lane.b32.xlu1 %v2462_v32, %s2203_s4 }
 0x13a   :  { %v2478_v40 = vpop.f32.mrb[16].mxu0 }
 0x13b   :  { %v1995_v41 = vpop.f32.mrb[17].mxu0 }
 0x13c   :  { %v619_v41 = vld [vmem:[%s3189_s2] sm:$0xff] }
 0x13d   :  { %vm623_vm2 = vnez %v619_v41 }
 0x16a   :  { %v255_v36 = vpop.permute.xlu1 %254 }
 0x16b   :  { %301 = vst.msk [vmem:[#allocation6 + $0x10] sm:$0xff] %vm3193_vm0, %v255_v36  ;;  %v251_v37 = vpop.permute.xlu0 %250  ;;  %v2076_v36 = vld [vmem:[%s3190_s3 + $0x50] ss:$8 sps:$4 sm:$0xff]  }
 0x16c   :  { %299 = vst.msk [vmem:[#allocation6] sm:$0xff] %vm3193_vm0, %v251_v37  ;;  %1939 = vmatprep.subr.bf16.mxu1 %v2076_v36  ;;  %v2077_v37 = vld [vmem:[%s3190_s3 + $0x60] ss:$8 sps:$4 sm:$0xff]  }
 0x16d   :  { %1940 = vmatpush3.bf16.msra.mxu1 %v2076_v36 }
 0x16e   :  { %v257_v38 = vpop.permute.xlu1 %256  ;;  %1941 = vmatprep.subr.bf16.mxu1 %v2077_v37 }
 0x16f   :  { %302 = vst.msk [vmem:[#allocation6 + $0x18] sm:$0xff] %vm3193_vm0, %v257_v38  ;;  %v253_v39 = vpop.permute.xlu0 %252  ;;  %v2204_v38 = vmov -1e+30  }
 0x170   :  { %300 = vst.msk [vmem:[#allocation6 + $0x8] sm:$0xff] %vm3193_vm0, %v253_v39  ;;  %315 = vst.msk [vmem:[#allocation2] sm:$0xff] %vm3193_vm0, %v2204_v38  ;;  %v2078_v39 = vld [vmem:[%s3190_s3 + $0x70] ss:$8 sps:$4 sm:$0xff]  }
 0x171   :  { %316 = vst.msk [vmem:[#allocation2 + $0x8] sm:$0xff] %vm3193_vm0, %v2204_v38  ;;  %317 = vst.msk [vmem:[#allocation2 + $0x10] sm:$0xff] %vm3193_vm0, %v2204_v38  ;;  %1942 = vmatpush3.bf16.msra.mxu1 %v2077_v37 }
 0x172   :  { %v629_v54 = vld [vmem:[#allocation6 + $0x10] sm:$0xff]  ;;  %318 = vst.msk [vmem:[#allocation2 + $0x18] sm:$0xff] %vm3193_vm0, %v2204_v38  ;;  %319 = vst.msk [vmem:[#allocation2 + $0x20] sm:$0xff] %vm3193_vm0, %v2204_v38  ;;  %1943 = vmatprep.subr.bf16.mxu1 %v2078_v39 }
 0x173   :  { %v259_v43 = vpop.permute.xlu0 %258  ;;  %v627_v44 = vld [vmem:[#allocation6] sm:$0xff]  ;;  %320 = vst.msk [vmem:[#allocation2 + $0x28] sm:$0xff] %vm3193_vm0, %v2204_v38  ;;  %321 = vst.msk [vmem:[#allocation2 + $0x30] sm:$0xff] %vm3193_vm0, %v2204_v38 }
 0x174   :  { %303 = vst.msk [vmem:[#allocation6 + $0x20] sm:$0xff] %vm3193_vm0, %v259_v43  ;;  %645 = vperm.xlu0 %2061, %v627_v44   ;;  %322 = vst.msk [vmem:[#allocation2 + $0x38] sm:$0xff] %vm3193_vm0, %v2204_v38 }
 0x175   :  { %v261_v45 = vpop.permute.xlu1 %260  ;;  %323 = vst.msk [vmem:[#allocation2 + $0x40] sm:$0xff] %vm3193_vm0, %v2204_v38  ;;  %324 = vst.msk [vmem:[#allocation2 + $0x48] sm:$0xff] %vm3193_vm0, %v2204_v38  ;;  %1944 = vmatpush3.bf16.msra.mxu1 %v2078_v39 }
 0x176   :  { %304 = vst.msk [vmem:[#allocation6 + $0x28] sm:$0xff] %vm3193_vm0, %v261_v45  ;;  %v630_v47 = vld [vmem:[#allocation6 + $0x18] sm:$0xff]  ;;  %325 = vst.msk [vmem:[#allocation2 + $0x50] sm:$0xff] %vm3193_vm0, %v2204_v38 }
 0x177   :  { %v263_v48 = vpop.permute.xlu0 %262  ;;  %v628_v50 = vld [vmem:[#allocation6 + $0x8] sm:$0xff]  ;;  %326 = vst.msk [vmem:[#allocation2 + $0x58] sm:$0xff] %vm3193_vm0, %v2204_v38  ;;  %327 = vst.msk [vmem:[#allocation2 + $0x60] sm:$0xff] %vm3193_vm0, %v2204_v38 }
 0x178   :  { %305 = vst.msk [vmem:[#allocation6 + $0x30] sm:$0xff] %vm3193_vm0, %v263_v48  ;;  %660 = vperm.xlu0 %2061, %v630_v47   ;;  %650 = vperm.xlu1 %2062, %v628_v50   ;;  %328 = vst.msk [vmem:[#allocation2 + $0x68] sm:$0xff] %vm3193_vm0, %v2204_v38 }
 0x179   :  { %v265_v51 = vpop.permute.xlu1 %264  ;;  %329 = vst.msk [vmem:[#allocation2 + $0x70] sm:$0xff] %vm3193_vm0, %v2204_v38  ;;  %330 = vst.msk [vmem:[#allocation2 + $0x78] sm:$0xff] %vm3193_vm0, %v2204_v38  ;;  %1946 = vmatmul.mubr.bf16.vlgmr.msra.gmra.mrb[0].mxu1 %v2322_v35  ;;  %v620_v35 = vld [vmem:[%s3189_s2 + $0x8] sm:$0xff]  ;;  %v2820_v32 = vld [vmem:[#allocation2 + $0x20] sm:$0xff] }
 0x17a   :  { %306 = vst.msk [vmem:[#allocation6 + $0x38] sm:$0xff] %vm3193_vm0, %v265_v51  ;;  %1949 = vmatprep.mubr.bf16.mxu1 %v2337_v42  ;;  %vm624_vm3 = vnez %v620_v35  ;;  %v791_v42 = vsel %vm623_vm2, 16843009, %v2202_v1  ;;  %v2840_v24 = vld [vmem:[#allocation2 + $0x30] sm:$0xff] }
 0x17b   :  { %v267_v53 = vpop.permute.xlu0 %266  ;;  %v631_v60 = vld [vmem:[#allocation6 + $0x20] sm:$0xff]  ;;  %v797_v43 = vunpack.c.2.s8 %v791_v42  ;;  %v2830_v26 = vld [vmem:[#allocation2 + $0x38] sm:$0xff] }
 0x17c   :  { %307 = vst.msk [vmem:[#allocation6 + $0x40] sm:$0xff] %vm3193_vm0, %v267_v53  ;;  %655 = vperm.xlu1 %2062, %v629_v54   ;;  %v2860_v18 = vld [vmem:[#allocation2 + $0x40] sm:$0xff] }
 0x17d   :  { %v269_v56 = vpop.permute.xlu1 %268  ;;  %v632_v57 = vld [vmem:[#allocation6 + $0x28] sm:$0xff]  ;;  %v815_v50 = vpack.c.b16 %v797_v43, %v797_v43 }
 0x17e   :  { %308 = vst.msk [vmem:[#allocation6 + $0x48] sm:$0xff] %vm3193_vm0, %v269_v56  ;;  %670 = vperm.xlu0 %2061, %v632_v57   ;;  %v2870_v12 = vld [vmem:[#allocation2 + $0x58] sm:$0xff] }
 0x17f   :  { %v271_v59 = vpop.permute.xlu0 %270  ;;  %v633_v2 = vld [vmem:[#allocation6 + $0x30] sm:$0xff]  ;;  %3298 = vst [vmem:[#allocation28_spill] sm:$0xff] %v2870_v12 }
 0x180   :  { %309 = vst.msk [vmem:[#allocation6 + $0x50] sm:$0xff] %vm3193_vm0, %v271_v59  ;;  %665 = vperm.xlu1 %2062, %v631_v60  }
 0x181   :  { %v273_v61 = vpop.permute.xlu1 %272  ;;  %v634_v63 = vld [vmem:[#allocation6 + $0x38] sm:$0xff]  ;;  %1950 = vmatmul.mubr.bf16.gmra.mrb[4].mxu1 %v2346_v46  ;;  %v792_v46 = vsel %vm624_vm3, 16843009, %v2202_v1 }
 0x182   :  { %310 = vst.msk [vmem:[#allocation6 + $0x58] sm:$0xff] %vm3193_vm0, %v273_v61  ;;  %680 = vperm.xlu0 %2061, %v634_v63   ;;  %1953 = vmatprep.mubr.bf16.mxu1 %v2355_v49  ;;  %v795_v49 = vunpack.c.0.s8 %v791_v42  ;;  %v800_v44 = vunpack.c.1.s8 %v792_v46  ;;  %v799_v53 = vunpack.c.0.s8 %v792_v46  ;;  %v802_v56 = vunpack.c.3.s8 %v792_v46 }
 0x183   :  { %v275_v0 = vpop.permute.xlu0 %274  ;;  %v635_v9 = vld [vmem:[#allocation6 + $0x40] sm:$0xff]  ;;  %v801_v59 = vunpack.c.2.s8 %v792_v46 }
 0x184   :  { %311 = vst.msk [vmem:[#allocation6 + $0x60] sm:$0xff] %vm3193_vm0, %v275_v0  ;;  %675 = vperm.xlu1 %2062, %v633_v2   ;;  %v811_v45 = vpack.c.b16 %v795_v49, %v795_v49  ;;  %v821_v51 = vpack.c.b16 %v800_v44, %v800_v44  ;;  %v816_v0 = vpack.c.b8 %v815_v50, %v815_v50 }
 0x185   :  { %v277_v3 = vpop.permute.xlu1 %276  ;;  %v636_v5 = vld [vmem:[#allocation6 + $0x48] sm:$0xff] }
 0x186   :  { %312 = vst.msk [vmem:[#allocation6 + $0x68] sm:$0xff] %vm3193_vm0, %v277_v3  ;;  %690 = vperm.xlu0 %2061, %v636_v5   ;;  %v812_v57 = vpack.c.b8 %v811_v45, %v811_v45  ;;  %v822_v2 = vpack.c.b8 %v821_v51, %v821_v51  ;;  %v819_v3 = vpack.c.b16 %v799_v53, %v799_v53 }
 0x187   :  { %v279_v7 = vpop.permute.xlu0 %278  ;;  %v637_v17 = vld [vmem:[#allocation6 + $0x50] sm:$0xff]  ;;  %v825_v5 = vpack.c.b16 %v802_v56, %v802_v56  ;;  %vm845_vm8 = vnez %v816_v0 }
 0x188   :  { %313 = vst.msk [vmem:[#allocation6 + $0x70] sm:$0xff] %vm3193_vm0, %v279_v7  ;;  %685 = vperm.xlu1 %2062, %v635_v9   ;;  %vm843_vm5 = vnez %v812_v57  ;;  %v823_v7 = vpack.c.b16 %v801_v59, %v801_v59  ;;  %v725_v9 = vsub.s32 0, %v2404_v62  ;;  %vm848_vm9 = vnez %v822_v2  ;;  %v622_v62 = vld [vmem:[%s3189_s2 + $0x18] sm:$0xff] }
 0x189   :  { %v281_v13 = vpop.permute.xlu1 %280  ;;  %v638_v15 = vld [vmem:[#allocation6 + $0x58] sm:$0xff]  ;;  %1954 = vmatmul.mubr.bf16.gmra.mrb[8].mxu1 %v2364_v52  ;;  %v621_v52 = vld [vmem:[%s3189_s2 + $0x10] sm:$0xff]  ;;  %v826_v19 = vpack.c.b8 %v825_v5, %v825_v5  ;;  %vm626_vm12 = vnez %v622_v62  ;;  %s2205_s2 = smov [#allocation7]  }
 0x18a   :  { %314 = vst.msk [vmem:[#allocation6 + $0x78] sm:$0xff] %vm3193_vm0, %v281_v13  ;;  %700 = vperm.xlu0 %2061, %v638_v15   ;;  %1957 = vmatprep.mubr.bf16.mxu1 %v2373_v55  ;;  %v796_v55 = vunpack.c.1.s8 %v791_v42  ;;  %vm625_vm4 = vnez %v621_v52  ;;  %v820_v13 = vpack.c.b8 %v819_v3, %v819_v3  ;;  %v824_v25 = vpack.c.b8 %v823_v7, %v823_v7  ;;  %s1781_s22 = sshll.u32 %s2205_s2, 4  ;;  %s1782_s22 = int_to_ptr.vmem [resolvable:$true] %s1781_s22 }
 0x18b   :  { %v639_v23 = vld [vmem:[#allocation6 + $0x60] sm:$0xff]  ;;  %v2551_v54 = vsel %vm625_vm4, 16843009, %v2202_v1  ;;  %v2565_v33 = vrot.slane %v2478_v40, %v725_v9  ;;  %vm850_vm11 = vnez %v826_v19  ;;  %v2573_v43 = vsel %vm626_vm12, 16843009, %v2202_v1  ;;  %s2175_s23 = scalar_lea.vmem %s1782_s22, 2048  ;;  %p2180_p1 = scmp.lt.s32.totalorder %s1782_s22, %s1782_s22 }
 0x18c   :  { %695 = vperm.xlu1 %2062, %v637_v17   ;;  %v813_v47 = vpack.c.b16 %v796_v55, %v796_v55  ;;  %v804_v63 = vunpack.c.1.s8 %v2551_v54  ;;  %v803_v15 = vunpack.c.0.s8 %v2551_v54  ;;  %v859_v17 = vsel %vm843_vm5, 16843009, %v2202_v1  ;;  %p2176_p0 = scmp.ne.s32.totalorder %s1782_s22, %s2175_s23  ;;  %p2181_p2 = scmp.lt.s32.totalorder %s2175_s23, %s2175_s23 }
 0x18d   :  { %v640_v21 = vld [vmem:[#allocation6 + $0x68] sm:$0xff]  ;;  %v875_v36 = vunpack.c.0.s8 %v859_v17  ;;  %vm847_vm10 = vnez %v820_v13  ;;  %vm849_vm13 = vnez %v824_v25  ;;  %v806_v49 = vunpack.c.3.s8 %v2551_v54 }
 0x18e   :  { %710 = vperm.xlu0 %2061, %v640_v21   ;;  %v814_v60 = vpack.c.b8 %v813_v47, %v813_v47  ;;  %v829_v11 = vpack.c.b16 %v804_v63, %v804_v63  ;;  %v827_v37 = vpack.c.b16 %v803_v15, %v803_v15  ;;  %v863_v46 = vsel %vm847_vm10, 16843009, %v2202_v1  ;;  %p2182_p3 = por %p2181_p2, %p2180_p1 }
 0x18f   :  { %v641_v29 = vld [vmem:[#allocation6 + $0x70] sm:$0xff]  ;;  %v805_v52 = vunpack.c.2.s8 %v2551_v54  ;;  %v866_v55 = vsel %vm850_vm11, 16843009, %v2202_v1  ;;  %vm2575_vm15 = vcmp.ne.s32.totalorder %v875_v36, 0  ;;  %v879_v53 = vunpack.c.0.s8 %v863_v46 }
 0x190   :  { %705 = vperm.xlu1 %2062, %v639_v23   ;;  %vm844_vm6 = vnez %v814_v60  ;;  %v830_v31 = vpack.c.b8 %v829_v11, %v829_v11  ;;  %v882_v59 = vunpack.c.0.s8 %v866_v55  ;;  %v833_v60 = vpack.c.b16 %v806_v49, %v806_v49  ;;  %p2183_p4 = pnand %p2182_p3, %p2176_p0 }
 0x191   :  { %v642_v27 = vld [vmem:[#allocation6 + $0x78] sm:$0xff]  ;;  %1958 = vmatmul.mubr.bf16.gmra.mrb[12].mxu1 %v2382_v58  ;;  %v798_v58 = vunpack.c.3.s8 %v791_v42  ;;  %v860_v21 = vsel %vm844_vm6, 16843009, %v2202_v1  ;;  %v808_v63 = vunpack.c.1.s8 %v2573_v43  ;;  %v807_v13 = vunpack.c.0.s8 %v2573_v43 }
 0x192   :  { %720 = vperm.xlu0 %2061, %v642_v27   ;;  %v861_v27 = vsel %vm845_vm8, 16843009, %v2202_v1  ;;  %v876_v38 = vunpack.c.0.s8 %v860_v21  ;;  %vm852_vm14 = vnez %v830_v31  ;;  %v834_v25 = vpack.c.b8 %v833_v60, %v833_v60 }
 0x193   :  { %v817_v48 = vpack.c.b16 %v798_v58, %v798_v58  ;;  %v877_v41 = vunpack.c.0.s8 %v861_v27  ;;  %v828_v58 = vpack.c.b8 %v827_v37, %v827_v37  ;;  %v868_v54 = vsel %vm852_vm14, 16843009, %v2202_v1 }
 0x194   :  { %715 = vperm.xlu1 %2062, %v641_v29   ;;  %v864_v29 = vsel %vm848_vm9, 16843009, %v2202_v1  ;;  %vm2579_vm1 = vcmp.ne.s32.totalorder %v876_v38, 0  ;;  %v884_v11 = vunpack.c.0.s8 %v868_v54  ;;  %vm2606_vm9 = vcmp.ne.s32.totalorder %v879_v53, 0 }
 0x195   :  { %v818_v61 = vpack.c.b8 %v817_v48, %v817_v48  ;;  %v880_v35 = vunpack.c.0.s8 %v864_v29  ;;  %v865_v48 = vsel %vm849_vm13, 16843009, %v2202_v1  ;;  %vm2588_vm4 = vcmp.ne.s32.totalorder %v877_v41, 0 }
 0x196   :  { %vm851_vm6 = vnez %v828_v58  ;;  %v881_v9 = vunpack.c.0.s8 %v865_v48  ;;  %v837_v62 = vpack.c.b16 %v808_v63, %v808_v63  ;;  %v810_v27 = vunpack.c.3.s8 %v2573_v43 }
 0x197   :  { %vm846_vm7 = vnez %v818_v61  ;;  %v831_v61 = vpack.c.b16 %v805_v52, %v805_v52  ;;  %vm2596_vm5 = vcmp.ne.s32.totalorder %v880_v35, 0  ;;  %vm2613_vm10 = vcmp.ne.s32.totalorder %v882_v59, 0 }
 0x198   :  { %v862_v23 = vsel %vm846_vm7, 16843009, %v2202_v1  ;;  %v809_v46 = vunpack.c.2.s8 %v2573_v43  ;;  %vm2629_vm12 = vcmp.ne.s32.totalorder %v881_v9, 0  ;;  %vm2633_vm13 = vnez %v834_v25 }
 0x199   :  { %v878_v39 = vunpack.c.0.s8 %v862_v23  ;;  %v867_v23 = vsel %vm851_vm6, 16843009, %v2202_v1  ;;  %v832_v38 = vpack.c.b8 %v831_v61, %v831_v61  ;;  %v841_v43 = vpack.c.b16 %v810_v27, %v810_v27 }
 0x19b   :  { %vm2583_vm2 = vcmp.ne.s32.totalorder %v878_v39, 0  ;;  %vm2646_vm6 = vnez %v832_v38 }
 0x1f3   :  { %v646_v42 = vpop.permute.xlu0 %645 }
 0x1f4   :  { %v727_v40 = vadd.f32 %v2565_v33, %v646_v42  ;;  %v835_v42 = vpack.c.b16 %v807_v13, %v807_v13 }
 0x1f6   :  { %v759_v50 = vmul.f32 0.2, %v727_v40  ;;  %vm743_vm3 = vcmp.gt.f32.partialorder %v727_v40, 0.0  ;;  %v836_v63 = vpack.c.b8 %v835_v42, %v835_v42 }
 0x1f7   :  { %v651_v56 = vpop.permute.xlu1 %650  ;;  %v661_v57 = vpop.permute.xlu0 %660 }
 0x1f8   :  { %v728_v0 = vadd.f32 %v2565_v33, %v651_v56  ;;  %v730_v2 = vadd.f32 %v2565_v33, %v661_v57  ;;  %v775_v3 = vsel %vm743_vm3, %v727_v40, %v759_v50  ;;  %v883_v40 = vunpack.c.0.s8 %v867_v23 }
 0x1f9   :  { %v2602_v7 = vsel %vm2575_vm15, %v775_v3, -1e+30  ;;  %v838_v50 = vpack.c.b8 %v837_v62, %v837_v62  ;;  %vm2638_vm3 = vcmp.ne.s32.totalorder %v884_v11, 0  ;;  %v842_v23 = vpack.c.b8 %v841_v43, %v841_v43 }
 0x1fa   :  { %v760_v15 = vmul.f32 0.2, %v728_v0  ;;  %v762_v17 = vmul.f32 0.2, %v730_v2  ;;  %939 = vmax.xlane.f32.xlu1 %v2602_v7  ;;  %vm744_vm7 = vcmp.gt.f32.partialorder %v728_v0, 0.0  ;;  %vm746_vm8 = vcmp.gt.f32.partialorder %v730_v2, 0.0 }
 0x1fb   :  { %v656_v21 = vpop.permute.xlu1 %655 }
 0x1fc   :  { %v729_v29 = vadd.f32 %v2565_v33, %v656_v21  ;;  %v776_v31 = vsel %vm744_vm7, %v728_v0, %v760_v15  ;;  %v778_v36 = vsel %vm746_vm8, %v730_v2, %v762_v17  ;;  %v839_v0 = vpack.c.b16 %v809_v46, %v809_v46 }
 0x1fd   :  { %v671_v39 = vpop.permute.xlu0 %670  ;;  %v2619_v41 = vsel %vm2579_vm1, %v776_v31, -1e+30  ;;  %v2623_v35 = vsel %vm2583_vm2, %v778_v36, -1e+30  ;;  %vm2652_vm8 = vcmp.ne.s32.totalorder %v883_v40, 0  ;;  %v3278_v21 = vmov 0 }
 0x1fe   :  { %v761_v49 = vmul.f32 0.2, %v729_v29  ;;  %v732_v52 = vadd.f32 %v2565_v33, %v671_v39  ;;  %941 = vmax.xlane.f32.xlu0 %v2619_v41  ;;  %945 = vmax.xlane.f32.xlu1 %v2623_v35  ;;  %vm745_vm11 = vcmp.gt.f32.partialorder %v729_v29, 0.0  ;;  %v870_v17 = vsel %vm2633_vm13, 16843009, %v2202_v1 }
 0x1ff   :  { %v666_v55 = vpop.permute.xlu1 %665  ;;  %v869_v36 = vsel %vm2646_vm6, 16843009, %v2202_v1  ;;  %vm2676_vm13 = vnez %v836_v63  ;;  %v840_v39 = vpack.c.b8 %v839_v0, %v839_v0  ;;  %vm2689_vm6 = vnez %v842_v23 }
 0x200   :  { %v764_v53 = vmul.f32 0.2, %v732_v52  ;;  %v731_v54 = vadd.f32 %v2565_v33, %v666_v55  ;;  %v777_v56 = vsel %vm745_vm11, %v729_v29, %v761_v49  ;;  %vm748_vm14 = vcmp.gt.f32.partialorder %v732_v52, 0.0 }
 0x201   :  { %v681_v59 = vpop.permute.xlu0 %680  ;;  %v2644_v60 = vsel %vm2588_vm4, %v777_v56, -1e+30  ;;  %vm2663_vm11 = vnez %v838_v50  ;;  %v886_v55 = vunpack.c.0.s8 %v870_v17  ;;  %v885_v61 = vunpack.c.0.s8 %v869_v36 }
 0x202   :  { %v763_v2 = vmul.f32 0.2, %v731_v54  ;;  %v734_v3 = vadd.f32 %v2565_v33, %v681_v59  ;;  %943 = vmax.xlane.f32.xlu0 %v2644_v60  ;;  %v780_v9 = vsel %vm748_vm14, %v732_v52, %v764_v53  ;;  %vm747_vm7 = vcmp.gt.f32.partialorder %v731_v54, 0.0 }
 0x203   :  { %v676_v13 = vpop.permute.xlu1 %675  ;;  %v2658_v15 = vsel %vm2596_vm5, %v780_v9, -1e+30  ;;  %v872_v48 = vsel %vm2663_vm11, 16843009, %v2202_v1  ;;  %v871_v63 = vsel %vm2676_vm13, 16843009, %v2202_v1  ;;  %vm2702_vm11 = vnez %v840_v39 }
 0x204   :  { %v766_v25 = vmul.f32 0.2, %v734_v3  ;;  %v733_v62 = vadd.f32 %v2565_v33, %v676_v13  ;;  %949 = vmax.xlane.f32.xlu1 %v2658_v15  ;;  %v779_v27 = vsel %vm747_vm7, %v731_v54, %v763_v2  ;;  %vm750_vm14 = vcmp.gt.f32.partialorder %v734_v3, 0.0 }
 0x205   :  { %v691_v29 = vpop.permute.xlu0 %690  ;;  %v2671_v31 = vsel %vm2606_vm9, %v779_v27, -1e+30  ;;  %vm2712_vm0 = vcmp.ne.s32.totalorder %v886_v55, 0  ;;  %v888_v23 = vunpack.c.0.s8 %v872_v48  ;;  %v3280_v39 = vmov 0 }
 0x206   :  { %v765_v42 = vmul.f32 0.2, %v733_v62  ;;  %v736_v46 = vadd.f32 %v2565_v33, %v691_v29  ;;  %947 = vmax.xlane.f32.xlu0 %v2671_v31  ;;  %v782_v49 = vsel %vm750_vm14, %v734_v3, %v766_v25  ;;  %vm749_vm7 = vcmp.gt.f32.partialorder %v733_v62, 0.0 }
 0x207   :  { %v686_v52 = vpop.permute.xlu1 %685  ;;  %v2684_v40 = vsel %vm2613_vm10, %v782_v49, -1e+30  ;;  %v3279_v21 = vsel %vm2712_vm0, 4294967295, %v3278_v21  ;;  %v874_v25 = vsel %vm2689_vm6, 16843009, %v2202_v1 }
 0x208   :  { %v768_v43 = vmul.f32 0.2, %v736_v46  ;;  %v735_v53 = vadd.f32 %v2565_v33, %v686_v52  ;;  %953 = vmax.xlane.f32.xlu1 %v2684_v40  ;;  %v781_v54 = vsel %vm749_vm7, %v733_v62, %v765_v42  ;;  %vm752_vm14 = vcmp.gt.f32.partialorder %v736_v46, 0.0 }
 0x209   :  { %v701_v56 = vpop.permute.xlu0 %700  ;;  %v2697_v59 = vsel %vm2629_vm12, %v781_v54, -1e+30  ;;  %v887_v42 = vunpack.c.0.s8 %v871_v63 }
 0x20a   :  { %v767_v2 = vmul.f32 0.2, %v735_v53  ;;  %v738_v3 = vadd.f32 %v2565_v33, %v701_v56  ;;  %951 = vmax.xlane.f32.xlu0 %v2697_v59  ;;  %v784_v9 = vsel %vm752_vm14, %v736_v46, %v768_v43  ;;  %vm751_vm7 = vcmp.gt.f32.partialorder %v735_v53, 0.0 }
 0x20b   :  { %v696_v13 = vpop.permute.xlu1 %695  ;;  %v2710_v17 = vsel %vm2638_vm3, %v784_v9, -1e+30  ;;  %vm2725_vm14 = vcmp.ne.s32.totalorder %v885_v61, 0  ;;  %v873_v46 = vsel %vm2702_vm11, 16843009, %v2202_v1  ;;  %v3282_v43 = vmov 0 }
 0x20c   :  { %v770_v62 = vmul.f32 0.2, %v738_v3  ;;  %v737_v27 = vadd.f32 %v2565_v33, %v696_v13  ;;  %957 = vmax.xlane.f32.xlu1 %v2710_v17  ;;  %v783_v29 = vsel %vm751_vm7, %v735_v53, %v767_v2  ;;  %vm754_vm13 = vcmp.gt.f32.partialorder %v738_v3, 0.0 }
 0x20d   :  { %v711_v36 = vpop.permute.xlu0 %710  ;;  %v2723_v38 = vsel %vm2652_vm8, %v783_v29, -1e+30  ;;  %v3281_v39 = vsel %vm2725_vm14, 4294967295, %v3280_v39  ;;  %vm2738_vm7 = vcmp.ne.s32.totalorder %v888_v23, 0  ;;  %v890_v53 = vunpack.c.0.s8 %v874_v25 }
 0x20e   :  { %v769_v49 = vmul.f32 0.2, %v737_v27  ;;  %v740_v52 = vadd.f32 %v2565_v33, %v711_v36  ;;  %955 = vmax.xlane.f32.xlu0 %v2723_v38  ;;  %v786_v55 = vsel %vm754_vm13, %v738_v3, %v770_v62  ;;  %vm753_vm6 = vcmp.gt.f32.partialorder %v737_v27, 0.0 }
 0x20f   :  { %v706_v48 = vpop.permute.xlu1 %705  ;;  %v2736_v50 = vsel %vm2712_vm0, %v786_v55, -1e+30  ;;  %v3283_v43 = vsel %vm2738_vm7, 4294967295, %v3282_v43  ;;  %vm2748_vm13 = vcmp.ne.s32.totalorder %v887_v42, 0  ;;  %v889_v2 = vunpack.c.0.s8 %v873_v46 }
 0x210   :  { %v772_v54 = vmul.f32 0.2, %v740_v52  ;;  %v739_v1 = vadd.f32 %v2565_v33, %v706_v48  ;;  %961 = vmax.xlane.f32.xlu1 %v2736_v50  ;;  %v785_v56 = vsel %vm753_vm6, %v737_v27, %v769_v49  ;;  %vm756_vm11 = vcmp.gt.f32.partialorder %v740_v52, 0.0 }
 0x211   :  { %v721_v61 = vpop.permute.xlu0 %720  ;;  %v2746_v63 = vsel %vm2725_vm14, %v785_v56, -1e+30  ;;  %vm2758_vm6 = vcmp.ne.s32.totalorder %v890_v53, 0 }
 0x212   :  { %v771_v3 = vmul.f32 0.2, %v739_v1  ;;  %v742_v9 = vadd.f32 %v2565_v33, %v721_v61  ;;  %959 = vmax.xlane.f32.xlu0 %v2746_v63  ;;  %v788_v13 = vsel %vm756_vm11, %v740_v52, %v772_v54  ;;  %vm755_vm0 = vcmp.gt.f32.partialorder %v739_v1, 0.0 }
 0x213   :  { %v716_v23 = vpop.permute.xlu1 %715  ;;  %v2756_v25 = vsel %vm2738_vm7, %v788_v13, -1e+30  ;;  %vm2769_vm7 = vcmp.ne.s32.totalorder %v889_v2, 0 }
 0x214   :  { %v774_v27 = vmul.f32 0.2, %v742_v9  ;;  %v741_v29 = vadd.f32 %v2565_v33, %v716_v23  ;;  %965 = vmax.xlane.f32.xlu1 %v2756_v25  ;;  %v787_v36 = vsel %vm755_vm0, %v739_v1, %v771_v3  ;;  %vm758_vm14 = vcmp.gt.f32.partialorder %v742_v9, 0.0  ;;  %v2783_v3 = vld [vmem:[#allocation2] sm:$0xff] }
 0x215   :  { %v2766_v42 = vsel %vm2748_vm13, %v787_v36, -1e+30  ;;  %vm3290_vm0 = vcmask 7168  }
 0x216   :  { %v773_v46 = vmul.f32 0.2, %v741_v29  ;;  %963 = vmax.xlane.f32.xlu0 %v2766_v42  ;;  %v790_v49 = vsel %vm758_vm14, %v742_v9, %v774_v27  ;;  %vm757_vm11 = vcmp.gt.f32.partialorder %v741_v29, 0.0  ;;  %vm3291_vm14 = vmmov %vm3290_vm0 }
 0x217   :  { %v2775_v33 = vsel %vm2758_vm6, %v790_v49, -1e+30  ;;  %v2788_v49 = vld [vmem:[#allocation2 + $0x18] sm:$0xff] }
 0x218   :  { %969 = vmax.xlane.f32.xlu1 %v2775_v33  ;;  %v789_v55 = vsel %vm757_vm11, %v741_v29, %v773_v46  ;;  %vm3292_vm11 = vmmov %vm3290_vm0 }
 0x219   :  { %v2780_v48 = vsel %vm2769_vm7, %v789_v55, -1e+30  ;;  %v2790_v55 = vld [vmem:[#allocation2 + $0x8] sm:$0xff] }
 0x21a   :  { %967 = vmax.xlane.f32.xlu0 %v2780_v48 }
 0x24c   :  { %v1947_v53 = vpop.f32.mrb[0].mxu1 }
 0x24d   :  { %v485_v54 = vpop.f32.mrb[1].mxu1 }
 0x24e   :  { %v1948_v1 = vpop.f32.mrb[2].mxu1 }
 0x24f   :  { %v1397_v56 = vpack.c.bf16 %v1948_v1, %v1947_v53  ;;  %v488_v61 = vpop.f32.mrb[3].mxu1 }
 0x250   :  { %v1396_v2 = vpack.c.bf16 %v488_v61, %v485_v54 }
 0x252   :  { %1996 = vmatprep.subr.bf16.mxu1 %v1396_v2 }
 0x253   :  { %1997 = vmatpush3.bf16.msra.mxu1 %v1396_v2 }
 0x254   :  { %v1951_v9 = vpop.f32.mrb[4].mxu1  ;;  %1998 = vmatprep.subr.bf16.mxu1 %v1397_v56 }
 0x255   :  { %v501_v13 = vpop.f32.mrb[5].mxu1 }
 0x256   :  { %v1952_v27 = vpop.f32.mrb[6].mxu1 }
 0x257   :  { %v1399_v36 = vpack.c.bf16 %v1952_v27, %v1951_v9  ;;  %v504_v46 = vpop.f32.mrb[7].mxu1  ;;  %1999 = vmatpush3.bf16.msra.mxu1 %v1397_v56  ;;  %v2803_v9 = vld [vmem:[#allocation2 + $0x10] sm:$0xff] }
 0x258   :  { %v1398_v53 = vpack.c.bf16 %v504_v46, %v501_v13 }
 0x25a   :  { %2000 = vmatprep.subr.bf16.mxu1 %v1398_v53 }
 0x25b   :  { %2001 = vmatpush3.bf16.msra.mxu1 %v1398_v53  ;;  %v2815_v53 = vld [vmem:[#allocation2 + $0x28] sm:$0xff] }
 0x25c   :  { %2002 = vmatprep.subr.bf16.mxu1 %v1399_v36  ;;  %v1955_v27 = vpop.f32.mrb[8].mxu1 }
 0x25f   :  { %2003 = vmatpush3.bf16.msra.mxu1 %v1399_v36 }
 0x287   :  { %v940_v23 = vpop.xlane.xlu1 %939 }
 0x288   :  { %v2786_v29 = vmax.f32 %v2783_v3, %v940_v23 }
 0x28a   :  { %1533 = vst.msk [vmem:[#allocation2] sm:$0xff] %vm3290_vm0, %v2786_v29  ;;  %1037 = vperm.xlu0 %2061, %v2786_v29  }
 0x28b   :  { %v946_v1 = vpop.xlane.xlu1 %945  ;;  %v942_v61 = vpop.xlane.xlu0 %941 }
 0x28c   :  { %v2798_v2 = vmax.f32 %v2788_v49, %v946_v1  ;;  %v2801_v56 = vmax.f32 %v2790_v55, %v942_v61  ;;  %v517_v1 = vpop.f32.mrb[9].mxu1 }
 0x28d   :  { %v1956_v13 = vpop.f32.mrb[10].mxu1 }
 0x28e   :  { %1536 = vst.msk [vmem:[#allocation2 + $0x18] sm:$0xff] %vm3291_vm14, %v2798_v2  ;;  %1052 = vperm.xlu0 %2061, %v2798_v2   ;;  %1042 = vperm.xlu1 %2062, %v2801_v56   ;;  %v520_v23 = vpop.f32.mrb[11].mxu1  ;;  %v1401_v36 = vpack.c.bf16 %v1956_v13, %v1955_v27  ;;  %vm3293_vm14 = vmmov %vm3290_vm0 }
 0x28f   :  { %1534 = vst.msk [vmem:[#allocation2 + $0x8] sm:$0xff] %vm3292_vm11, %v2801_v56  ;;  %v944_v46 = vpop.xlane.xlu0 %943  ;;  %v1400_v30 = vpack.c.bf16 %v520_v23, %v517_v1  ;;  %vm3294_vm11 = vmmov %vm3290_vm0  ;;  %v1959_v27 = vpop.f32.mrb[12].mxu1 }
 0x290   :  { %v2818_v61 = vmax.f32 %v2803_v9, %v944_v46  ;;  %v533_v22 = vpop.f32.mrb[13].mxu1 }
 0x291   :  { %v950_v54 = vpop.xlane.xlu1 %949  ;;  %2004 = vmatprep.subr.bf16.mxu1 %v1400_v30 }
 0x292   :  { %1535 = vst.msk [vmem:[#allocation2 + $0x10] sm:$0xff] %vm3290_vm0, %v2818_v61  ;;  %v2827_v34 = vmax.f32 %v2815_v53, %v950_v54  ;;  %1047 = vperm.xlu1 %2062, %v2818_v61   ;;  %2005 = vmatpush3.bf16.msra.mxu1 %v1400_v30  ;;  %v3319_v0 = vsub.f32 %v2803_v9, %v2818_v61 }
 0x293   :  { %v948_v46 = vpop.xlane.xlu0 %947  ;;  %2006 = vmatprep.subr.bf16.mxu1 %v1401_v36 }
 0x294   :  { %1538 = vst.msk [vmem:[#allocation2 + $0x28] sm:$0xff] %vm3293_vm14, %v2827_v34  ;;  %v2837_v28 = vmax.f32 %v2820_v32, %v948_v46  ;;  %1062 = vperm.xlu0 %2061, %v2827_v34   ;;  %v2850_v46 = vld [vmem:[#allocation2 + $0x48] sm:$0xff]  ;;  %vm3296_vm14 = vmmov %vm3290_vm0  ;;  %v1007_v62 = vmul.f32 1.442695, %v3319_v0  ;;  %v1182_v0 = vld [vmem:[#allocation3 + $0x18] sm:$0xff] }
 0x295   :  { %v954_v54 = vpop.xlane.xlu1 %953  ;;  %3295 = vst [vmem:[#allocation26_spill] sm:$0xff] %v2850_v46 }
 0x296   :  { %1537 = vst.msk [vmem:[#allocation2 + $0x20] sm:$0xff] %vm3294_vm11, %v2837_v28  ;;  %v2847_v13 = vmax.f32 %v2830_v26, %v954_v54  ;;  %1057 = vperm.xlu1 %2062, %v2837_v28   ;;  %v1960_v54 = vpop.f32.mrb[14].mxu1  ;;  %2007 = vmatpush3.bf16.msra.mxu1 %v1401_v36  ;;  %vm3299_vm11 = vmmov %vm3290_vm0 }
 0x297   :  { %v952_v1 = vpop.xlane.xlu0 %951  ;;  %v536_v14 = vpop.f32.mrb[15].mxu1  ;;  %v1403_v6 = vpack.c.bf16 %v1960_v54, %v1959_v27 }
 0x298   :  { %1540 = vst.msk [vmem:[#allocation2 + $0x38] sm:$0xff] %vm3290_vm0, %v2847_v13  ;;  %v2857_v23 = vmax.f32 %v2840_v24, %v952_v1  ;;  %1072 = vperm.xlu0 %2061, %v2847_v13   ;;  %v1402_v10 = vpack.c.bf16 %v536_v14, %v533_v22 }
 0x299   :  { %v958_v20 = vpop.xlane.xlu1 %957 }
 0x29a   :  { %1539 = vst.msk [vmem:[#allocation2 + $0x30] sm:$0xff] %vm3296_vm14, %v2857_v23  ;;  %v2867_v30 = vmax.f32 %v2850_v46, %v958_v20  ;;  %1067 = vperm.xlu1 %2062, %v2857_v23   ;;  %v2880_v20 = vld [vmem:[#allocation2 + $0x50] sm:$0xff]  ;;  %2008 = vmatprep.subr.bf16.mxu1 %v1402_v10  ;;  %vm3303_vm14 = vmmov %vm3290_vm0 }
 0x29b   :  { %v956_v1 = vpop.xlane.xlu0 %955  ;;  %3300 = vst [vmem:[#allocation29_spill] sm:$0xff] %v2880_v20  ;;  %2009 = vmatpush3.bf16.msra.mxu1 %v1402_v10 }
 0x29c   :  { %3297 = vst [vmem:[#allocation27_spill] sm:$0xff] %v2867_v30  ;;  %1542 = vst.msk [vmem:[#allocation2 + $0x48] sm:$0xff] %vm3299_vm11, %v2867_v30  ;;  %v2877_v36 = vmax.f32 %v2860_v18, %v956_v1  ;;  %1082 = vperm.xlu0 %2061, %v2867_v30   ;;  %v2890_v1 = vld [vmem:[#allocation2 + $0x68] sm:$0xff]  ;;  %v2900_v30 = vld [vmem:[#allocation2 + $0x60] sm:$0xff]  ;;  %2010 = vmatprep.subr.bf16.mxu1 %v1403_v6 }
 0x29d   :  { %v962_v16 = vpop.xlane.xlu1 %961  ;;  %3302 = vst [vmem:[#allocation31_spill] sm:$0xff] %v2890_v1  ;;  %3305 = vst [vmem:[#allocation33_spill] sm:$0xff] %v2900_v30 }
 0x29e   :  { %1541 = vst.msk [vmem:[#allocation2 + $0x40] sm:$0xff] %vm3290_vm0, %v2877_v36  ;;  %v2887_v14 = vmax.f32 %v2870_v12, %v962_v16  ;;  %1077 = vperm.xlu1 %2062, %v2877_v36   ;;  %vm3306_vm11 = vmmov %vm3290_vm0 }
 0x29f   :  { %v960_v22 = vpop.xlane.xlu0 %959  ;;  %2011 = vmatpush3.bf16.msra.mxu1 %v1403_v6 }
 0x2a0   :  { %3301 = vst [vmem:[#allocation30_spill] sm:$0xff] %v2887_v14  ;;  %1544 = vst.msk [vmem:[#allocation2 + $0x58] sm:$0xff] %vm3303_vm14, %v2887_v14  ;;  %v2897_v4 = vmax.f32 %v2880_v20, %v960_v22  ;;  %1092 = vperm.xlu0 %2061, %v2887_v14   ;;  %v2910_v22 = vld [vmem:[#allocation2 + $0x78] sm:$0xff] }
 0x2a1   :  { %v966_v16 = vpop.xlane.xlu1 %965  ;;  %3308 = vst [vmem:[#allocation35_spill] sm:$0xff] %v2910_v22  ;;  %vm3311_vm14 = vmmov %vm3290_vm0 }
 0x2a2   :  { %3304 = vst [vmem:[#allocation32_spill] sm:$0xff] %v2897_v4  ;;  %1543 = vst.msk [vmem:[#allocation2 + $0x50] sm:$0xff] %vm3306_vm11, %v2897_v4  ;;  %v2907_v27 = vmax.f32 %v2890_v1, %v966_v16  ;;  %1087 = vperm.xlu1 %2062, %v2897_v4   ;;  %v2920_v16 = vld [vmem:[#allocation2 + $0x70] sm:$0xff] }
 0x2a3   :  { %v964_v54 = vpop.xlane.xlu0 %963  ;;  %3310 = vst [vmem:[#allocation37_spill] sm:$0xff] %v2920_v16  ;;  %vm3313_vm11 = vmmov %vm3290_vm0 }
 0x2a4   :  { %3307 = vst [vmem:[#allocation34_spill] sm:$0xff] %v2907_v27  ;;  %1546 = vst.msk [vmem:[#allocation2 + $0x68] sm:$0xff] %vm3290_vm0, %v2907_v27  ;;  %v2917_v10 = vmax.f32 %v2900_v30, %v964_v54  ;;  %1102 = vperm.xlu0 %2061, %v2907_v27  }
 0x2a5   :  { %v970_v14 = vpop.xlane.xlu1 %969 }
 0x2a6   :  { %3309 = vst [vmem:[#allocation36_spill] sm:$0xff] %v2917_v10  ;;  %1545 = vst.msk [vmem:[#allocation2 + $0x60] sm:$0xff] %vm3311_vm14, %v2917_v10  ;;  %v2927_v12 = vmax.f32 %v2910_v22, %v970_v14  ;;  %1097 = vperm.xlu1 %2062, %v2917_v10  }
 0x2a7   :  { %v968_v8 = vpop.xlane.xlu0 %967  ;;  %vm1808_vm14 = vmpackc.low %vm2579_vm1, %vm2575_vm15 }
 0x2a8   :  { %3312 = vst [vmem:[#allocation38_spill] sm:$0xff] %v2927_v12  ;;  %1548 = vst.msk [vmem:[#allocation2 + $0x78] sm:$0xff] %vm3313_vm11, %v2927_v12  ;;  %v2935_v27 = vmax.f32 %v2920_v16, %v968_v8  ;;  %1112 = vperm.xlu0 %2061, %v2927_v12  }
 0x2a9   :  { %vm1811_vm11 = vmpackc.low %vm2583_vm2, %vm2588_vm4 }
 0x2aa   :  { %3314 = vst [vmem:[#allocation39_spill] sm:$0xff] %v2935_v27  ;;  %1547 = vst.msk [vmem:[#allocation2 + $0x70] sm:$0xff] %vm3290_vm0, %v2935_v27  ;;  %1107 = vperm.xlu1 %2062, %v2935_v27  }
 0x309   :  { %v1038_v14 = vpop.permute.xlu0 %1037 }
 0x30a   :  { %v1115_v1 = vsub.f32 %v2602_v7, %v1038_v14 }
 0x30c   :  { %v1131_v54 = vmul.f32 1.442695, %v1115_v1 }
 0x30d   :  { %v1043_v22 = vpop.permute.xlu1 %1042  ;;  %v1053_v10 = vpop.permute.xlu0 %1052 }
 0x30e   :  { %2079 = vpow2.f32 %v1131_v54  ;;  %v1116_v8 = vsub.f32 %v2619_v41, %v1043_v22  ;;  %v1118_v30 = vsub.f32 %v2623_v35, %v1053_v10 }
 0x310   :  { %v1133_v12 = vmul.f32 1.442695, %v1116_v8  ;;  %v1137_v46 = vmul.f32 1.442695, %v1118_v30 }
 0x311   :  { %v1048_v4 = vpop.permute.xlu1 %1047 }
 0x312   :  { %2081 = vpow2.f32 %v1133_v12  ;;  %v1117_v6 = vsub.f32 %v2644_v60, %v1048_v4 }
 0x313   :  { %2083 = vpow2.f32 %v1137_v46  ;;  %v1063_v16 = vpop.permute.xlu0 %1062 }
 0x314   :  { %v1135_v27 = vmul.f32 1.442695, %v1117_v6  ;;  %v1120_v20 = vsub.f32 %v2658_v15, %v1063_v16 }
 0x315   :  { %v1058_v7 = vpop.permute.xlu1 %1057 }
 0x316   :  { %2085 = vpow2.f32 %v1135_v27  ;;  %v1141_v1 = vmul.f32 1.442695, %v1120_v20  ;;  %v1119_v54 = vsub.f32 %v2671_v31, %v1058_v7 }
 0x317   :  { %v1073_v14 = vpop.permute.xlu0 %1072 }
 0x318   :  { %v2080_v41 = vpop.eup %2079  ;;  %v1139_v22 = vmul.f32 1.442695, %v1119_v54  ;;  %v1122_v35 = vsub.f32 %v2684_v40, %v1073_v14  ;;  %2087 = vpow2.f32 %v1141_v1 }
 0x319   :  { %v1068_v30 = vpop.permute.xlu1 %1067  ;;  %v1163_v4 = vsel %vm2575_vm15, %v2080_v41, 0.0  ;;  %vm1814_vm15 = vmpackc.low %vm2596_vm5, %vm2606_vm9 }
 0x31a   :  { %2089 = vpow2.f32 %v1139_v22  ;;  %v1145_v12 = vmul.f32 1.442695, %v1122_v35  ;;  %v1121_v60 = vsub.f32 %v2697_v59, %v1068_v30  ;;  %1211 = vadd.xlane.f32.xlu1 %v1163_v4 }
 0x31b   :  { %v1083_v15 = vpop.permute.xlu0 %1082 }
 0x31c   :  { %v2082_v46 = vpop.eup %2081  ;;  %2091 = vpow2.f32 %v1145_v12  ;;  %v1143_v20 = vmul.f32 1.442695, %v1121_v60  ;;  %v1124_v31 = vsub.f32 %v2710_v17, %v1083_v15 }
 0x31d   :  { %v2084_v40 = vpop.eup %2083  ;;  %v1078_v10 = vpop.permute.xlu1 %1077  ;;  %v1809_v27 = vpack.c.bf16 %v2082_v46, %v2080_v41 }
 0x31e   :  { %2093 = vpow2.f32 %v1143_v20  ;;  %v1149_v16 = vmul.f32 1.442695, %v1124_v31  ;;  %v1123_v6 = vsub.f32 %v2723_v38, %v1078_v10  ;;  %v1166_v59 = vsel %vm2583_vm2, %v2084_v40, 0.0  ;;  %vm1820_vm2 = vmpackc.low %vm2638_vm3, %vm2652_vm8 }
 0x31f   :  { %1217 = vadd.xlane.f32.xlu1 %v1166_v59  ;;  %2012 = vmatprep.mubr.msk.bf16.mxu1 %vm1808_vm14, %v1809_v27  ;;  %v1093_v8 = vpop.permute.xlu0 %1092 }
 0x320   :  { %v2086_v7 = vpop.eup %2085  ;;  %v1147_v44 = vmul.f32 1.442695, %v1123_v6  ;;  %v1126_v17 = vsub.f32 %v2736_v50, %v1093_v8  ;;  %2095 = vpow2.f32 %v1149_v16  ;;  %v1164_v50 = vsel %vm2579_vm1, %v2082_v46, 0.0  ;;  %vm1817_vm1 = vmpackc.low %vm2613_vm10, %vm2629_vm12 }
 0x321   :  { %v1812_v1 = vpack.c.bf16 %v2084_v40, %v2086_v7  ;;  %v1088_v54 = vpop.permute.xlu1 %1087  ;;  %v1165_v38 = vsel %vm2588_vm4, %v2086_v7, 0.0  ;;  %vm3315_vm4 = vnez %v3279_v21 }
 0x322   :  { %2097 = vpow2.f32 %v1147_v44  ;;  %v1153_v14 = vmul.f32 1.442695, %v1126_v17  ;;  %v1125_v41 = vsub.f32 %v2746_v63, %v1088_v54  ;;  %1215 = vadd.xlane.f32.xlu0 %v1165_v38  ;;  %v2088_v22 = vpop.eup %2087 }
 0x323   :  { %2013 = vmatmul.mubr.msk.bf16.vlgmr.msra.gmra.mrb[16].mxu1 %vm1811_vm11, %v1812_v1  ;;  %v1103_v35 = vpop.permute.xlu0 %1102 }
 0x324   :  { %v2090_v30 = vpop.eup %2089  ;;  %2099 = vpow2.f32 %v1153_v14  ;;  %v1151_v47 = vmul.f32 1.442695, %v1125_v41  ;;  %v1128_v4 = vsub.f32 %v2756_v25, %v1103_v35 }
 0x325   :  { %v1098_v51 = vpop.permute.xlu1 %1097  ;;  %v1815_v12 = vpack.c.bf16 %v2088_v22, %v2090_v30  ;;  %v1167_v58 = vsel %vm2606_vm9, %v2090_v30, 0.0  ;;  %vm3317_vm9 = vnez %v3283_v43  ;;  %v3318_v30 = vsub.f32 %v2790_v55, %v2801_v56 }
 0x326   :  { %v2092_v63 = vpop.eup %2091  ;;  %2101 = vpow2.f32 %v1151_v47  ;;  %v1157_v60 = vmul.f32 1.442695, %v1128_v4  ;;  %v1127_v15 = vsub.f32 %v2766_v42, %v1098_v51  ;;  %1213 = vadd.xlane.f32.xlu0 %v1164_v50  ;;  %v3320_v4 = vsub.f32 %v2783_v3, %v2786_v29 }
 0x327   :  { %2016 = vmatprep.mubr.msk.bf16.mxu1 %vm1814_vm15, %v1815_v12  ;;  %v1113_v20 = vpop.permute.xlu0 %1112  ;;  %v1170_v25 = vsel %vm2613_vm10, %v2092_v63, 0.0  ;;  %v1005_v47 = vmul.f32 1.442695, %v3318_v30  ;;  %v3321_v43 = vsub.f32 %v2820_v32, %v2837_v28  ;;  %v3322_v55 = vsub.f32 %v2788_v49, %v2798_v2  ;;  %v3328_v12 = vld [vmem:[#allocation32_spill] sm:$0xff] }
 0x328   :  { %v2094_v31 = vpop.eup %2093  ;;  %v1155_v40 = vmul.f32 1.442695, %v1127_v15  ;;  %v1130_v10 = vsub.f32 %v2775_v33, %v1113_v20  ;;  %1225 = vadd.xlane.f32.xlu1 %v1170_v25  ;;  %2103 = vpow2.f32 %v1157_v60  ;;  %v1168_v33 = vsel %vm2596_vm5, %v2088_v22, 0.0  ;;  %v3330_v15 = vld [vmem:[#allocation26_spill] sm:$0xff] }
 0x329   :  { %v1108_v45 = vpop.permute.xlu1 %1107  ;;  %v1169_v42 = vsel %vm2629_vm12, %v2094_v31, 0.0  ;;  %v1818_v46 = vpack.c.bf16 %v2092_v63, %v2094_v31  ;;  %vm3316_vm5 = vnez %v3281_v39  ;;  %vm1826_vm12 = vmpackc.low %vm3317_vm9, %vm2748_vm13  ;;  %v1003_v51 = vmul.f32 1.442695, %v3320_v4  ;;  %v1181_v4 = vld [vmem:[#allocation3 + $0x10] sm:$0xff] }
 0x32a   :  { %2105 = vpow2.f32 %v1155_v40  ;;  %v1161_v27 = vmul.f32 1.442695, %v1130_v10  ;;  %v1129_v16 = vsub.f32 %v2780_v48, %v1108_v45  ;;  %1223 = vadd.xlane.f32.xlu0 %v1169_v42  ;;  %v2096_v6 = vpop.eup %2095  ;;  %vm1823_vm10 = vmpackc.low %vm3315_vm4, %vm3316_vm5  ;;  %v1011_v52 = vmul.f32 1.442695, %v3321_v43  ;;  %v3336_v45 = vld [vmem:[#allocation28_spill] sm:$0xff]  ;;  %v3337_v42 = vld [vmem:[#allocation30_spill] sm:$0xff] }
 0x32b   :  { %2017 = vmatmul.mubr.msk.bf16.gmra.mrb[20].mxu1 %vm1817_vm1, %v1818_v46  ;;  %v1172_v1 = vsel %vm2638_vm3, %v2096_v6, 0.0  ;;  %vm1829_vm3 = vmpackc.low %vm2758_vm6, %vm2769_vm7  ;;  %v1009_v56 = vmul.f32 1.442695, %v3322_v55  ;;  %v3323_v50 = vsub.f32 %v2840_v24, %v2857_v23  ;;  %v3324_v3 = vsub.f32 %v2815_v53, %v2827_v34  ;;  %v3327_v23 = vld [vmem:[#allocation29_spill] sm:$0xff] }
 0x32c   :  { %v2098_v59 = vpop.eup %2097  ;;  %2107 = vpow2.f32 %v1161_v27  ;;  %v1159_v37 = vmul.f32 1.442695, %v1129_v16  ;;  %1221 = vadd.xlane.f32.xlu1 %v1168_v33  ;;  %v3325_v28 = vsub.f32 %v2860_v18, %v2877_v36  ;;  %v3326_v24 = vsub.f32 %v2830_v26, %v2847_v13  ;;  %v3331_v18 = vld [vmem:[#allocation27_spill] sm:$0xff]  ;;  %v3333_v26 = vld [vmem:[#allocation33_spill] sm:$0xff]  ;;  %v3334_v13 = vld [vmem:[#allocation36_spill] sm:$0xff] }
 0x32d   :  { %v1821_v8 = vpack.c.bf16 %v2096_v6, %v2098_v59  ;;  %v1171_v21 = vsel %vm2652_vm8, %v2098_v59, 0.0  ;;  %v1015_v9 = vmul.f32 1.442695, %v3323_v50  ;;  %v1013_v29 = vmul.f32 1.442695, %v3324_v3  ;;  %v3339_v16 = vld [vmem:[#allocation37_spill] sm:$0xff]  ;;  %vm3348_vm8 = vmmov %vm3290_vm0 }
 0x32e   :  { %v2100_v48 = vpop.eup %2099  ;;  %2109 = vpow2.f32 %v1159_v37  ;;  %1219 = vadd.xlane.f32.xlu0 %v1167_v58  ;;  %v1019_v32 = vmul.f32 1.442695, %v3325_v28  ;;  %v1017_v2 = vmul.f32 1.442695, %v3326_v24  ;;  %v3329_v63 = vsub.f32 %v3327_v23, %v3328_v12  ;;  %v3340_v6 = vld [vmem:[#allocation39_spill] sm:$0xff]  ;;  %v1185_v28 = vld [vmem:[#allocation3 + $0x30] sm:$0xff] }
 0x32f   :  { %2020 = vmatprep.mubr.msk.bf16.mxu1 %vm1820_vm2, %v1821_v8  ;;  %v1174_v5 = vsel %vm3315_vm4, %v2100_v48, 0.0  ;;  %2111 = vpow2.f32 %v1005_v47  ;;  %v3332_v36 = vsub.f32 %v3330_v15, %v3331_v18  ;;  %v3335_v25 = vsub.f32 %v3333_v26, %v3334_v13  ;;  %v3342_v8 = vld [vmem:[#allocation31_spill] sm:$0xff]  ;;  %v1183_v15 = vld [vmem:[#allocation3 + $0x20] sm:$0xff]  ;;  %v1190_v26 = vld [vmem:[#allocation3 + $0x58] sm:$0xff] }
 0x330   :  { %v2102_v7 = vpop.eup %2101  ;;  %1233 = vadd.xlane.f32.xlu1 %v1174_v5  ;;  %2113 = vpow2.f32 %v1007_v62  ;;  %v1023_v34 = vmul.f32 1.442695, %v3329_v63  ;;  %v3338_v46 = vsub.f32 %v3336_v45, %v3337_v42  ;;  %v3341_v33 = vsub.f32 %v3339_v16, %v3340_v6  ;;  %v1184_v23 = vld [vmem:[#allocation3 + $0x28] sm:$0xff] }
 0x331   :  { %v1173_v44 = vsel %vm3316_vm5, %v2102_v7, 0.0  ;;  %v1824_v19 = vpack.c.bf16 %v2100_v48, %v2102_v7  ;;  %2115 = vpow2.f32 %v1003_v51  ;;  %v1021_v20 = vmul.f32 1.442695, %v3332_v36  ;;  %v3343_v48 = vld [vmem:[#allocation34_spill] sm:$0xff] }
 0x332   :  { %1231 = vadd.xlane.f32.xlu0 %v1173_v44  ;;  %v2104_v17 = vpop.eup %2103  ;;  %2117 = vpow2.f32 %v1011_v52  ;;  %v1027_v31 = vmul.f32 1.442695, %v3335_v25  ;;  %v1025_v27 = vmul.f32 1.442695, %v3338_v46  ;;  %v1031_v59 = vmul.f32 1.442695, %v3341_v33 }
 0x333   :  { %2021 = vmatmul.mubr.msk.bf16.gmra.mrb[24].mxu1 %vm1823_vm10, %v1824_v19  ;;  %v1176_v11 = vsel %vm3317_vm9, %v2104_v17, 0.0  ;;  %2119 = vpow2.f32 %v1009_v56  ;;  %v3344_v5 = vsub.f32 %v3342_v8, %v3343_v48  ;;  %v1180_v56 = vld [vmem:[#allocation3 + $0x8] sm:$0xff] }
 0x334   :  { %v2106_v54 = vpop.eup %2105  ;;  %1229 = vadd.xlane.f32.xlu1 %v1172_v1  ;;  %2121 = vpow2.f32 %v1015_v9  ;;  %v3346_v1 = vld [vmem:[#allocation38_spill] sm:$0xff]  ;;  %v1186_v9 = vld [vmem:[#allocation3 + $0x38] sm:$0xff]  ;;  %v1188_v33 = vld [vmem:[#allocation3 + $0x48] sm:$0xff] }
 0x335   :  { %v1827_v38 = vpack.c.bf16 %v2104_v17, %v2106_v54  ;;  %v1175_v57 = vsel %vm2748_vm13, %v2106_v54, 0.0  ;;  %2123 = vpow2.f32 %v1013_v29  ;;  %v1029_v7 = vmul.f32 1.442695, %v3344_v5  ;;  %v3345_v17 = vld [vmem:[#allocation35_spill] sm:$0xff]  ;;  %vm3350_vm13 = vmmov %vm3290_vm0  ;;  %v1187_v5 = vld [vmem:[#allocation3 + $0x40] sm:$0xff] }
 0x336   :  { %v2108_v39 = vpop.eup %2107  ;;  %1227 = vadd.xlane.f32.xlu0 %v1171_v21  ;;  %2125 = vpow2.f32 %v1019_v32  ;;  %v3347_v54 = vsub.f32 %v3345_v17, %v3346_v1 }
 0x337   :  { %2024 = vmatprep.mubr.msk.bf16.mxu1 %vm1826_vm12, %v1827_v38  ;;  %v1178_v14 = vsel %vm2758_vm6, %v2108_v39, 0.0  ;;  %2127 = vpow2.f32 %v1017_v2  ;;  %vm3351_vm6 = vmmov %vm3290_vm0 }
 0x338   :  { %v2110_v41 = vpop.eup %2109  ;;  %1241 = vadd.xlane.f32.xlu1 %v1178_v14  ;;  %2129 = vpow2.f32 %v1023_v34  ;;  %v1033_v21 = vmul.f32 1.442695, %v3347_v54  ;;  %vm3352_vm14 = vmmov %vm3351_vm6 }
 0x339   :  { %v1830_v22 = vpack.c.bf16 %v2108_v39, %v2110_v41  ;;  %v1177_v35 = vsel %vm2769_vm7, %v2110_v41, 0.0  ;;  %v3041_v61 = vpop.eup %2111  ;;  %2131 = vpow2.f32 %v1021_v20  ;;  %vm3349_vm7 = vmmov %vm3290_vm0 }
 0x33a   :  { %1235 = vadd.xlane.f32.xlu0 %v1175_v57  ;;  %v2114_v49 = vpop.eup %2113  ;;  %2133 = vpow2.f32 %v1027_v31  ;;  %v1196_v3 = vmul.f32 %v3041_v61, %v1180_v56  ;;  %vm3353_vm15 = vmmov %vm3351_vm6 }
 0x33b   :  { %2025 = vmatmul.mubr.msk.bf16.gmra.mrb[28].mxu1 %vm1829_vm3, %v1830_v22  ;;  %v2116_v53 = vpop.eup %2115  ;;  %2135 = vpow2.f32 %v1025_v27  ;;  %v1197_v52 = vmul.f32 %v2114_v49, %v1181_v4  ;;  %vm3354_vm2 = vmmov %vm3351_vm6 }
 0x33c   :  { %1237 = vadd.xlane.f32.xlu1 %v1176_v11  ;;  %v3056_v60 = vpop.eup %2117  ;;  %2137 = vpow2.f32 %v1031_v59  ;;  %v1179_v11 = vld [vmem:[#allocation3] sm:$0xff]  ;;  %vm3355_vm5 = vmmov %vm3354_vm2 }
 0x33d   :  { %v2120_v40 = vpop.eup %2119  ;;  %2139 = vpow2.f32 %v1029_v7  ;;  %v1199_v31 = vmul.f32 %v3056_v60, %v1183_v15  ;;  %vm3356_vm9 = vmmov %vm3354_vm2 }
 0x33e   :  { %1239 = vadd.xlane.f32.xlu0 %v1177_v35  ;;  %v2122_v10 = vpop.eup %2121  ;;  %2141 = vpow2.f32 %v1033_v21  ;;  %v1195_v35 = vmul.f32 %v2116_v53, %v1179_v11  ;;  %v1198_v62 = vmul.f32 %v2120_v40, %v1182_v0  ;;  %v1194_v21 = vld [vmem:[#allocation3 + $0x78] sm:$0xff]  ;;  %vm3357_vm3 = vmmov %vm3354_vm2  ;;  %v1191_v0 = vld [vmem:[#allocation3 + $0x60] sm:$0xff] }
 0x33f   :  { %v2124_v37 = vpop.eup %2123  ;;  %v1201_v63 = vmul.f32 %v2122_v10, %v1185_v28 }
 0x340   :  { %v3071_v58 = vpop.eup %2125  ;;  %v1200_v36 = vmul.f32 %v2124_v37, %v1184_v23 }
 0x341   :  { %v2128_v44 = vpop.eup %2127 }
 0x342   :  { %v3077_v19 = vpop.eup %2129  ;;  %v1202_v24 = vmul.f32 %v2128_v44, %v1186_v9 }
 0x343   :  { %v3083_v38 = vpop.eup %2131 }
 0x344   :  { %v3085_v39 = vpop.eup %2133 }
 0x345   :  { %v2136_v14 = vpop.eup %2135  ;;  %v1207_v56 = vmul.f32 %v3085_v39, %v1191_v0 }
 0x346   :  { %v3089_v41 = vpop.eup %2137  ;;  %v1206_v27 = vmul.f32 %v2136_v14, %v1190_v26 }
 0x347   :  { %v3092_v57 = vpop.eup %2139 }
 0x348   :  { %v3095_v22 = vpop.eup %2141 }
 0x34d   :  { %1299 = vperm.xlu1 %2062, %v3041_v61  }
 0x351   :  { %1304 = vperm.xlu1 %2062, %v2114_v49  }
 0x354   :  { %1294 = vperm.xlu0 %2061, %v2116_v53  }
 0x355   :  { %1314 = vperm.xlu1 %2062, %v3056_v60  }
 0x358   :  { %1309 = vperm.xlu0 %2061, %v2120_v40  }
 0x359   :  { %1324 = vperm.xlu1 %2062, %v2122_v10   ;;  %v1189_v10 = vld [vmem:[#allocation3 + $0x50] sm:$0xff] }
 0x35c   :  { %1319 = vperm.xlu0 %2061, %v2124_v37   ;;  %v1205_v37 = vmul.f32 %v3077_v19, %v1189_v10 }
 0x35d   :  { %1334 = vperm.xlu1 %2062, %v3071_v58  }
 0x360   :  { %1329 = vperm.xlu0 %2061, %v2128_v44   ;;  %v1204_v44 = vmul.f32 %v3083_v38, %v1188_v33 }
 0x361   :  { %1344 = vperm.xlu1 %2062, %v3077_v19  }
 0x364   :  { %1339 = vperm.xlu0 %2061, %v3083_v38  }
 0x365   :  { %1354 = vperm.xlu1 %2062, %v3085_v39  }
 0x368   :  { %1349 = vperm.xlu0 %2061, %v2136_v14   ;;  %v1203_v14 = vmul.f32 %v3071_v58, %v1187_v5 }
 0x369   :  { %1364 = vperm.xlu1 %2062, %v3089_v41  }
 0x36c   :  { %1359 = vperm.xlu0 %2061, %v3092_v57  }
 0x370   :  { %1369 = vperm.xlu0 %2061, %v3095_v22  }
 0x3a7   :  { %v1212_v30 = vpop.xlane.xlu1 %1211 }
 0x3a8   :  { %v1243_v47 = vadd.f32 %v1212_v30, %v1195_v35 }
 0x3aa   :  { %1260 = vst.msk [vmem:[#allocation3] sm:$0xff] %vm3348_vm8, %v1243_v47 }
 0x3ac   :  { %v1218_v51 = vpop.xlane.xlu1 %1217 }
 0x3ad   :  { %v1246_v43 = vadd.f32 %v1218_v51, %v1198_v62  ;;  %v1210_v62 = vmul.f32 %v3095_v22, %v1194_v21 }
 0x3af   :  { %1263 = vst.msk [vmem:[#allocation3 + $0x18] sm:$0xff] %vm3349_vm7, %v1246_v43  ;;  %v1216_v55 = vpop.xlane.xlu0 %1215  ;;  %vm3358_vm7 = vmmov %vm3354_vm2 }
 0x3b0   :  { %v1245_v50 = vadd.f32 %v1216_v55, %v1197_v52  ;;  %v1192_v52 = vld [vmem:[#allocation3 + $0x68] sm:$0xff] }
 0x3b1   :  { %v1552_v12 = vld [vmem:[#allocation3] sm:$0xff]  ;;  %v1208_v28 = vmul.f32 %v3092_v57, %v1192_v52 }
 0x3b2   :  { %1262 = vst.msk [vmem:[#allocation3 + $0x10] sm:$0xff] %vm3350_vm13, %v1245_v50  ;;  %vm1568_vm11 = vcmp.gt.f32.partialorder %v1552_v12, 0.0 }
 0x3b3   :  { %v1214_v29 = vpop.xlane.xlu0 %1213  ;;  %v1584_v42 = vsel %vm1568_vm11, %v1552_v12, 1.0 }
 0x3b4   :  { %v1244_v32 = vadd.f32 %v1214_v29, %v1196_v3  ;;  %v1193_v29 = vld [vmem:[#allocation3 + $0x70] sm:$0xff] }
 0x3b5   :  { %v1226_v2 = vpop.xlane.xlu1 %1225 }
 0x3b6   :  { %1261 = vst.msk [vmem:[#allocation3 + $0x8] sm:$0xff] %vm3351_vm6, %v1244_v32  ;;  %v1250_v49 = vadd.f32 %v1226_v2, %v1202_v24  ;;  %v1555_v34 = vld [vmem:[#allocation3 + $0x18] sm:$0xff]  ;;  %vm3359_vm6 = vmmov %vm3354_vm2 }
 0x3b7   :  { %v1224_v53 = vpop.xlane.xlu0 %1223  ;;  %vm1571_vm0 = vcmp.gt.f32.partialorder %v1555_v34, 0.0 }
 0x3b8   :  { %1267 = vst.msk [vmem:[#allocation3 + $0x38] sm:$0xff] %vm3352_vm14, %v1250_v49  ;;  %v1249_v18 = vadd.f32 %v1224_v53, %v1201_v63  ;;  %v1587_v61 = vsel %vm1571_vm0, %v1555_v34, 1.0  ;;  %vm3360_vm14 = vmmov %vm3354_vm2  ;;  %v1209_v49 = vmul.f32 %v3089_v41, %v1193_v29 }
 0x3b9   :  { %v1222_v20 = vpop.xlane.xlu1 %1221  ;;  %2143 = vrcp.f32 %v1587_v61  ;;  %v1554_v13 = vld [vmem:[#allocation3 + $0x10] sm:$0xff] }
 0x3ba   :  { %1266 = vst.msk [vmem:[#allocation3 + $0x30] sm:$0xff] %vm3353_vm15, %v1249_v18  ;;  %v1248_v25 = vadd.f32 %v1222_v20, %v1200_v36  ;;  %vm1570_vm1 = vcmp.gt.f32.partialorder %v1554_v13, 0.0  ;;  %vm3361_vm15 = vmmov %vm3354_vm2 }
 0x3bb   :  { %v1220_v40 = vpop.xlane.xlu0 %1219  ;;  %v1586_v45 = vsel %vm1570_vm1, %v1554_v13, 1.0 }
 0x3bc   :  { %1265 = vst.msk [vmem:[#allocation3 + $0x28] sm:$0xff] %vm3354_vm2, %v1248_v25  ;;  %v1247_v46 = vadd.f32 %v1220_v40, %v1199_v31  ;;  %2145 = vrcp.f32 %v1586_v45 }
 0x3bd   :  { %v1553_v16 = vld [vmem:[#allocation3 + $0x8] sm:$0xff]  ;;  %v1234_v6 = vpop.xlane.xlu1 %1233  ;;  %2147 = vrcp.f32 %v1584_v42 }
 0x3be   :  { %vm1569_vm4 = vcmp.gt.f32.partialorder %v1553_v16, 0.0  ;;  %1264 = vst.msk [vmem:[#allocation3 + $0x20] sm:$0xff] %vm3355_vm5, %v1247_v46  ;;  %v1254_v59 = vadd.f32 %v1234_v6, %v1206_v27  ;;  %vm3362_vm5 = vmmov %vm3354_vm2 }
 0x3bf   :  { %v1585_v60 = vsel %vm1569_vm4, %v1553_v16, 1.0  ;;  %v1559_v8 = vld [vmem:[#allocation3 + $0x38] sm:$0xff]  ;;  %v1232_v48 = vpop.xlane.xlu0 %1231 }
 0x3c0   :  { %2149 = vrcp.f32 %v1585_v60  ;;  %vm1575_vm10 = vcmp.gt.f32.partialorder %v1559_v8, 0.0  ;;  %1271 = vst.msk [vmem:[#allocation3 + $0x58] sm:$0xff] %vm3356_vm9, %v1254_v59  ;;  %v1253_v7 = vadd.f32 %v1232_v48, %v1205_v37 }
 0x3c1   :  { %v1591_v17 = vsel %vm1575_vm10, %v1559_v8, 1.0  ;;  %v1558_v1 = vld [vmem:[#allocation3 + $0x30] sm:$0xff]  ;;  %v1230_v54 = vpop.xlane.xlu1 %1229 }
 0x3c2   :  { %vm1574_vm12 = vcmp.gt.f32.partialorder %v1558_v1, 0.0  ;;  %1270 = vst.msk [vmem:[#allocation3 + $0x50] sm:$0xff] %vm3357_vm3, %v1253_v7  ;;  %v1252_v19 = vadd.f32 %v1230_v54, %v1204_v44  ;;  %2151 = vrcp.f32 %v1591_v17 }
 0x3c3   :  { %v2144_v11 = vpop.eup %2143  ;;  %v1590_v35 = vsel %vm1574_vm12, %v1558_v1, 1.0  ;;  %v1557_v30 = vld [vmem:[#allocation3 + $0x28] sm:$0xff]  ;;  %v1228_v47 = vpop.xlane.xlu0 %1227 }
 0x3c4   :  { %2153 = vrcp.f32 %v1590_v35  ;;  %vm1573_vm8 = vcmp.gt.f32.partialorder %v1557_v30, 0.0  ;;  %1269 = vst.msk [vmem:[#allocation3 + $0x48] sm:$0xff] %vm3358_vm7, %v1252_v19  ;;  %1649 = vperm.xlu0 %2061, %v2144_v11   ;;  %v1251_v38 = vadd.f32 %v1228_v47, %v1203_v14 }
 0x3c5   :  { %v1589_v4 = vsel %vm1573_vm8, %v1557_v30, 1.0  ;;  %v1556_v51 = vld [vmem:[#allocation3 + $0x20] sm:$0xff]  ;;  %v1242_v43 = vpop.xlane.xlu1 %1241 }
 0x3c6   :  { %v2146_v55 = vpop.eup %2145  ;;  %vm1572_vm13 = vcmp.gt.f32.partialorder %v1556_v51, 0.0  ;;  %1268 = vst.msk [vmem:[#allocation3 + $0x40] sm:$0xff] %vm3359_vm6, %v1251_v38  ;;  %v1258_v58 = vadd.f32 %v1242_v43, %v1210_v62  ;;  %2155 = vrcp.f32 %v1589_v4 }
 0x3c7   :  { %v1588_v50 = vsel %vm1572_vm13, %v1556_v51, 1.0  ;;  %v1563_v9 = vld [vmem:[#allocation3 + $0x58] sm:$0xff]  ;;  %1644 = vperm.xlu1 %2062, %v2146_v55   ;;  %v1236_v3 = vpop.xlane.xlu0 %1235  ;;  %v2148_v32 = vpop.eup %2147 }
 0x3c8   :  { %2157 = vrcp.f32 %v1588_v50  ;;  %vm1579_vm0 = vcmp.gt.f32.partialorder %v1563_v9, 0.0  ;;  %1275 = vst.msk [vmem:[#allocation3 + $0x78] sm:$0xff] %vm3360_vm14, %v1258_v58  ;;  %v1255_v22 = vadd.f32 %v1236_v3, %v1207_v56 }
 0x3c9   :  { %v1595_v24 = vsel %vm1579_vm0, %v1563_v9, 1.0  ;;  %v1562_v2 = vld [vmem:[#allocation3 + $0x50] sm:$0xff]  ;;  %v1238_v23 = vpop.xlane.xlu1 %1237 }
 0x3ca   :  { %v2150_v12 = vpop.eup %2149  ;;  %vm1578_vm11 = vcmp.gt.f32.partialorder %v1562_v2, 0.0  ;;  %1272 = vst.msk [vmem:[#allocation3 + $0x60] sm:$0xff] %vm3361_vm15, %v1255_v22  ;;  %v1256_v39 = vadd.f32 %v1238_v23, %v1208_v28  ;;  %2159 = vrcp.f32 %v1595_v24 }
 0x3cb   :  { %v1594_v63 = vsel %vm1578_vm11, %v1562_v2, 1.0  ;;  %v1561_v34 = vld [vmem:[#allocation3 + $0x48] sm:$0xff]  ;;  %1634 = vperm.xlu1 %2062, %v2148_v32   ;;  %1639 = vperm.xlu0 %2061, %v2150_v12   ;;  %v1240_v53 = vpop.xlane.xlu0 %1239 }
 0x3cc   :  { %2161 = vrcp.f32 %v1594_v63  ;;  %vm1577_vm1 = vcmp.gt.f32.partialorder %v1561_v34, 0.0  ;;  %1273 = vst.msk [vmem:[#allocation3 + $0x68] sm:$0xff] %vm3354_vm2, %v1256_v39  ;;  %v1257_v57 = vadd.f32 %v1240_v53, %v1209_v49  ;;  %v2152_v15 = vpop.eup %2151 }
 0x3cd   :  { %v1593_v18 = vsel %vm1577_vm1, %v1561_v34, 1.0  ;;  %v1560_v36 = vld [vmem:[#allocation3 + $0x40] sm:$0xff]  ;;  %v1300_v4 = vpop.permute.xlu1 %1299  ;;  %v3363_v34 = vld [vmem:[#allocation12_spill] sm:$0xff] }
 0x3ce   :  { %v2154_v61 = vpop.eup %2153  ;;  %vm1576_vm4 = vcmp.gt.f32.partialorder %v1560_v36, 0.0  ;;  %1274 = vst.msk [vmem:[#allocation3 + $0x70] sm:$0xff] %vm3362_vm5, %v1257_v57  ;;  %2163 = vrcp.f32 %v1593_v18 }
 0x3cf   :  { %v1592_v41 = vsel %vm1576_vm4, %v1560_v36, 1.0  ;;  %1669 = vperm.xlu0 %2061, %v2152_v15   ;;  %1664 = vperm.xlu1 %2062, %v2154_v61   ;;  %v1567_v26 = vld [vmem:[#allocation3 + $0x78] sm:$0xff]  ;;  %v1373_v15 = vmul.f32 0.0, %v1300_v4 }
 0x3d0   :  { %2165 = vrcp.f32 %v1592_v41  ;;  %v2156_v20 = vpop.eup %2155  ;;  %vm1583_vm9 = vcmp.gt.f32.partialorder %v1567_v26, 0.0 }
 0x3d1   :  { %v1564_v13 = vld [vmem:[#allocation3 + $0x60] sm:$0xff]  ;;  %v1599_v27 = vsel %vm1583_vm9, %v1567_v26, 1.0  ;;  %v1305_v43 = vpop.permute.xlu1 %1304 }
 0x3d2   :  { %v2158_v25 = vpop.eup %2157  ;;  %vm1580_vm10 = vcmp.gt.f32.partialorder %v1564_v13, 0.0  ;;  %v1374_v12 = vmul.f32 0.0, %v1305_v43 }
 0x3d3   :  { %v1596_v31 = vsel %vm1580_vm10, %v1564_v13, 1.0  ;;  %v1565_v40 = vld [vmem:[#allocation3 + $0x68] sm:$0xff]  ;;  %1659 = vperm.xlu0 %2061, %v2156_v20   ;;  %1654 = vperm.xlu1 %2062, %v2158_v25   ;;  %v1295_v62 = vpop.permute.xlu0 %1294  ;;  %v3364_v20 = vld [vmem:[#allocation10_spill] sm:$0xff] }
 0x3d4   :  { %2167 = vrcp.f32 %v1596_v31  ;;  %vm1581_vm12 = vcmp.gt.f32.partialorder %v1565_v40, 0.0  ;;  %v2160_v10 = vpop.eup %2159  ;;  %v1372_v18 = vmul.f32 0.0, %v1295_v62  ;;  %v3367_v62 = vld [vmem:[#allocation14_spill] sm:$0xff] }
 0x3d5   :  { %v1597_v45 = vsel %vm1581_vm12, %v1565_v40, 1.0  ;;  %v1566_v42 = vld [vmem:[#allocation3 + $0x70] sm:$0xff]  ;;  %v1315_v55 = vpop.permute.xlu1 %1314 }
 0x3d6   :  { %v2162_v46 = vpop.eup %2161  ;;  %2169 = vrcp.f32 %v1597_v45  ;;  %vm1582_vm3 = vcmp.gt.f32.partialorder %v1566_v42, 0.0 }
 0x3d7   :  { %v1598_v16 = vsel %vm1582_vm3, %v1566_v42, 1.0  ;;  %1689 = vperm.xlu0 %2061, %v2160_v10   ;;  %1684 = vperm.xlu1 %2062, %v2162_v46   ;;  %v1310_v51 = vpop.permute.xlu0 %1309 }
 0x3d8   :  { %2171 = vrcp.f32 %v1598_v16  ;;  %v2164_v6 = vpop.eup %2163  ;;  %v1375_v24 = vmul.f32 0.0, %v1310_v51  ;;  %v3368_v51 = vld [vmem:[#allocation16_spill] sm:$0xff] }
 0x3d9   :  { %2173 = vrcp.f32 %v1599_v27  ;;  %v1325_v56 = vpop.permute.xlu1 %1324  ;;  %v3365_v27 = vld [vmem:[#allocation11_spill] sm:$0xff] }
 0x3da   :  { %v2166_v33 = vpop.eup %2165  ;;  %v1378_v31 = vmul.f32 0.0, %v1325_v56 }
 0x3db   :  { %1679 = vperm.xlu0 %2061, %v2164_v6   ;;  %1674 = vperm.xlu1 %2062, %v2166_v33   ;;  %v1320_v52 = vpop.permute.xlu0 %1319  ;;  %v3366_v6 = vld [vmem:[#allocation13_spill] sm:$0xff] }
 0x3dd   :  { %v1335_v9 = vpop.permute.xlu1 %1334 }
 0x3de   :  { %v2168_v59 = vpop.eup %2167 }
 0x3df   :  { %1694 = vperm.xlu1 %2062, %v2168_v59   ;;  %v1330_v58 = vpop.permute.xlu0 %1329 }
 0x3e0   :  { %v2170_v37 = vpop.eup %2169  ;;  %v1379_v40 = vmul.f32 0.0, %v1330_v58 }
 0x3e1   :  { %1699 = vperm.xlu0 %2061, %v2170_v37   ;;  %v1345_v29 = vpop.permute.xlu1 %1344 }
 0x3e2   :  { %v2172_v60 = vpop.eup %2171  ;;  %v1382_v58 = vmul.f32 0.0, %v1345_v29 }
 0x3e3   :  { %1704 = vperm.xlu1 %2062, %v2172_v60   ;;  %v2174_v8 = vpop.eup %2173  ;;  %v1340_v50 = vpop.permute.xlu0 %1339  ;;  %v1376_v60 = vmul.f32 0.0, %v1315_v55 }
 0x3e5   :  { %1709 = vperm.xlu0 %2061, %v2174_v8   ;;  %v3141_v28 = vpop.permute.xlu1 %1354  ;;  %v1377_v8 = vmul.f32 0.0, %v1320_v52 }
 0x3e7   :  { %v1350_v3 = vpop.permute.xlu0 %1349 }
 0x3e8   :  { %v1383_v56 = vmul.f32 0.0, %v1350_v3 }
 0x3e9   :  { %v3145_v2 = vpop.permute.xlu1 %1364 }
 0x3eb   :  { %v3139_v22 = vpop.permute.xlu0 %1359 }
 0x3ef   :  { %v3143_v32 = vpop.permute.xlu0 %1369 }
 0x3f6   :  { %v2014_v48 = vpop.f32.mrb[16].mxu1 }
 0x3f7   :  { %v1438_v5 = vpop.f32.mrb[17].mxu1  ;;  %v1503_v63 = vadd.f32 %v2014_v48, %v1374_v12  ;;  %v3369_v12 = vld [vmem:[#allocation15_spill] sm:$0xff] }
 0x3f8   :  { %v2015_v7 = vpop.f32.mrb[18].mxu1  ;;  %v1501_v61 = vadd.f32 %v1438_v5, %v1372_v18  ;;  %v3371_v18 = vld [vmem:[#allocation18_spill] sm:$0xff] }
 0x3f9   :  { %v1441_v44 = vpop.f32.mrb[19].mxu1  ;;  %v1504_v23 = vadd.f32 %v2015_v7, %v1375_v24 }
 0x3fa   :  { %v1502_v41 = vadd.f32 %v1441_v44, %v1373_v15 }
 0x3fe   :  { %v2018_v17 = vpop.f32.mrb[20].mxu1 }
 0x3ff   :  { %v1454_v1 = vpop.f32.mrb[21].mxu1  ;;  %v1507_v42 = vadd.f32 %v2018_v17, %v1378_v31  ;;  %v3374_v31 = vld [vmem:[#allocation21_spill] sm:$0xff] }
 0x400   :  { %v2019_v54 = vpop.f32.mrb[22].mxu1  ;;  %v1505_v7 = vadd.f32 %v1454_v1, %v1376_v60  ;;  %v3370_v1 = vld [vmem:[#allocation17_spill] sm:$0xff] }
 0x401   :  { %v1457_v21 = vpop.f32.mrb[23].mxu1  ;;  %v1508_v46 = vadd.f32 %v2019_v54, %v1379_v40 }
 0x402   :  { %v1506_v44 = vadd.f32 %v1457_v21, %v1377_v8 }
 0x406   :  { %v3123_v19 = vpop.f32.mrb[24].mxu1 }
 0x407   :  { %v3125_v14 = vpop.f32.mrb[25].mxu1  ;;  %v1511_v52 = vadd.f32 %v3123_v19, %v1382_v58 }
 0x408   :  { %v3127_v11 = vpop.f32.mrb[26].mxu1 }
 0x409   :  { %v3129_v35 = vpop.f32.mrb[27].mxu1  ;;  %v1512_v55 = vadd.f32 %v3127_v11, %v1383_v56 }
 0x40e   :  { %v3131_v30 = vpop.f32.mrb[28].mxu1 }
 0x40f   :  { %v3133_v47 = vpop.f32.mrb[29].mxu1 }
 0x410   :  { %v3135_v0 = vpop.f32.mrb[30].mxu1 }
 0x411   :  { %v3137_v38 = vpop.f32.mrb[31].mxu1 }
 0x443   :  { %v1650_v39 = vpop.permute.xlu0 %1649 }
 0x444   :  { %v1715_v49 = vmul.f32 %v1650_v39, %v1504_v23 }
 0x446   :  { %v1747_v53 = vadd.f32 %v1715_v49, %v3363_v34  ;;  %v1645_v57 = vpop.permute.xlu1 %1644  ;;  %v1380_v34 = vmul.f32 0.0, %v1335_v9 }
 0x447   :  { %v1714_v36 = vmul.f32 %v1645_v57, %v1503_v63 }
 0x448   :  { %1763 = vst [vmem:[#allocation7 + $0x18] sm:$0xff] %v1747_v53  ;;  %v1381_v53 = vmul.f32 0.0, %v1340_v50  ;;  %v1509_v57 = vadd.f32 %v3125_v14, %v1380_v34 }
 0x449   :  { %v1746_v26 = vadd.f32 %v1714_v36, %v3364_v20  ;;  %v3372_v36 = vld [vmem:[#allocation20_spill] sm:$0xff]  ;;  %v1384_v20 = vmul.f32 0.0, %v3141_v28 }
 0x44a   :  { %v1635_v13 = vpop.permute.xlu1 %1634  ;;  %v1640_v25 = vpop.permute.xlu0 %1639  ;;  %v1510_v15 = vadd.f32 %v3129_v35, %v1381_v53 }
 0x44b   :  { %1762 = vst [vmem:[#allocation7 + $0x10] sm:$0xff] %v1746_v26  ;;  %v1712_v10 = vmul.f32 %v1635_v13, %v1501_v61  ;;  %v1713_v45 = vmul.f32 %v1640_v25, %v1502_v41  ;;  %v1385_v26 = vmul.f32 0.0, %v3139_v22  ;;  %v1513_v13 = vadd.f32 %v3133_v47, %v1384_v20  ;;  %v3373_v25 = vld [vmem:[#allocation19_spill] sm:$0xff] }
 0x44c   :  { %v3375_v22 = vld [vmem:[#allocation23_spill] sm:$0xff] }
 0x44d   :  { %v1744_v16 = vadd.f32 %v1712_v10, %v3365_v27  ;;  %v1745_v33 = vadd.f32 %v1713_v45, %v3366_v6  ;;  %v1386_v10 = vmul.f32 0.0, %v3145_v2  ;;  %v1514_v45 = vadd.f32 %v3137_v38, %v1385_v26  ;;  %v3377_v38 = vld [vmem:[#allocation22_spill] sm:$0xff] }
 0x44e   :  { %v1665_v59 = vpop.permute.xlu1 %1664  ;;  %v1670_v37 = vpop.permute.xlu0 %1669 }
 0x44f   :  { %1760 = vst [vmem:[#allocation7] sm:$0xff] %v1744_v16  ;;  %1761 = vst [vmem:[#allocation7 + $0x8] sm:$0xff] %v1745_v33  ;;  %v1718_v48 = vmul.f32 %v1665_v59, %v1507_v42  ;;  %v1719_v5 = vmul.f32 %v1670_v37, %v1508_v46  ;;  %v1387_v46 = vmul.f32 0.0, %v3143_v32  ;;  %v1515_v27 = vadd.f32 %v3131_v30, %v1386_v10  ;;  %v3376_v59 = vld [vmem:[#allocation25_spill] sm:$0xff]  ;;  %v3378_v32 = vld [vmem:[#allocation24_spill] sm:$0xff] }
 0x451   :  { %v1750_v4 = vadd.f32 %v1718_v48, %v3367_v62  ;;  %v1751_v43 = vadd.f32 %v1719_v5, %v3368_v51  ;;  %v1516_v33 = vadd.f32 %v3135_v0, %v1387_v46 }
 0x452   :  { %v1655_v17 = vpop.permute.xlu1 %1654  ;;  %v1660_v54 = vpop.permute.xlu0 %1659 }
 0x453   :  { %1766 = vst [vmem:[#allocation7 + $0x30] sm:$0xff] %v1750_v4  ;;  %1767 = vst [vmem:[#allocation7 + $0x38] sm:$0xff] %v1751_v43  ;;  %v1716_v24 = vmul.f32 %v1655_v17, %v1505_v7  ;;  %v1717_v23 = vmul.f32 %v1660_v54, %v1506_v44 }
 0x455   :  { %v1748_v39 = vadd.f32 %v1716_v24, %v3369_v12  ;;  %v1749_v21 = vadd.f32 %v1717_v23, %v3370_v1 }
 0x456   :  { %v1685_v49 = vpop.permute.xlu1 %1684  ;;  %v1690_v63 = vpop.permute.xlu0 %1689 }
 0x457   :  { %1764 = vst [vmem:[#allocation7 + $0x20] sm:$0xff] %v1748_v39  ;;  %1765 = vst [vmem:[#allocation7 + $0x28] sm:$0xff] %v1749_v21  ;;  %v1722_v29 = vmul.f32 %v1685_v49, %v1511_v52  ;;  %v1723_v3 = vmul.f32 %v1690_v63, %v1512_v55 }
 0x459   :  { %v1754_v19 = vadd.f32 %v1722_v29, %v3371_v18  ;;  %v1755_v11 = vadd.f32 %v1723_v3, %v3372_v36 }
 0x45a   :  { %v1675_v61 = vpop.permute.xlu1 %1674  ;;  %v1680_v41 = vpop.permute.xlu0 %1679 }
 0x45b   :  { %1770 = vst [vmem:[#allocation7 + $0x50] sm:$0xff] %v1754_v19  ;;  %1771 = vst [vmem:[#allocation7 + $0x58] sm:$0xff] %v1755_v11  ;;  %v1720_v9 = vmul.f32 %v1675_v61, %v1509_v57  ;;  %v1721_v50 = vmul.f32 %v1680_v41, %v1510_v15 }
 0x45d   :  { %v1752_v14 = vadd.f32 %v1720_v9, %v3373_v25  ;;  %v1753_v35 = vadd.f32 %v1721_v50, %v3374_v31 }
 0x45e   :  { %v1695_v40 = vpop.permute.xlu1 %1694 }
 0x45f   :  { %1768 = vst [vmem:[#allocation7 + $0x40] sm:$0xff] %v1752_v14  ;;  %1769 = vst [vmem:[#allocation7 + $0x48] sm:$0xff] %v1753_v35  ;;  %v1724_v28 = vmul.f32 %v1695_v40, %v1513_v13 }
 0x460   :  { %v1700_v42 = vpop.permute.xlu0 %1699 }
 0x461   :  { %v1756_v16 = vadd.f32 %v1724_v28, %v3375_v22  ;;  %v1725_v47 = vmul.f32 %v1700_v42, %v1514_v45 }
 0x462   :  { %v1705_v6 = vpop.permute.xlu1 %1704 }
 0x463   :  { %1772 = vst [vmem:[#allocation7 + $0x60] sm:$0xff] %v1756_v16  ;;  %v1757_v37 = vadd.f32 %v1725_v47, %v3376_v59  ;;  %v1726_v2 = vmul.f32 %v1705_v6, %v1515_v27 }
 0x464   :  { %v1710_v60 = vpop.permute.xlu0 %1709 }
 0x465   :  { %1773 = vst [vmem:[#allocation7 + $0x68] sm:$0xff] %v1757_v37  ;;  %v1758_v8 = vadd.f32 %v1726_v2, %v3377_v38  ;;  %v1727_v48 = vmul.f32 %v1710_v60, %v1516_v33 }
 0x467   :  { %1774 = vst [vmem:[#allocation7 + $0x70] sm:$0xff] %v1758_v8  ;;  %v1759_v30 = vadd.f32 %v1727_v48, %v3378_v32 }
 0x469   :  { %1775 = vst [vmem:[#allocation7 + $0x78] sm:$0xff] %v1759_v30 }
 0x46a   :  { %2186 = shalt.err (!%p2183_p4)
}
 0x46b   :  { %s2187_s4 = scalar_lea.hbm %s3192_s5, 2048 }
 0x46c   :  { %p2188_p5 = scmp.ne.s32.totalorder %s3192_s5, %s2187_s4  ;;  %p2191_p6 = scmp.lt.u32.totalorder %s2187_s4, %s3192_s5 }
 0x46e   :  { %p2193_p7 = pnand %p2191_p6, %p2188_p5 }
 0x470   :  { %2196 = shalt.err (!%p2193_p7)
}
 0x471   :  { %s2206_s29 = smov 128   ;;  %s2207_s30 = smov 8  }
 0x472   :  { %1787 = dma.vmem_to_hbm [thread:$0]  %s1782_s22, 2048, %s3192_s5, [#allocation8], %s2206_s29, %s2206_s29, %s2207_s30  }
 0x473   :  { %2197 = dma.done.wait [#allocation8], 2048  }
 0x474   :  { %2198 = vsyncadd [#allocation8], 4294965248 }
 0x475   :  { %1791 = vsyncpa [#allocation8], 1 }

// kernel: gat_forward.2
= control target key start
LH: loop header
LB: loop body
LE: loop exit
PB: predicated region body
PF: predicated region fallthrough
CT: control target
= control target key end

     0   :  { %10 = vsyncpa [#allocation8], 0  ;;  %s3284_s0 = inlined_call_operand.hbm [shape: f32[128,128], index: 0, kind: input, shape index: {}, may-alias: {0,1}]   ;;  %s3285_s1 = inlined_call_operand.hbm [shape: f32[128,128], index: 1, kind: input, shape index: {}, may-alias: {0,1}]   ;;  %s3286_s2 = inlined_call_operand.hbm [shape: s8[128,128], index: 2, kind: input, shape index: {}]   ;;  %s3287_s3 = inlined_call_operand.hbm [shape: bf16[128,256], index: 3, kind: input, shape index: {}]   ;;  %s3288_s4 = inlined_call_operand.vmem [shape: f32[1,128], index: 4, kind: input, shape index: {}]   ;;  %s3289_s5 = inlined_call_operand.vmem [shape: f32[128,128], index: 5, kind: output, shape index: {}]  }
   0x1   :  { %11 = vsyncpa [#allocation10], 0 }
   0x2   :  { %12 = vsyncpa [#allocation13], 0  ;;  %s2333_s18 = smov [#allocation9]   ;;  %s2334_s20 = smov [#allocation7]  }
   0x3   :  { %s30_s19 = sshll.u32 %s2333_s18, 4  ;;  %s18_s21 = sshll.u32 %s2334_s20, 4  ;;  %s31_s19 = int_to_ptr.vmem [resolvable:$true] %s30_s19  ;;  %s2375_s21 = int_to_ptr.vmem [resolvable:$true] %s18_s21 }
   0x4   :  { %s2239_s24 = scalar_lea.hbm %s3285_s1, 2048 }
   0x5   :  { %p2240_p0 = scmp.ne.s32.totalorder %s3285_s1, %s2239_s24  ;;  %p2243_p1 = scmp.lt.u32.totalorder %s2239_s24, %s3285_s1 }
   0x7   :  { %p2245_p2 = pnand %p2243_p1, %p2240_p0 }
   0x9   :  { %2248 = shalt.err (!%p2245_p2)
}
   0xa   :  { %s2249_s29 = scalar_lea.vmem %s31_s19, 2048  ;;  %p2254_p4 = scmp.lt.s32.totalorder %s31_s19, %s31_s19 }
   0xb   :  { %p2250_p3 = scmp.ne.s32.totalorder %s31_s19, %s2249_s29  ;;  %p2255_p5 = scmp.lt.s32.totalorder %s2249_s29, %s2249_s29 }
   0xd   :  { %p2256_p6 = por %p2255_p5, %p2254_p4 }
   0xf   :  { %p2257_p7 = pnand %p2256_p6, %p2250_p3 }
  0x11   :  { %2260 = shalt.err (!%p2257_p7)
}
  0x12   :  { %s2335_s30 = smov 128   ;;  %s2336_s6 = smov 8  }
  0x13   :  { %36 = dma.hbm_to_vmem [thread:$0]  %s3285_s1, 2048, %s31_s19, [#allocation10], %s2335_s30, %s2335_s30, %s2336_s6  }
  0x14   :  { %s2261_s11 = scalar_lea.hbm %s3284_s0, 2048 }
  0x15   :  { %p2262_p8 = scmp.ne.s32.totalorder %s3284_s0, %s2261_s11  ;;  %p2265_p9 = scmp.lt.u32.totalorder %s2261_s11, %s3284_s0 }
  0x17   :  { %p2267_p10 = pnand %p2265_p9, %p2262_p8 }
  0x19   :  { %2270 = shalt.err (!%p2267_p10)
}
  0x1a   :  { %s2271_s16 = scalar_lea.vmem %s2375_s21, 2048  ;;  %p2276_p12 = scmp.lt.s32.totalorder %s2375_s21, %s2375_s21 }
  0x1b   :  { %p2272_p11 = scmp.ne.s32.totalorder %s2375_s21, %s2271_s16  ;;  %p2277_p13 = scmp.lt.s32.totalorder %s2271_s16, %s2271_s16 }
  0x1d   :  { %p2278_p0 = por %p2277_p13, %p2276_p12 }
  0x1f   :  { %p2279_p1 = pnand %p2278_p0, %p2272_p11 }
  0x21   :  { %2282 = shalt.err (!%p2279_p1)
}
  0x22   :  { %24 = dma.hbm_to_vmem [thread:$0]  %s3284_s0, 2048, %s2375_s21, [#allocation8], %s2335_s30, %s2335_s30, %s2336_s6  }
  0x23   :  { %s2337_s18 = smov [#allocation11]   ;;  %s2338_s20 = smov [#allocation12]  }
  0x24   :  { %s42_s19 = sshll.u32 %s2337_s18, 4  ;;  %s54_s22 = sshll.u32 %s2338_s20, 4  ;;  %s43_s19 = int_to_ptr.vmem [resolvable:$true] %s42_s19  ;;  %s2412_s22 = int_to_ptr.vmem [resolvable:$true] %s54_s22 }
  0x25   :  { %s2283_s25 = scalar_lea.hbm %s3286_s2, 512 }
  0x26   :  { %p2284_p2 = scmp.ne.s32.totalorder %s3286_s2, %s2283_s25  ;;  %p2287_p3 = scmp.lt.u32.totalorder %s2283_s25, %s3286_s2 }
  0x28   :  { %p2289_p4 = pnand %p2287_p3, %p2284_p2 }
  0x2a   :  { %2292 = shalt.err (!%p2289_p4)
}
  0x2b   :  { %s2293_s0 = scalar_lea.vmem %s43_s19, 512  ;;  %p2298_p6 = scmp.lt.s32.totalorder %s43_s19, %s43_s19 }
  0x2c   :  { %p2294_p5 = scmp.ne.s32.totalorder %s43_s19, %s2293_s0  ;;  %p2299_p7 = scmp.lt.s32.totalorder %s2293_s0, %s2293_s0 }
  0x2e   :  { %p2300_p8 = por %p2299_p7, %p2298_p6 }
  0x30   :  { %p2301_p9 = pnand %p2300_p8, %p2294_p5 }
  0x32   :  { %2304 = shalt.err (!%p2301_p9)
}
  0x33   :  { %48 = dma.hbm_to_vmem [thread:$0]  %s3286_s2, 512, %s43_s19, [#allocation10], %s2335_s30, %s2335_s30, %s2336_s6  }
  0x34   :  { %s2305_s10 = scalar_lea.hbm %s3287_s3, 2048 }
  0x35   :  { %p2306_p10 = scmp.ne.s32.totalorder %s3287_s3, %s2305_s10  ;;  %p2309_p11 = scmp.lt.u32.totalorder %s2305_s10, %s3287_s3 }
  0x37   :  { %p2311_p12 = pnand %p2309_p11, %p2306_p10 }
  0x39   :  { %2314 = shalt.err (!%p2311_p12)
}
  0x3a   :  { %s2315_s15 = scalar_lea.vmem %s2412_s22, 2048  ;;  %p2320_p0 = scmp.lt.s32.totalorder %s2412_s22, %s2412_s22 }
  0x3b   :  { %p2316_p13 = scmp.ne.s32.totalorder %s2412_s22, %s2315_s15  ;;  %p2321_p1 = scmp.lt.s32.totalorder %s2315_s15, %s2315_s15 }
  0x3d   :  { %p2322_p2 = por %p2321_p1, %p2320_p0 }
  0x3f   :  { %p2323_p3 = pnand %p2322_p2, %p2316_p13 }
  0x41   :  { %2326 = shalt.err (!%p2323_p3)
}
  0x42   :  { %60 = dma.hbm_to_vmem [thread:$0]  %s3287_s3, 2048, %s2412_s22, [#allocation13], %s2335_s30, %s2335_s30, %s2336_s6  }
  0x43   :  { %2327 = dma.done.wait [#allocation8], 2048  }
  0x44   :  { %2328 = vsyncadd [#allocation8], 4294965248 }
  0x45   :  { %2329 = dma.done.wait [#allocation10], 2560  }
  0x46   :  { %2330 = vsyncadd [#allocation10], 4294964736 }
  0x47   :  { %2331 = dma.done.wait [#allocation13], 2048  }
  0x48   :  { %2332 = vsyncadd [#allocation13], 4294965248  ;;  %v2127_v0 = vld [vmem:[#allocation12 + $0x4] ss:$8 sps:$4 sm:$0xff]   ;;  %v2128_v1 = vld [vmem:[#allocation12 + $0x14] ss:$8 sps:$4 sm:$0xff]   ;;  %v123_v61 = vlaneseq }
  0x49   :  { %1958 = vmatprep.subr.bf16.mxu0 %v2127_v0  ;;  %v2129_v2 = vld [vmem:[#allocation12 + $0x24] ss:$8 sps:$4 sm:$0xff]   ;;  %v2130_v4 = vld [vmem:[#allocation12 + $0x34] ss:$8 sps:$4 sm:$0xff]   ;;  %v2339_v22 = vmov 0.0|0.0   ;;  %vm3290_vm0 = vcmask 7168  }
  0x4a   :  { %1959 = vmatpush3.bf16.msra.mxu0 %v2127_v0  ;;  %v98_v3 = vld [vmem:[#allocation7] sm:$0xff]  ;;  %v99_v5 = vld [vmem:[#allocation7 + $0x8] sm:$0xff]  ;;  %v2132_v10 = vld [vmem:[#allocation12 + $0x54] ss:$8 sps:$4 sm:$0xff]   ;;  %vm2340_vm1 = vmmov 0   ;;  %v2341_v59 = vmov 0.0  }
  0x4b   :  { %1960 = vmatprep.subr.bf16.mxu0 %v2128_v1  ;;  %v114_v6 = vpack.c.bf16 %v99_v5, %v98_v3  ;;  %v2131_v7 = vld [vmem:[#allocation12 + $0x44] ss:$8 sps:$4 sm:$0xff]   ;;  %v96_v13 = vld [vmem:[#allocation12 + $0x74] sm:$0xf]  ;;  %v2449_v14 = vld [vmem:[#allocation12 + $0x7c] sm:$0xf] }
  0x4c   :  { %v417_v8 = vld [vmem:[#allocation9] sm:$0xff]  ;;  %v418_v9 = vld [vmem:[#allocation9 + $0x8] sm:$0xff]  ;;  %v1860_v15 = vcombine.low %v96_v13, %v2449_v14  ;;  %v100_v16 = vld [vmem:[#allocation7 + $0x10] sm:$0xff]  ;;  %385 = vst.msk [vmem:[#allocation3] sm:$0xff] %vm3290_vm0, %v2341_v59  ;;  %v2492_v62 = vshrl.u32 %v123_v61, 7  ;;  %v122_v63 = vunpack.c.l.bf16 %v2449_v14 }
  0x4d   :  { %1974 = vmatprep.mubr.bf16.mxu0 %v114_v6  ;;  %v433_v11 = vpack.c.bf16 %v418_v9, %v417_v8  ;;  %v2133_v12 = vld [vmem:[#allocation12 + $0x64] ss:$8 sps:$4 sm:$0xff]   ;;  %v101_v17 = vld [vmem:[#allocation7 + $0x18] sm:$0xff]  ;;  %v104_v23 = vld [vmem:[#allocation7 + $0x30] sm:$0xff]  ;;  %386 = vst.msk [vmem:[#allocation3 + $0x8] sm:$0xff] %vm3290_vm0, %v2341_v59 }
  0x4e   :  { %1961 = vmatpush3.bf16.msra.mxu0 %v2128_v1  ;;  %v102_v18 = vld [vmem:[#allocation7 + $0x20] sm:$0xff]  ;;  %v103_v19 = vld [vmem:[#allocation7 + $0x28] sm:$0xff]  ;;  %v115_v20 = vpack.c.bf16 %v101_v17, %v100_v16  ;;  %v105_v24 = vld [vmem:[#allocation7 + $0x38] sm:$0xff]  ;;  %387 = vst.msk [vmem:[#allocation3 + $0x10] sm:$0xff] %vm3290_vm0, %v2341_v59  ;;  %v125_v0 = vsub.s32 7, %v2492_v62  ;;  %v2342_v1 = vmov 0  }
  0x4f   :  { %1962 = vmatprep.subr.bf16.mxu0 %v2129_v2  ;;  %2006 = vmatprep.mubr.bf16.mxu1 %v433_v11  ;;  %v116_v21 = vpack.c.bf16 %v103_v19, %v102_v18  ;;  %v106_v25 = vld [vmem:[#allocation7 + $0x40] sm:$0xff]  ;;  %v107_v26 = vld [vmem:[#allocation7 + $0x48] sm:$0xff]  ;;  %v117_v27 = vpack.c.bf16 %v105_v24, %v104_v23  ;;  %v419_v29 = vld [vmem:[#allocation9 + $0x10] sm:$0xff]  ;;  %388 = vst.msk [vmem:[#allocation3 + $0x18] sm:$0xff] %vm3290_vm0, %v2341_v59 }
  0x50   :  { %v118_v28 = vpack.c.bf16 %v107_v26, %v106_v25  ;;  %v420_v30 = vld [vmem:[#allocation9 + $0x18] sm:$0xff]  ;;  %v108_v31 = vld [vmem:[#allocation7 + $0x50] sm:$0xff]  ;;  %v110_v33 = vld [vmem:[#allocation7 + $0x60] sm:$0xff]  ;;  %389 = vst.msk [vmem:[#allocation3 + $0x20] sm:$0xff] %vm3290_vm0, %v2341_v59  ;;  %2125 = vset.pattern.permute.xlu0 %v2342_v1  ;;  %2126 = vset.pattern.permute.xlu1 %v2342_v1 }
  0x51   :  { %v109_v32 = vld [vmem:[#allocation7 + $0x58] sm:$0xff]  ;;  %v111_v34 = vld [vmem:[#allocation7 + $0x68] sm:$0xff]  ;;  %v2452_v35 = vpack.c.bf16 %v420_v30, %v419_v29  ;;  %v421_v38 = vld [vmem:[#allocation9 + $0x20] sm:$0xff]  ;;  %390 = vst.msk [vmem:[#allocation3 + $0x28] sm:$0xff] %vm3290_vm0, %v2341_v59 }
  0x52   :  { %1963 = vmatpush3.bf16.msra.mxu0 %v2129_v2  ;;  %v119_v36 = vpack.c.bf16 %v109_v32, %v108_v31  ;;  %v120_v37 = vpack.c.bf16 %v111_v34, %v110_v33  ;;  %v422_v39 = vld [vmem:[#allocation9 + $0x28] sm:$0xff]  ;;  %v112_v40 = vld [vmem:[#allocation7 + $0x70] sm:$0xff]  ;;  %v113_v41 = vld [vmem:[#allocation7 + $0x78] sm:$0xff]  ;;  %391 = vst.msk [vmem:[#allocation3 + $0x30] sm:$0xff] %vm3290_vm0, %v2341_v59  ;;  %v126_v2 = vrot.slane %v122_v63, %v125_v0 }
  0x53   :  { %1964 = vmatprep.subr.bf16.mxu0 %v2130_v4  ;;  %v2455_v42 = vpack.c.bf16 %v422_v39, %v421_v38  ;;  %v121_v43 = vpack.c.bf16 %v113_v41, %v112_v40  ;;  %v423_v44 = vld [vmem:[#allocation9 + $0x30] sm:$0xff]  ;;  %v424_v45 = vld [vmem:[#allocation9 + $0x38] sm:$0xff]  ;;  %v425_v47 = vld [vmem:[#allocation9 + $0x40] sm:$0xff]  ;;  %392 = vst.msk [vmem:[#allocation3 + $0x38] sm:$0xff] %vm3290_vm0, %v2341_v59 }
  0x54   :  { %v2458_v46 = vpack.c.bf16 %v424_v45, %v423_v44  ;;  %v426_v48 = vld [vmem:[#allocation9 + $0x48] sm:$0xff]  ;;  %v427_v50 = vld [vmem:[#allocation9 + $0x50] sm:$0xff]  ;;  %v428_v51 = vld [vmem:[#allocation9 + $0x58] sm:$0xff]  ;;  %393 = vst.msk [vmem:[#allocation3 + $0x40] sm:$0xff] %vm3290_vm0, %v2341_v59 }
  0x55   :  { %v2461_v49 = vpack.c.bf16 %v426_v48, %v425_v47  ;;  %v2464_v52 = vpack.c.bf16 %v428_v51, %v427_v50  ;;  %v429_v53 = vld [vmem:[#allocation9 + $0x60] sm:$0xff]  ;;  %v430_v54 = vld [vmem:[#allocation9 + $0x68] sm:$0xff]  ;;  %v431_v56 = vld [vmem:[#allocation9 + $0x70] sm:$0xff]  ;;  %394 = vst.msk [vmem:[#allocation3 + $0x48] sm:$0xff] %vm3290_vm0, %v2341_v59 }
  0x56   :  { %1965 = vmatpush3.bf16.msra.mxu0 %v2130_v4  ;;  %v2467_v55 = vpack.c.bf16 %v430_v54, %v429_v53  ;;  %v432_v57 = vld [vmem:[#allocation9 + $0x78] sm:$0xff]  ;;  %395 = vst.msk [vmem:[#allocation3 + $0x50] sm:$0xff] %vm3290_vm0, %v2341_v59  ;;  %396 = vst.msk [vmem:[#allocation3 + $0x58] sm:$0xff] %vm3290_vm0, %v2341_v59  ;;  %v602_v60 = vld [vmem:[%s3288_s4] sm:$0x1]  ;;  %s2343_s4 = smov 2  }
  0x57   :  { %1966 = vmatprep.subr.bf16.mxu0 %v2131_v7  ;;  %v2470_v58 = vpack.c.bf16 %v432_v57, %v431_v56  ;;  %397 = vst.msk [vmem:[#allocation3 + $0x60] sm:$0xff] %vm3290_vm0, %v2341_v59  ;;  %398 = vst.msk [vmem:[#allocation3 + $0x68] sm:$0xff] %vm3290_vm0, %v2341_v59 }
  0x58   :  { %399 = vst.msk [vmem:[#allocation3 + $0x70] sm:$0xff] %vm3290_vm0, %v2341_v59  ;;  %400 = vst.msk [vmem:[#allocation3 + $0x78] sm:$0xff] %vm3290_vm0, %v2341_v59 }
  0x5a   :  { %1967 = vmatpush3.bf16.msra.mxu0 %v2131_v7 }
  0x5b   :  { %1968 = vmatprep.subr.bf16.mxu0 %v2132_v10 }
  0x5e   :  { %1969 = vmatpush3.bf16.msra.mxu0 %v2132_v10 }
  0x5f   :  { %1970 = vmatprep.subr.bf16.mxu0 %v2133_v12 }
  0x62   :  { %1971 = vmatpush3.bf16.msra.mxu0 %v2133_v12 }
  0x63   :  { %1972 = vmatprep.subr.bf16.mxu0 %v1860_v15 }
  0x66   :  { %1973 = vmatpush3.bf16.msra.mxu0 %v1860_v15 }
  0x67   :  { %2089 = vmatprep.subr.bf16.mxu0 %v2339_v22 }
  0x69   :  { %1975 = vmatmul.mubr.bf16.vlgmr.msra.gmra.mrb[0].mxu0 %v115_v20 }
  0x6a   :  { %1978 = vmatprep.mubr.bf16.mxu0 %v116_v21 }
  0x6f   :  { %2091 = vmatpush3.bf16.xpose.msra.mxu0 %v433_v11 }
  0x70   :  { %2092 = vmatprep.subr.bf16.mxu0 %v2339_v22 }
  0x71   :  { %1979 = vmatmul.mubr.bf16.gmra.mrb[4].mxu0 %v117_v27 }
  0x72   :  { %1982 = vmatprep.mubr.bf16.mxu0 %v118_v28 }
  0x77   :  { %2094 = vmatpush3.bf16.xpose.msra.mxu0 %v2452_v35 }
  0x78   :  { %2095 = vmatprep.subr.bf16.mxu0 %v2339_v22 }
  0x79   :  { %1983 = vmatmul.mubr.bf16.gmra.mrb[8].mxu0 %v119_v36 }
  0x7a   :  { %1986 = vmatprep.mubr.bf16.mxu0 %v120_v37 }
  0x7f   :  { %2097 = vmatpush3.bf16.xpose.msra.mxu0 %v2455_v42 }
  0x80   :  { %2098 = vmatprep.subr.bf16.mxu0 %v2339_v22 }
  0x81   :  { %1987 = vmatmul.mubr.bf16.gmra.mrb[12].mxu0 %v121_v43 }
  0x82   :  { %2054 = vmatprep.mubr.msk.f32.mxu0 %vm2340_vm1, %v2341_v59 }
  0x87   :  { %2100 = vmatpush3.bf16.xpose.msra.mxu0 %v2458_v46 }
  0x88   :  { %2101 = vmatprep.subr.bf16.mxu0 %v2339_v22 }
  0x8f   :  { %2103 = vmatpush3.bf16.xpose.msra.mxu0 %v2461_v49 }
  0x90   :  { %2104 = vmatprep.subr.bf16.mxu0 %v2339_v22 }
  0x97   :  { %2106 = vmatpush3.bf16.xpose.msra.mxu0 %v2464_v52 }
  0x98   :  { %2107 = vmatprep.subr.bf16.mxu0 %v2339_v22 }
  0x9f   :  { %2109 = vmatpush3.bf16.xpose.msra.mxu0 %v2467_v55 }
  0xa0   :  { %2110 = vmatprep.subr.bf16.mxu0 %v2339_v22 }
  0xa7   :  { %2112 = vmatpush3.bf16.xpose.msra.mxu0 %v2470_v58 }
  0xae   :  { %2055 = vmatmul.mubr.f32.vlgmr.msra.gmra.mrb[16].mxu0 %v602_v60 }
 0x13c   :  { %v1976_v3 = vpop.f32.mrb[0].mxu0 }
 0x13d   :  { %v2498_v4 = vadd.f32 %v1976_v3, %v126_v2  ;;  %v209_v5 = vpop.f32.mrb[1].mxu0 }
 0x13e   :  { %v2500_v6 = vadd.f32 %v209_v5, %v126_v2  ;;  %v1977_v7 = vpop.f32.mrb[2].mxu0 }
 0x13f   :  { %3327 = vst [vmem:[#allocation17_spill] sm:$0xff] %v2498_v4  ;;  %v2502_v8 = vadd.f32 %v1977_v7, %v126_v2  ;;  %308 = vrot.lane.b32.xlu1 %v2498_v4, %s2343_s4  ;;  %v212_v9 = vpop.f32.mrb[3].mxu0 }
 0x140   :  { %3328 = vst [vmem:[#allocation18_spill] sm:$0xff] %v2500_v6  ;;  %v2506_v10 = vadd.f32 %v212_v9, %v126_v2  ;;  %304 = vrot.lane.b32.xlu0 %v2500_v6, %s2343_s4 }
 0x141   :  { %3329 = vst [vmem:[#allocation19_spill] sm:$0xff] %v2502_v8 }
 0x142   :  { %3330 = vst [vmem:[#allocation20_spill] sm:$0xff] %v2506_v10 }
 0x143   :  { %310 = vrot.lane.b32.xlu1 %v2502_v8, %s2343_s4 }
 0x144   :  { %v1980_v11 = vpop.f32.mrb[4].mxu0  ;;  %306 = vrot.lane.b32.xlu0 %v2506_v10, %s2343_s4 }
 0x145   :  { %v2514_v12 = vadd.f32 %v1980_v11, %v126_v2  ;;  %v225_v13 = vpop.f32.mrb[5].mxu0  ;;  %v2135_v11 = vld [vmem:[#allocation12] ss:$8 sps:$4 sm:$0xff]  }
 0x146   :  { %v2516_v14 = vadd.f32 %v225_v13, %v126_v2  ;;  %v1981_v15 = vpop.f32.mrb[6].mxu0  ;;  %1990 = vmatprep.subr.bf16.mxu1 %v2135_v11 }
 0x147   :  { %3331 = vst [vmem:[#allocation21_spill] sm:$0xff] %v2514_v12  ;;  %v2518_v16 = vadd.f32 %v1981_v15, %v126_v2  ;;  %v228_v17 = vpop.f32.mrb[7].mxu0  ;;  %1991 = vmatpush3.bf16.msra.mxu1 %v2135_v11 }
 0x148   :  { %3332 = vst [vmem:[#allocation22_spill] sm:$0xff] %v2516_v14  ;;  %v2520_v18 = vadd.f32 %v228_v17, %v126_v2  ;;  %312 = vrot.lane.b32.xlu0 %v2516_v14, %s2343_s4 }
 0x149   :  { %3333 = vst [vmem:[#allocation23_spill] sm:$0xff] %v2518_v16 }
 0x14a   :  { %3334 = vst [vmem:[#allocation24_spill] sm:$0xff] %v2520_v18  ;;  %314 = vrot.lane.b32.xlu1 %v2520_v18, %s2343_s4 }
 0x14c   :  { %v1984_v19 = vpop.f32.mrb[8].mxu0  ;;  %316 = vrot.lane.b32.xlu0 %v2514_v12, %s2343_s4 }
 0x14d   :  { %v2528_v20 = vadd.f32 %v1984_v19, %v126_v2  ;;  %v241_v21 = vpop.f32.mrb[9].mxu0  ;;  %v2136_v19 = vld [vmem:[#allocation12 + $0x10] ss:$8 sps:$4 sm:$0xff]  }
 0x14e   :  { %v2530_v22 = vadd.f32 %v241_v21, %v126_v2  ;;  %v1985_v23 = vpop.f32.mrb[10].mxu0  ;;  %318 = vrot.lane.b32.xlu1 %v2518_v16, %s2343_s4  ;;  %1992 = vmatprep.subr.bf16.mxu1 %v2136_v19 }
 0x14f   :  { %3335 = vst [vmem:[#allocation25_spill] sm:$0xff] %v2528_v20  ;;  %v2534_v24 = vadd.f32 %v1985_v23, %v126_v2  ;;  %v244_v25 = vpop.f32.mrb[11].mxu0  ;;  %1993 = vmatpush3.bf16.msra.mxu1 %v2136_v19 }
 0x150   :  { %3336 = vst [vmem:[#allocation26_spill] sm:$0xff] %v2530_v22  ;;  %v2536_v26 = vadd.f32 %v244_v25, %v126_v2  ;;  %320 = vrot.lane.b32.xlu0 %v2530_v22, %s2343_s4  ;;  %v2137_v25 = vld [vmem:[#allocation12 + $0x20] ss:$8 sps:$4 sm:$0xff]  }
 0x151   :  { %3337 = vst [vmem:[#allocation27_spill] sm:$0xff] %v2534_v24  ;;  %1994 = vmatprep.subr.bf16.mxu1 %v2137_v25 }
 0x152   :  { %3338 = vst [vmem:[#allocation28_spill] sm:$0xff] %v2536_v26  ;;  %322 = vrot.lane.b32.xlu1 %v2536_v26, %s2343_s4 }
 0x153   :  { %1995 = vmatpush3.bf16.msra.mxu1 %v2137_v25 }
 0x154   :  { %v1988_v27 = vpop.f32.mrb[12].mxu0  ;;  %324 = vrot.lane.b32.xlu0 %v2528_v20, %s2343_s4 }
 0x155   :  { %v2544_v28 = vadd.f32 %v1988_v27, %v126_v2  ;;  %v257_v29 = vpop.f32.mrb[13].mxu0 }
 0x156   :  { %v2546_v30 = vadd.f32 %v257_v29, %v126_v2  ;;  %v1989_v31 = vpop.f32.mrb[14].mxu0  ;;  %326 = vrot.lane.b32.xlu1 %v2534_v24, %s2343_s4 }
 0x157   :  { %3339 = vst [vmem:[#allocation29_spill] sm:$0xff] %v2544_v28  ;;  %v2550_v32 = vadd.f32 %v1989_v31, %v126_v2  ;;  %v260_v33 = vpop.f32.mrb[15].mxu0  ;;  %v2138_v31 = vld [vmem:[#allocation12 + $0x30] ss:$8 sps:$4 sm:$0xff]  }
 0x158   :  { %3340 = vst [vmem:[#allocation30_spill] sm:$0xff] %v2546_v30  ;;  %v2552_v34 = vadd.f32 %v260_v33, %v126_v2  ;;  %328 = vrot.lane.b32.xlu0 %v2546_v30, %s2343_s4  ;;  %1996 = vmatprep.subr.bf16.mxu1 %v2138_v31  ;;  %v2139_v33 = vld [vmem:[#allocation12 + $0x40] ss:$8 sps:$4 sm:$0xff]  }
 0x159   :  { %3341 = vst [vmem:[#allocation31_spill] sm:$0xff] %v2550_v32  ;;  %1997 = vmatpush3.bf16.msra.mxu1 %v2138_v31 }
 0x15a   :  { %3342 = vst [vmem:[#allocation32_spill] sm:$0xff] %v2552_v34  ;;  %330 = vrot.lane.b32.xlu1 %v2552_v34, %s2343_s4  ;;  %1998 = vmatprep.subr.bf16.mxu1 %v2139_v33 }
 0x15c   :  { %332 = vrot.lane.b32.xlu0 %v2544_v28, %s2343_s4 }
 0x15d   :  { %1999 = vmatpush3.bf16.msra.mxu1 %v2139_v33 }
 0x15e   :  { %334 = vrot.lane.b32.xlu1 %v2550_v32, %s2343_s4 }
 0x181   :  { %v2566_v40 = vpop.f32.mrb[16].mxu0 }
 0x182   :  { %v2056_v41 = vpop.f32.mrb[17].mxu0 }
 0x183   :  { %v673_v41 = vld [vmem:[#allocation11] sm:$0xff] }
 0x184   :  { %vm677_vm2 = vnez %v673_v41 }
 0x1b1   :  { %v309_v36 = vpop.permute.xlu1 %308 }
 0x1b2   :  { %355 = vst.msk [vmem:[#allocation6 + $0x10] sm:$0xff] %vm3290_vm0, %v309_v36  ;;  %v305_v37 = vpop.permute.xlu0 %304  ;;  %v2140_v36 = vld [vmem:[#allocation12 + $0x50] ss:$8 sps:$4 sm:$0xff]  }
 0x1b3   :  { %353 = vst.msk [vmem:[#allocation6] sm:$0xff] %vm3290_vm0, %v305_v37  ;;  %2000 = vmatprep.subr.bf16.mxu1 %v2140_v36  ;;  %v2141_v37 = vld [vmem:[#allocation12 + $0x60] ss:$8 sps:$4 sm:$0xff]  }
 0x1b4   :  { %2001 = vmatpush3.bf16.msra.mxu1 %v2140_v36 }
 0x1b5   :  { %v311_v38 = vpop.permute.xlu1 %310  ;;  %2002 = vmatprep.subr.bf16.mxu1 %v2141_v37 }
 0x1b6   :  { %356 = vst.msk [vmem:[#allocation6 + $0x18] sm:$0xff] %vm3290_vm0, %v311_v38  ;;  %v307_v39 = vpop.permute.xlu0 %306  ;;  %v2344_v38 = vmov -1e+30  }
 0x1b7   :  { %354 = vst.msk [vmem:[#allocation6 + $0x8] sm:$0xff] %vm3290_vm0, %v307_v39  ;;  %369 = vst.msk [vmem:[#allocation2] sm:$0xff] %vm3290_vm0, %v2344_v38  ;;  %v2142_v39 = vld [vmem:[#allocation12 + $0x70] ss:$8 sps:$4 sm:$0xff]  }
 0x1b8   :  { %370 = vst.msk [vmem:[#allocation2 + $0x8] sm:$0xff] %vm3290_vm0, %v2344_v38  ;;  %371 = vst.msk [vmem:[#allocation2 + $0x10] sm:$0xff] %vm3290_vm0, %v2344_v38  ;;  %2003 = vmatpush3.bf16.msra.mxu1 %v2141_v37 }
 0x1b9   :  { %v683_v54 = vld [vmem:[#allocation6 + $0x10] sm:$0xff]  ;;  %372 = vst.msk [vmem:[#allocation2 + $0x18] sm:$0xff] %vm3290_vm0, %v2344_v38  ;;  %373 = vst.msk [vmem:[#allocation2 + $0x20] sm:$0xff] %vm3290_vm0, %v2344_v38  ;;  %2004 = vmatprep.subr.bf16.mxu1 %v2142_v39 }
 0x1ba   :  { %v313_v43 = vpop.permute.xlu0 %312  ;;  %v681_v44 = vld [vmem:[#allocation6] sm:$0xff]  ;;  %374 = vst.msk [vmem:[#allocation2 + $0x28] sm:$0xff] %vm3290_vm0, %v2344_v38  ;;  %375 = vst.msk [vmem:[#allocation2 + $0x30] sm:$0xff] %vm3290_vm0, %v2344_v38 }
 0x1bb   :  { %357 = vst.msk [vmem:[#allocation6 + $0x20] sm:$0xff] %vm3290_vm0, %v313_v43  ;;  %699 = vperm.xlu0 %2125, %v681_v44   ;;  %376 = vst.msk [vmem:[#allocation2 + $0x38] sm:$0xff] %vm3290_vm0, %v2344_v38  ;;  %v674_v43 = vld [vmem:[#allocation11 + $0x8] sm:$0xff]  ;;  %v845_v44 = vsel %vm677_vm2, 16843009, %v2342_v1 }
 0x1bc   :  { %v315_v45 = vpop.permute.xlu1 %314  ;;  %377 = vst.msk [vmem:[#allocation2 + $0x40] sm:$0xff] %vm3290_vm0, %v2344_v38  ;;  %378 = vst.msk [vmem:[#allocation2 + $0x48] sm:$0xff] %vm3290_vm0, %v2344_v38  ;;  %2005 = vmatpush3.bf16.msra.mxu1 %v2142_v39  ;;  %vm678_vm3 = vnez %v674_v43 }
 0x1bd   :  { %358 = vst.msk [vmem:[#allocation6 + $0x28] sm:$0xff] %vm3290_vm0, %v315_v45  ;;  %v684_v47 = vld [vmem:[#allocation6 + $0x18] sm:$0xff]  ;;  %379 = vst.msk [vmem:[#allocation2 + $0x50] sm:$0xff] %vm3290_vm0, %v2344_v38  ;;  %v849_v45 = vunpack.c.0.s8 %v845_v44 }
 0x1be   :  { %v317_v48 = vpop.permute.xlu0 %316  ;;  %v682_v50 = vld [vmem:[#allocation6 + $0x8] sm:$0xff]  ;;  %380 = vst.msk [vmem:[#allocation2 + $0x58] sm:$0xff] %vm3290_vm0, %v2344_v38  ;;  %381 = vst.msk [vmem:[#allocation2 + $0x60] sm:$0xff] %vm3290_vm0, %v2344_v38 }
 0x1bf   :  { %359 = vst.msk [vmem:[#allocation6 + $0x30] sm:$0xff] %vm3290_vm0, %v317_v48  ;;  %714 = vperm.xlu0 %2125, %v684_v47   ;;  %704 = vperm.xlu1 %2126, %v682_v50   ;;  %382 = vst.msk [vmem:[#allocation2 + $0x68] sm:$0xff] %vm3290_vm0, %v2344_v38  ;;  %v850_v47 = vunpack.c.1.s8 %v845_v44  ;;  %v851_v48 = vunpack.c.2.s8 %v845_v44 }
 0x1c0   :  { %v319_v51 = vpop.permute.xlu1 %318  ;;  %383 = vst.msk [vmem:[#allocation2 + $0x70] sm:$0xff] %vm3290_vm0, %v2344_v38  ;;  %384 = vst.msk [vmem:[#allocation2 + $0x78] sm:$0xff] %vm3290_vm0, %v2344_v38  ;;  %2007 = vmatmul.mubr.bf16.vlgmr.msra.gmra.mrb[0].mxu1 %v2452_v35  ;;  %v846_v35 = vsel %vm678_vm3, 16843009, %v2342_v1  ;;  %v2872_v32 = vld [vmem:[#allocation2 + $0x20] sm:$0xff] }
 0x1c1   :  { %360 = vst.msk [vmem:[#allocation6 + $0x38] sm:$0xff] %vm3290_vm0, %v319_v51  ;;  %2010 = vmatprep.mubr.bf16.mxu1 %v2455_v42  ;;  %v675_v42 = vld [vmem:[#allocation11 + $0x10] sm:$0xff]  ;;  %v867_v50 = vpack.c.b16 %v850_v47, %v850_v47  ;;  %v869_v51 = vpack.c.b16 %v851_v48, %v851_v48 }
 0x1c2   :  { %v321_v53 = vpop.permute.xlu0 %320  ;;  %v685_v60 = vld [vmem:[#allocation6 + $0x20] sm:$0xff]  ;;  %vm679_vm4 = vnez %v675_v42  ;;  %v2882_v26 = vld [vmem:[#allocation2 + $0x38] sm:$0xff]  ;;  %v2892_v24 = vld [vmem:[#allocation2 + $0x30] sm:$0xff] }
 0x1c3   :  { %361 = vst.msk [vmem:[#allocation6 + $0x40] sm:$0xff] %vm3290_vm0, %v321_v53  ;;  %709 = vperm.xlu1 %2126, %v683_v54   ;;  %v853_v53 = vunpack.c.0.s8 %v846_v35  ;;  %v2606_v54 = vsel %vm679_vm4, 16843009, %v2342_v1  ;;  %v2912_v18 = vld [vmem:[#allocation2 + $0x40] sm:$0xff] }
 0x1c4   :  { %v323_v56 = vpop.permute.xlu1 %322  ;;  %v686_v57 = vld [vmem:[#allocation6 + $0x28] sm:$0xff]  ;;  %v859_v42 = vunpack.c.2.s8 %v2606_v54 }
 0x1c5   :  { %362 = vst.msk [vmem:[#allocation6 + $0x48] sm:$0xff] %vm3290_vm0, %v323_v56  ;;  %724 = vperm.xlu0 %2125, %v686_v57   ;;  %v856_v56 = vunpack.c.3.s8 %v846_v35  ;;  %v2922_v12 = vld [vmem:[#allocation2 + $0x58] sm:$0xff] }
 0x1c6   :  { %v325_v59 = vpop.permute.xlu0 %324  ;;  %v687_v2 = vld [vmem:[#allocation6 + $0x30] sm:$0xff]  ;;  %3395 = vst [vmem:[#allocation35_spill] sm:$0xff] %v2922_v12 }
 0x1c7   :  { %363 = vst.msk [vmem:[#allocation6 + $0x50] sm:$0xff] %vm3290_vm0, %v325_v59  ;;  %719 = vperm.xlu1 %2126, %v685_v60   ;;  %v855_v59 = vunpack.c.2.s8 %v846_v35  ;;  %v868_v60 = vpack.c.b8 %v867_v50, %v867_v50 }
 0x1c8   :  { %v327_v61 = vpop.permute.xlu1 %326  ;;  %v688_v63 = vld [vmem:[#allocation6 + $0x38] sm:$0xff]  ;;  %2011 = vmatmul.mubr.bf16.gmra.mrb[4].mxu1 %v2458_v46  ;;  %v852_v46 = vunpack.c.3.s8 %v845_v44 }
 0x1c9   :  { %364 = vst.msk [vmem:[#allocation6 + $0x58] sm:$0xff] %vm3290_vm0, %v327_v61  ;;  %734 = vperm.xlu0 %2125, %v688_v63   ;;  %2014 = vmatprep.mubr.bf16.mxu1 %v2461_v49  ;;  %v854_v49 = vunpack.c.1.s8 %v846_v35  ;;  %v858_v63 = vunpack.c.1.s8 %v2606_v54  ;;  %vm898_vm6 = vnez %v868_v60 }
 0x1ca   :  { %v329_v0 = vpop.permute.xlu0 %328  ;;  %v689_v9 = vld [vmem:[#allocation6 + $0x40] sm:$0xff] }
 0x1cb   :  { %365 = vst.msk [vmem:[#allocation6 + $0x60] sm:$0xff] %vm3290_vm0, %v329_v0  ;;  %729 = vperm.xlu1 %2126, %v687_v2   ;;  %v870_v0 = vpack.c.b8 %v869_v51, %v869_v51  ;;  %v883_v11 = vpack.c.b16 %v858_v63, %v858_v63 }
 0x1cc   :  { %v331_v3 = vpop.permute.xlu1 %330  ;;  %v690_v5 = vld [vmem:[#allocation6 + $0x48] sm:$0xff] }
 0x1cd   :  { %366 = vst.msk [vmem:[#allocation6 + $0x68] sm:$0xff] %vm3290_vm0, %v331_v3  ;;  %744 = vperm.xlu0 %2125, %v690_v5   ;;  %v873_v3 = vpack.c.b16 %v853_v53, %v853_v53  ;;  %v879_v5 = vpack.c.b16 %v856_v56, %v856_v56  ;;  %vm899_vm8 = vnez %v870_v0  ;;  %v884_v31 = vpack.c.b8 %v883_v11, %v883_v11 }
 0x1ce   :  { %v333_v7 = vpop.permute.xlu0 %332  ;;  %v691_v17 = vld [vmem:[#allocation6 + $0x50] sm:$0xff] }
 0x1cf   :  { %367 = vst.msk [vmem:[#allocation6 + $0x70] sm:$0xff] %vm3290_vm0, %v333_v7  ;;  %739 = vperm.xlu1 %2126, %v689_v9   ;;  %v877_v7 = vpack.c.b16 %v855_v59, %v855_v59  ;;  %v779_v9 = vsub.s32 0, %v2492_v62  ;;  %v880_v19 = vpack.c.b8 %v879_v5, %v879_v5  ;;  %vm906_vm14 = vnez %v884_v31 }
 0x1d0   :  { %v335_v13 = vpop.permute.xlu1 %334  ;;  %v692_v15 = vld [vmem:[#allocation6 + $0x58] sm:$0xff]  ;;  %2015 = vmatmul.mubr.bf16.gmra.mrb[8].mxu1 %v2464_v52  ;;  %v865_v52 = vpack.c.b16 %v849_v45, %v849_v45  ;;  %v860_v45 = vunpack.c.3.s8 %v2606_v54 }
 0x1d1   :  { %368 = vst.msk [vmem:[#allocation6 + $0x78] sm:$0xff] %vm3290_vm0, %v335_v13  ;;  %754 = vperm.xlu0 %2125, %v692_v15   ;;  %2018 = vmatprep.mubr.bf16.mxu1 %v2467_v55  ;;  %v871_v55 = vpack.c.b16 %v852_v46, %v852_v46  ;;  %v874_v13 = vpack.c.b8 %v873_v3, %v873_v3  ;;  %v857_v15 = vunpack.c.0.s8 %v2606_v54  ;;  %vm904_vm11 = vnez %v880_v19 }
 0x1d2   :  { %v693_v23 = vld [vmem:[#allocation6 + $0x60] sm:$0xff]  ;;  %v866_v57 = vpack.c.b8 %v865_v52, %v865_v52  ;;  %v878_v25 = vpack.c.b8 %v877_v7, %v877_v7  ;;  %v2617_v33 = vrot.slane %v2566_v40, %v779_v9  ;;  %v920_v47 = vsel %vm904_vm11, 16843009, %v2342_v1 }
 0x1d3   :  { %749 = vperm.xlu1 %2126, %v691_v17   ;;  %v872_v61 = vpack.c.b8 %v871_v55, %v871_v55  ;;  %vm901_vm10 = vnez %v874_v13  ;;  %v881_v37 = vpack.c.b16 %v857_v15, %v857_v15  ;;  %v922_v54 = vsel %vm906_vm14, 16843009, %v2342_v1 }
 0x1d4   :  { %v694_v21 = vld [vmem:[#allocation6 + $0x68] sm:$0xff]  ;;  %vm897_vm5 = vnez %v866_v57  ;;  %vm903_vm13 = vnez %v878_v25  ;;  %v917_v35 = vsel %vm901_vm10, 16843009, %v2342_v1  ;;  %v936_v59 = vunpack.c.0.s8 %v920_v47 }
 0x1d5   :  { %764 = vperm.xlu0 %2125, %v694_v21   ;;  %vm900_vm7 = vnez %v872_v61  ;;  %v913_v17 = vsel %vm897_vm5, 16843009, %v2342_v1  ;;  %v914_v21 = vsel %vm898_vm6, 16843009, %v2342_v1  ;;  %v882_v46 = vpack.c.b8 %v881_v37, %v881_v37 }
 0x1d6   :  { %v695_v29 = vld [vmem:[#allocation6 + $0x70] sm:$0xff]  ;;  %v929_v36 = vunpack.c.0.s8 %v913_v17  ;;  %v930_v38 = vunpack.c.0.s8 %v914_v21  ;;  %v919_v55 = vsel %vm903_vm13, 16843009, %v2342_v1  ;;  %v933_v53 = vunpack.c.0.s8 %v917_v35 }
 0x1d7   :  { %759 = vperm.xlu1 %2126, %v693_v23   ;;  %v916_v23 = vsel %vm900_vm7, 16843009, %v2342_v1  ;;  %v887_v60 = vpack.c.b16 %v860_v45, %v860_v45  ;;  %v885_v61 = vpack.c.b16 %v859_v42, %v859_v42  ;;  %vm905_vm6 = vnez %v882_v46 }
 0x1d8   :  { %v696_v27 = vld [vmem:[#allocation6 + $0x78] sm:$0xff]  ;;  %2019 = vmatmul.mubr.bf16.gmra.mrb[12].mxu1 %v2470_v58  ;;  %v875_v58 = vpack.c.b16 %v854_v49, %v854_v49  ;;  %v932_v39 = vunpack.c.0.s8 %v916_v23  ;;  %vm2627_vm15 = vcmp.ne.s32.totalorder %v929_v36, 0  ;;  %vm2631_vm1 = vcmp.ne.s32.totalorder %v930_v38, 0 }
 0x1d9   :  { %774 = vperm.xlu0 %2125, %v696_v27   ;;  %v676_v27 = vld [vmem:[#allocation11 + $0x18] sm:$0xff]  ;;  %v935_v9 = vunpack.c.0.s8 %v919_v55  ;;  %v938_v11 = vunpack.c.0.s8 %v922_v54  ;;  %v921_v23 = vsel %vm905_vm6, 16843009, %v2342_v1  ;;  %v888_v25 = vpack.c.b8 %v887_v60, %v887_v60 }
 0x1da   :  { %v876_v2 = vpack.c.b8 %v875_v58, %v875_v58  ;;  %vm680_vm12 = vnez %v676_v27  ;;  %vm2635_vm2 = vcmp.ne.s32.totalorder %v932_v39, 0  ;;  %vm2665_vm10 = vcmp.ne.s32.totalorder %v936_v59, 0 }
 0x1db   :  { %769 = vperm.xlu1 %2126, %v695_v29   ;;  %v915_v29 = vsel %vm899_vm8, 16843009, %v2342_v1  ;;  %v2625_v48 = vsel %vm680_vm12, 16843009, %v2342_v1  ;;  %v886_v38 = vpack.c.b8 %v885_v61, %v885_v61  ;;  %vm2681_vm12 = vcmp.ne.s32.totalorder %v935_v9, 0 }
 0x1dc   :  { %vm902_vm9 = vnez %v876_v2  ;;  %v931_v41 = vunpack.c.0.s8 %v915_v29  ;;  %v862_v63 = vunpack.c.1.s8 %v2625_v48  ;;  %v861_v13 = vunpack.c.0.s8 %v2625_v48 }
 0x1dd   :  { %v918_v62 = vsel %vm902_vm9, 16843009, %v2342_v1  ;;  %vm2658_vm9 = vcmp.ne.s32.totalorder %v933_v53, 0  ;;  %v864_v29 = vunpack.c.3.s8 %v2625_v48  ;;  %v863_v35 = vunpack.c.2.s8 %v2625_v48 }
 0x1de   :  { %v934_v43 = vunpack.c.0.s8 %v918_v62  ;;  %vm2640_vm4 = vcmp.ne.s32.totalorder %v931_v41, 0  ;;  %v891_v27 = vpack.c.b16 %v862_v63, %v862_v63  ;;  %vm2685_vm13 = vnez %v888_v25 }
 0x1df   :  { %v895_v48 = vpack.c.b16 %v864_v29, %v864_v29  ;;  %vm2698_vm6 = vnez %v886_v38 }
 0x1e0   :  { %vm2648_vm5 = vcmp.ne.s32.totalorder %v934_v43, 0 }
 0x23a   :  { %v700_v44 = vpop.permute.xlu0 %699 }
 0x23b   :  { %v781_v40 = vadd.f32 %v2617_v33, %v700_v44  ;;  %v889_v44 = vpack.c.b16 %v861_v13, %v861_v13 }
 0x23d   :  { %v813_v51 = vmul.f32 0.2, %v781_v40  ;;  %vm797_vm3 = vcmp.gt.f32.partialorder %v781_v40, 0.0  ;;  %v890_v63 = vpack.c.b8 %v889_v44, %v889_v44 }
 0x23e   :  { %v705_v56 = vpop.permute.xlu1 %704  ;;  %v715_v57 = vpop.permute.xlu0 %714 }
 0x23f   :  { %v782_v0 = vadd.f32 %v2617_v33, %v705_v56  ;;  %v784_v2 = vadd.f32 %v2617_v33, %v715_v57  ;;  %v829_v3 = vsel %vm797_vm3, %v781_v40, %v813_v51  ;;  %v937_v40 = vunpack.c.0.s8 %v921_v23 }
 0x240   :  { %v2654_v7 = vsel %vm2627_vm15, %v829_v3, -1e+30  ;;  %v892_v51 = vpack.c.b8 %v891_v27, %v891_v27  ;;  %vm2690_vm3 = vcmp.ne.s32.totalorder %v938_v11, 0  ;;  %v896_v23 = vpack.c.b8 %v895_v48, %v895_v48 }
 0x241   :  { %v814_v15 = vmul.f32 0.2, %v782_v0  ;;  %v816_v17 = vmul.f32 0.2, %v784_v2  ;;  %993 = vmax.xlane.f32.xlu1 %v2654_v7  ;;  %vm798_vm7 = vcmp.gt.f32.partialorder %v782_v0, 0.0  ;;  %vm800_vm8 = vcmp.gt.f32.partialorder %v784_v2, 0.0 }
 0x242   :  { %v710_v21 = vpop.permute.xlu1 %709 }
 0x243   :  { %v783_v62 = vadd.f32 %v2617_v33, %v710_v21  ;;  %v830_v31 = vsel %vm798_vm7, %v782_v0, %v814_v15  ;;  %v832_v36 = vsel %vm800_vm8, %v784_v2, %v816_v17  ;;  %v893_v0 = vpack.c.b16 %v863_v35, %v863_v35 }
 0x244   :  { %v725_v39 = vpop.permute.xlu0 %724  ;;  %v2671_v41 = vsel %vm2631_vm1, %v830_v31, -1e+30  ;;  %v2675_v43 = vsel %vm2635_vm2, %v832_v36, -1e+30  ;;  %vm2704_vm8 = vcmp.ne.s32.totalorder %v937_v40, 0  ;;  %v3375_v21 = vmov 0 }
 0x245   :  { %v815_v45 = vmul.f32 0.2, %v783_v62  ;;  %v786_v42 = vadd.f32 %v2617_v33, %v725_v39  ;;  %995 = vmax.xlane.f32.xlu0 %v2671_v41  ;;  %999 = vmax.xlane.f32.xlu1 %v2675_v43  ;;  %vm799_vm11 = vcmp.gt.f32.partialorder %v783_v62, 0.0  ;;  %v924_v17 = vsel %vm2685_vm13, 16843009, %v2342_v1 }
 0x246   :  { %v720_v47 = vpop.permute.xlu1 %719  ;;  %v923_v36 = vsel %vm2698_vm6, 16843009, %v2342_v1  ;;  %vm2728_vm13 = vnez %v890_v63  ;;  %v894_v39 = vpack.c.b8 %v893_v0, %v893_v0  ;;  %vm2741_vm6 = vnez %v896_v23 }
 0x247   :  { %v818_v53 = vmul.f32 0.2, %v786_v42  ;;  %v785_v54 = vadd.f32 %v2617_v33, %v720_v47  ;;  %v831_v56 = vsel %vm799_vm11, %v783_v62, %v815_v45  ;;  %vm802_vm14 = vcmp.gt.f32.partialorder %v786_v42, 0.0 }
 0x248   :  { %v735_v59 = vpop.permute.xlu0 %734  ;;  %v2696_v60 = vsel %vm2640_vm4, %v831_v56, -1e+30  ;;  %vm2715_vm11 = vnez %v892_v51  ;;  %v940_v47 = vunpack.c.0.s8 %v924_v17  ;;  %v939_v61 = vunpack.c.0.s8 %v923_v36 }
 0x249   :  { %v817_v2 = vmul.f32 0.2, %v785_v54  ;;  %v788_v3 = vadd.f32 %v2617_v33, %v735_v59  ;;  %997 = vmax.xlane.f32.xlu0 %v2696_v60  ;;  %v834_v9 = vsel %vm802_vm14, %v786_v42, %v818_v53  ;;  %vm801_vm7 = vcmp.gt.f32.partialorder %v785_v54, 0.0 }
 0x24a   :  { %v730_v13 = vpop.permute.xlu1 %729  ;;  %v2710_v15 = vsel %vm2648_vm5, %v834_v9, -1e+30  ;;  %v926_v55 = vsel %vm2715_vm11, 16843009, %v2342_v1  ;;  %v925_v63 = vsel %vm2728_vm13, 16843009, %v2342_v1  ;;  %vm2754_vm11 = vnez %v894_v39 }
 0x24b   :  { %v820_v25 = vmul.f32 0.2, %v788_v3  ;;  %v787_v27 = vadd.f32 %v2617_v33, %v730_v13  ;;  %1003 = vmax.xlane.f32.xlu1 %v2710_v15  ;;  %v833_v29 = vsel %vm801_vm7, %v785_v54, %v817_v2  ;;  %vm804_vm14 = vcmp.gt.f32.partialorder %v788_v3, 0.0 }
 0x24c   :  { %v745_v62 = vpop.permute.xlu0 %744  ;;  %v2723_v31 = vsel %vm2658_vm9, %v833_v29, -1e+30  ;;  %vm2764_vm0 = vcmp.ne.s32.totalorder %v940_v47, 0  ;;  %v942_v23 = vunpack.c.0.s8 %v926_v55  ;;  %v3377_v39 = vmov 0 }
 0x24d   :  { %v819_v44 = vmul.f32 0.2, %v787_v27  ;;  %v790_v35 = vadd.f32 %v2617_v33, %v745_v62  ;;  %1001 = vmax.xlane.f32.xlu0 %v2723_v31  ;;  %v836_v45 = vsel %vm804_vm14, %v788_v3, %v820_v25  ;;  %vm803_vm7 = vcmp.gt.f32.partialorder %v787_v27, 0.0 }
 0x24e   :  { %v740_v42 = vpop.permute.xlu1 %739  ;;  %v2736_v40 = vsel %vm2665_vm10, %v836_v45, -1e+30  ;;  %v3376_v21 = vsel %vm2764_vm0, 4294967295, %v3375_v21  ;;  %v928_v25 = vsel %vm2741_vm6, 16843009, %v2342_v1 }
 0x24f   :  { %v822_v48 = vmul.f32 0.2, %v790_v35  ;;  %v789_v53 = vadd.f32 %v2617_v33, %v740_v42  ;;  %1007 = vmax.xlane.f32.xlu1 %v2736_v40  ;;  %v835_v54 = vsel %vm803_vm7, %v787_v27, %v819_v44  ;;  %vm806_vm14 = vcmp.gt.f32.partialorder %v790_v35, 0.0 }
 0x250   :  { %v755_v56 = vpop.permute.xlu0 %754  ;;  %v2749_v59 = vsel %vm2681_vm12, %v835_v54, -1e+30  ;;  %v941_v44 = vunpack.c.0.s8 %v925_v63 }
 0x251   :  { %v821_v2 = vmul.f32 0.2, %v789_v53  ;;  %v792_v3 = vadd.f32 %v2617_v33, %v755_v56  ;;  %1005 = vmax.xlane.f32.xlu0 %v2749_v59  ;;  %v838_v9 = vsel %vm806_vm14, %v790_v35, %v822_v48  ;;  %vm805_vm7 = vcmp.gt.f32.partialorder %v789_v53, 0.0 }
 0x252   :  { %v750_v13 = vpop.permute.xlu1 %749  ;;  %v2762_v17 = vsel %vm2690_vm3, %v838_v9, -1e+30  ;;  %vm2777_vm14 = vcmp.ne.s32.totalorder %v939_v61, 0  ;;  %v927_v35 = vsel %vm2754_vm11, 16843009, %v2342_v1  ;;  %v3379_v48 = vmov 0 }
 0x253   :  { %v824_v27 = vmul.f32 0.2, %v792_v3  ;;  %v791_v29 = vadd.f32 %v2617_v33, %v750_v13  ;;  %1011 = vmax.xlane.f32.xlu1 %v2762_v17  ;;  %v837_v62 = vsel %vm805_vm7, %v789_v53, %v821_v2  ;;  %vm808_vm13 = vcmp.gt.f32.partialorder %v792_v3, 0.0 }
 0x254   :  { %v765_v36 = vpop.permute.xlu0 %764  ;;  %v2775_v38 = vsel %vm2704_vm8, %v837_v62, -1e+30  ;;  %v3378_v39 = vsel %vm2777_vm14, 4294967295, %v3377_v39  ;;  %vm2790_vm7 = vcmp.ne.s32.totalorder %v942_v23, 0  ;;  %v944_v53 = vunpack.c.0.s8 %v928_v25 }
 0x255   :  { %v823_v45 = vmul.f32 0.2, %v791_v29  ;;  %v794_v42 = vadd.f32 %v2617_v33, %v765_v36  ;;  %1009 = vmax.xlane.f32.xlu0 %v2775_v38  ;;  %v840_v47 = vsel %vm808_vm13, %v792_v3, %v824_v27  ;;  %vm807_vm6 = vcmp.gt.f32.partialorder %v791_v29, 0.0 }
 0x256   :  { %v760_v55 = vpop.permute.xlu1 %759  ;;  %v2788_v51 = vsel %vm2764_vm0, %v840_v47, -1e+30  ;;  %v3380_v48 = vsel %vm2790_vm7, 4294967295, %v3379_v48  ;;  %vm2800_vm13 = vcmp.ne.s32.totalorder %v941_v44, 0  ;;  %v943_v2 = vunpack.c.0.s8 %v927_v35 }
 0x257   :  { %v826_v54 = vmul.f32 0.2, %v794_v42  ;;  %v793_v1 = vadd.f32 %v2617_v33, %v760_v55  ;;  %1015 = vmax.xlane.f32.xlu1 %v2788_v51  ;;  %v839_v56 = vsel %vm807_vm6, %v791_v29, %v823_v45  ;;  %vm810_vm11 = vcmp.gt.f32.partialorder %v794_v42, 0.0 }
 0x258   :  { %v775_v61 = vpop.permute.xlu0 %774  ;;  %v2798_v63 = vsel %vm2777_vm14, %v839_v56, -1e+30  ;;  %vm2810_vm6 = vcmp.ne.s32.totalorder %v944_v53, 0 }
 0x259   :  { %v825_v3 = vmul.f32 0.2, %v793_v1  ;;  %v796_v9 = vadd.f32 %v2617_v33, %v775_v61  ;;  %1013 = vmax.xlane.f32.xlu0 %v2798_v63  ;;  %v842_v13 = vsel %vm810_vm11, %v794_v42, %v826_v54  ;;  %vm809_vm0 = vcmp.gt.f32.partialorder %v793_v1, 0.0 }
 0x25a   :  { %v770_v23 = vpop.permute.xlu1 %769  ;;  %v2808_v25 = vsel %vm2790_vm7, %v842_v13, -1e+30  ;;  %vm2821_vm7 = vcmp.ne.s32.totalorder %v943_v2, 0 }
 0x25b   :  { %v828_v29 = vmul.f32 0.2, %v796_v9  ;;  %v795_v62 = vadd.f32 %v2617_v33, %v770_v23  ;;  %1019 = vmax.xlane.f32.xlu1 %v2808_v25  ;;  %v841_v36 = vsel %vm809_vm0, %v793_v1, %v825_v3  ;;  %vm812_vm14 = vcmp.gt.f32.partialorder %v796_v9, 0.0  ;;  %v2835_v3 = vld [vmem:[#allocation2] sm:$0xff] }
 0x25c   :  { %v2818_v44 = vsel %vm2800_vm13, %v841_v36, -1e+30  ;;  %vm3387_vm0 = vcmask 7168  }
 0x25d   :  { %v827_v35 = vmul.f32 0.2, %v795_v62  ;;  %1017 = vmax.xlane.f32.xlu0 %v2818_v44  ;;  %v844_v45 = vsel %vm812_vm14, %v796_v9, %v828_v29  ;;  %vm811_vm11 = vcmp.gt.f32.partialorder %v795_v62, 0.0  ;;  %vm3388_vm14 = vmmov %vm3387_vm0 }
 0x25e   :  { %v2827_v33 = vsel %vm2810_vm6, %v844_v45, -1e+30  ;;  %v2840_v45 = vld [vmem:[#allocation2 + $0x18] sm:$0xff] }
 0x25f   :  { %1023 = vmax.xlane.f32.xlu1 %v2827_v33  ;;  %v843_v47 = vsel %vm811_vm11, %v795_v62, %v827_v35  ;;  %vm3389_vm11 = vmmov %vm3387_vm0 }
 0x260   :  { %v2832_v55 = vsel %vm2821_vm7, %v843_v47, -1e+30  ;;  %v2842_v47 = vld [vmem:[#allocation2 + $0x8] sm:$0xff] }
 0x261   :  { %1021 = vmax.xlane.f32.xlu0 %v2832_v55 }
 0x293   :  { %v2008_v53 = vpop.f32.mrb[0].mxu1 }
 0x294   :  { %v539_v54 = vpop.f32.mrb[1].mxu1 }
 0x295   :  { %v2009_v1 = vpop.f32.mrb[2].mxu1 }
 0x296   :  { %v1451_v56 = vpack.c.bf16 %v2009_v1, %v2008_v53  ;;  %v542_v61 = vpop.f32.mrb[3].mxu1 }
 0x297   :  { %v1450_v2 = vpack.c.bf16 %v542_v61, %v539_v54 }
 0x299   :  { %2057 = vmatprep.subr.bf16.mxu1 %v1450_v2 }
 0x29a   :  { %2058 = vmatpush3.bf16.msra.mxu1 %v1450_v2 }
 0x29b   :  { %v2012_v9 = vpop.f32.mrb[4].mxu1  ;;  %2059 = vmatprep.subr.bf16.mxu1 %v1451_v56 }
 0x29c   :  { %v555_v13 = vpop.f32.mrb[5].mxu1 }
 0x29d   :  { %v2013_v29 = vpop.f32.mrb[6].mxu1 }
 0x29e   :  { %v1453_v36 = vpack.c.bf16 %v2013_v29, %v2012_v9  ;;  %v558_v35 = vpop.f32.mrb[7].mxu1  ;;  %2060 = vmatpush3.bf16.msra.mxu1 %v1451_v56  ;;  %v2855_v9 = vld [vmem:[#allocation2 + $0x10] sm:$0xff] }
 0x29f   :  { %v1452_v53 = vpack.c.bf16 %v558_v35, %v555_v13 }
 0x2a1   :  { %2061 = vmatprep.subr.bf16.mxu1 %v1452_v53 }
 0x2a2   :  { %2062 = vmatpush3.bf16.msra.mxu1 %v1452_v53  ;;  %v2867_v53 = vld [vmem:[#allocation2 + $0x28] sm:$0xff] }
 0x2a3   :  { %2063 = vmatprep.subr.bf16.mxu1 %v1453_v36  ;;  %v2016_v29 = vpop.f32.mrb[8].mxu1 }
 0x2a6   :  { %2064 = vmatpush3.bf16.msra.mxu1 %v1453_v36 }
 0x2ce   :  { %v994_v23 = vpop.xlane.xlu1 %993 }
 0x2cf   :  { %v2838_v62 = vmax.f32 %v2835_v3, %v994_v23 }
 0x2d1   :  { %1587 = vst.msk [vmem:[#allocation2] sm:$0xff] %vm3387_vm0, %v2838_v62  ;;  %1091 = vperm.xlu0 %2125, %v2838_v62  }
 0x2d2   :  { %v1000_v1 = vpop.xlane.xlu1 %999  ;;  %v996_v61 = vpop.xlane.xlu0 %995 }
 0x2d3   :  { %v2850_v2 = vmax.f32 %v2840_v45, %v1000_v1  ;;  %v2853_v56 = vmax.f32 %v2842_v47, %v996_v61  ;;  %v571_v1 = vpop.f32.mrb[9].mxu1 }
 0x2d4   :  { %v2017_v13 = vpop.f32.mrb[10].mxu1 }
 0x2d5   :  { %1590 = vst.msk [vmem:[#allocation2 + $0x18] sm:$0xff] %vm3388_vm14, %v2850_v2  ;;  %1106 = vperm.xlu0 %2125, %v2850_v2   ;;  %1096 = vperm.xlu1 %2126, %v2853_v56   ;;  %v574_v23 = vpop.f32.mrb[11].mxu1  ;;  %v1455_v36 = vpack.c.bf16 %v2017_v13, %v2016_v29  ;;  %vm3390_vm14 = vmmov %vm3387_vm0 }
 0x2d6   :  { %1588 = vst.msk [vmem:[#allocation2 + $0x8] sm:$0xff] %vm3389_vm11, %v2853_v56  ;;  %v998_v35 = vpop.xlane.xlu0 %997  ;;  %v1454_v30 = vpack.c.bf16 %v574_v23, %v571_v1  ;;  %vm3391_vm11 = vmmov %vm3387_vm0  ;;  %v2020_v29 = vpop.f32.mrb[12].mxu1 }
 0x2d7   :  { %v2870_v61 = vmax.f32 %v2855_v9, %v998_v35  ;;  %v587_v22 = vpop.f32.mrb[13].mxu1 }
 0x2d8   :  { %v1004_v54 = vpop.xlane.xlu1 %1003  ;;  %2065 = vmatprep.subr.bf16.mxu1 %v1454_v30 }
 0x2d9   :  { %1589 = vst.msk [vmem:[#allocation2 + $0x10] sm:$0xff] %vm3387_vm0, %v2870_v61  ;;  %v2879_v34 = vmax.f32 %v2867_v53, %v1004_v54  ;;  %1101 = vperm.xlu1 %2126, %v2870_v61   ;;  %2066 = vmatpush3.bf16.msra.mxu1 %v1454_v30  ;;  %v3416_v0 = vsub.f32 %v2855_v9, %v2870_v61 }
 0x2da   :  { %v1002_v35 = vpop.xlane.xlu0 %1001  ;;  %2067 = vmatprep.subr.bf16.mxu1 %v1455_v36 }
 0x2db   :  { %1592 = vst.msk [vmem:[#allocation2 + $0x28] sm:$0xff] %vm3390_vm14, %v2879_v34  ;;  %v2889_v28 = vmax.f32 %v2872_v32, %v1002_v35  ;;  %1116 = vperm.xlu0 %2125, %v2879_v34   ;;  %v2902_v35 = vld [vmem:[#allocation2 + $0x48] sm:$0xff]  ;;  %vm3393_vm14 = vmmov %vm3387_vm0  ;;  %v1061_v27 = vmul.f32 1.442695, %v3416_v0  ;;  %v1236_v0 = vld [vmem:[#allocation3 + $0x18] sm:$0xff] }
 0x2dc   :  { %v1008_v54 = vpop.xlane.xlu1 %1007  ;;  %3392 = vst [vmem:[#allocation33_spill] sm:$0xff] %v2902_v35 }
 0x2dd   :  { %1591 = vst.msk [vmem:[#allocation2 + $0x20] sm:$0xff] %vm3391_vm11, %v2889_v28  ;;  %v2899_v13 = vmax.f32 %v2882_v26, %v1008_v54  ;;  %1111 = vperm.xlu1 %2126, %v2889_v28   ;;  %v2021_v54 = vpop.f32.mrb[14].mxu1  ;;  %2068 = vmatpush3.bf16.msra.mxu1 %v1455_v36  ;;  %vm3396_vm11 = vmmov %vm3387_vm0 }
 0x2de   :  { %v1006_v1 = vpop.xlane.xlu0 %1005  ;;  %v590_v14 = vpop.f32.mrb[15].mxu1  ;;  %v1457_v6 = vpack.c.bf16 %v2021_v54, %v2020_v29 }
 0x2df   :  { %1594 = vst.msk [vmem:[#allocation2 + $0x38] sm:$0xff] %vm3387_vm0, %v2899_v13  ;;  %v2909_v23 = vmax.f32 %v2892_v24, %v1006_v1  ;;  %1126 = vperm.xlu0 %2125, %v2899_v13   ;;  %v1456_v10 = vpack.c.bf16 %v590_v14, %v587_v22 }
 0x2e0   :  { %v1012_v20 = vpop.xlane.xlu1 %1011 }
 0x2e1   :  { %1593 = vst.msk [vmem:[#allocation2 + $0x30] sm:$0xff] %vm3393_vm14, %v2909_v23  ;;  %v2919_v30 = vmax.f32 %v2902_v35, %v1012_v20  ;;  %1121 = vperm.xlu1 %2126, %v2909_v23   ;;  %v2932_v20 = vld [vmem:[#allocation2 + $0x50] sm:$0xff]  ;;  %2069 = vmatprep.subr.bf16.mxu1 %v1456_v10  ;;  %vm3400_vm14 = vmmov %vm3387_vm0 }
 0x2e2   :  { %v1010_v1 = vpop.xlane.xlu0 %1009  ;;  %3397 = vst [vmem:[#allocation36_spill] sm:$0xff] %v2932_v20  ;;  %2070 = vmatpush3.bf16.msra.mxu1 %v1456_v10 }
 0x2e3   :  { %3394 = vst [vmem:[#allocation34_spill] sm:$0xff] %v2919_v30  ;;  %1596 = vst.msk [vmem:[#allocation2 + $0x48] sm:$0xff] %vm3396_vm11, %v2919_v30  ;;  %v2929_v36 = vmax.f32 %v2912_v18, %v1010_v1  ;;  %1136 = vperm.xlu0 %2125, %v2919_v30   ;;  %v2942_v1 = vld [vmem:[#allocation2 + $0x68] sm:$0xff]  ;;  %v2952_v30 = vld [vmem:[#allocation2 + $0x60] sm:$0xff]  ;;  %2071 = vmatprep.subr.bf16.mxu1 %v1457_v6 }
 0x2e4   :  { %v1016_v16 = vpop.xlane.xlu1 %1015  ;;  %3399 = vst [vmem:[#allocation38_spill] sm:$0xff] %v2942_v1  ;;  %3402 = vst [vmem:[#allocation40_spill] sm:$0xff] %v2952_v30 }
 0x2e5   :  { %1595 = vst.msk [vmem:[#allocation2 + $0x40] sm:$0xff] %vm3387_vm0, %v2929_v36  ;;  %v2939_v14 = vmax.f32 %v2922_v12, %v1016_v16  ;;  %1131 = vperm.xlu1 %2126, %v2929_v36   ;;  %vm3403_vm11 = vmmov %vm3387_vm0 }
 0x2e6   :  { %v1014_v22 = vpop.xlane.xlu0 %1013  ;;  %2072 = vmatpush3.bf16.msra.mxu1 %v1457_v6 }
 0x2e7   :  { %3398 = vst [vmem:[#allocation37_spill] sm:$0xff] %v2939_v14  ;;  %1598 = vst.msk [vmem:[#allocation2 + $0x58] sm:$0xff] %vm3400_vm14, %v2939_v14  ;;  %v2949_v4 = vmax.f32 %v2932_v20, %v1014_v22  ;;  %1146 = vperm.xlu0 %2125, %v2939_v14   ;;  %v2962_v22 = vld [vmem:[#allocation2 + $0x78] sm:$0xff] }
 0x2e8   :  { %v1020_v16 = vpop.xlane.xlu1 %1019  ;;  %3405 = vst [vmem:[#allocation42_spill] sm:$0xff] %v2962_v22  ;;  %vm3408_vm14 = vmmov %vm3387_vm0 }
 0x2e9   :  { %3401 = vst [vmem:[#allocation39_spill] sm:$0xff] %v2949_v4  ;;  %1597 = vst.msk [vmem:[#allocation2 + $0x50] sm:$0xff] %vm3403_vm11, %v2949_v4  ;;  %v2959_v29 = vmax.f32 %v2942_v1, %v1020_v16  ;;  %1141 = vperm.xlu1 %2126, %v2949_v4   ;;  %v2972_v16 = vld [vmem:[#allocation2 + $0x70] sm:$0xff] }
 0x2ea   :  { %v1018_v54 = vpop.xlane.xlu0 %1017  ;;  %3407 = vst [vmem:[#allocation44_spill] sm:$0xff] %v2972_v16  ;;  %vm3410_vm11 = vmmov %vm3387_vm0 }
 0x2eb   :  { %3404 = vst [vmem:[#allocation41_spill] sm:$0xff] %v2959_v29  ;;  %1600 = vst.msk [vmem:[#allocation2 + $0x68] sm:$0xff] %vm3387_vm0, %v2959_v29  ;;  %v2969_v10 = vmax.f32 %v2952_v30, %v1018_v54  ;;  %1156 = vperm.xlu0 %2125, %v2959_v29  }
 0x2ec   :  { %v1024_v14 = vpop.xlane.xlu1 %1023 }
 0x2ed   :  { %3406 = vst [vmem:[#allocation43_spill] sm:$0xff] %v2969_v10  ;;  %1599 = vst.msk [vmem:[#allocation2 + $0x60] sm:$0xff] %vm3408_vm14, %v2969_v10  ;;  %v2979_v12 = vmax.f32 %v2962_v22, %v1024_v14  ;;  %1151 = vperm.xlu1 %2126, %v2969_v10  }
 0x2ee   :  { %v1022_v8 = vpop.xlane.xlu0 %1021  ;;  %vm1869_vm14 = vmpackc.low %vm2631_vm1, %vm2627_vm15 }
 0x2ef   :  { %3409 = vst [vmem:[#allocation45_spill] sm:$0xff] %v2979_v12  ;;  %1602 = vst.msk [vmem:[#allocation2 + $0x78] sm:$0xff] %vm3410_vm11, %v2979_v12  ;;  %v2987_v29 = vmax.f32 %v2972_v16, %v1022_v8  ;;  %1166 = vperm.xlu0 %2125, %v2979_v12  }
 0x2f0   :  { %vm1872_vm11 = vmpackc.low %vm2635_vm2, %vm2640_vm4 }
 0x2f1   :  { %3411 = vst [vmem:[#allocation46_spill] sm:$0xff] %v2987_v29  ;;  %1601 = vst.msk [vmem:[#allocation2 + $0x70] sm:$0xff] %vm3387_vm0, %v2987_v29  ;;  %1161 = vperm.xlu1 %2126, %v2987_v29  }
 0x350   :  { %v1092_v14 = vpop.permute.xlu0 %1091 }
 0x351   :  { %v1169_v1 = vsub.f32 %v2654_v7, %v1092_v14 }
 0x353   :  { %v1185_v54 = vmul.f32 1.442695, %v1169_v1 }
 0x354   :  { %v1097_v22 = vpop.permute.xlu1 %1096  ;;  %v1107_v10 = vpop.permute.xlu0 %1106 }
 0x355   :  { %2143 = vpow2.f32 %v1185_v54  ;;  %v1170_v8 = vsub.f32 %v2671_v41, %v1097_v22  ;;  %v1172_v30 = vsub.f32 %v2675_v43, %v1107_v10 }
 0x357   :  { %v1187_v12 = vmul.f32 1.442695, %v1170_v8  ;;  %v1191_v35 = vmul.f32 1.442695, %v1172_v30 }
 0x358   :  { %v1102_v4 = vpop.permute.xlu1 %1101 }
 0x359   :  { %2145 = vpow2.f32 %v1187_v12  ;;  %v1171_v6 = vsub.f32 %v2696_v60, %v1102_v4 }
 0x35a   :  { %2147 = vpow2.f32 %v1191_v35  ;;  %v1117_v16 = vpop.permute.xlu0 %1116 }
 0x35b   :  { %v1189_v29 = vmul.f32 1.442695, %v1171_v6  ;;  %v1174_v20 = vsub.f32 %v2710_v15, %v1117_v16 }
 0x35c   :  { %v1112_v7 = vpop.permute.xlu1 %1111 }
 0x35d   :  { %2149 = vpow2.f32 %v1189_v29  ;;  %v1195_v1 = vmul.f32 1.442695, %v1174_v20  ;;  %v1173_v54 = vsub.f32 %v2723_v31, %v1112_v7 }
 0x35e   :  { %v1127_v14 = vpop.permute.xlu0 %1126 }
 0x35f   :  { %v2144_v41 = vpop.eup %2143  ;;  %v1193_v22 = vmul.f32 1.442695, %v1173_v54  ;;  %v1176_v43 = vsub.f32 %v2736_v40, %v1127_v14  ;;  %2151 = vpow2.f32 %v1195_v1 }
 0x360   :  { %v1122_v30 = vpop.permute.xlu1 %1121  ;;  %v1217_v4 = vsel %vm2627_vm15, %v2144_v41, 0.0  ;;  %vm1875_vm15 = vmpackc.low %vm2648_vm5, %vm2658_vm9 }
 0x361   :  { %2153 = vpow2.f32 %v1193_v22  ;;  %v1199_v12 = vmul.f32 1.442695, %v1176_v43  ;;  %v1175_v60 = vsub.f32 %v2749_v59, %v1122_v30  ;;  %1265 = vadd.xlane.f32.xlu1 %v1217_v4 }
 0x362   :  { %v1137_v15 = vpop.permute.xlu0 %1136 }
 0x363   :  { %v2146_v35 = vpop.eup %2145  ;;  %2155 = vpow2.f32 %v1199_v12  ;;  %v1197_v20 = vmul.f32 1.442695, %v1175_v60  ;;  %v1178_v31 = vsub.f32 %v2762_v17, %v1137_v15 }
 0x364   :  { %v2148_v40 = vpop.eup %2147  ;;  %v1132_v10 = vpop.permute.xlu1 %1131  ;;  %v1870_v29 = vpack.c.bf16 %v2146_v35, %v2144_v41 }
 0x365   :  { %2157 = vpow2.f32 %v1197_v20  ;;  %v1203_v16 = vmul.f32 1.442695, %v1178_v31  ;;  %v1177_v6 = vsub.f32 %v2775_v38, %v1132_v10  ;;  %v1220_v59 = vsel %vm2635_vm2, %v2148_v40, 0.0  ;;  %vm1881_vm2 = vmpackc.low %vm2690_vm3, %vm2704_vm8 }
 0x366   :  { %1271 = vadd.xlane.f32.xlu1 %v1220_v59  ;;  %2073 = vmatprep.mubr.msk.bf16.mxu1 %vm1869_vm14, %v1870_v29  ;;  %v1147_v8 = vpop.permute.xlu0 %1146 }
 0x367   :  { %v2150_v7 = vpop.eup %2149  ;;  %v1201_v49 = vmul.f32 1.442695, %v1177_v6  ;;  %v1180_v17 = vsub.f32 %v2788_v51, %v1147_v8  ;;  %2159 = vpow2.f32 %v1203_v16  ;;  %v1218_v51 = vsel %vm2631_vm1, %v2146_v35, 0.0  ;;  %vm1878_vm1 = vmpackc.low %vm2665_vm10, %vm2681_vm12 }
 0x368   :  { %v1873_v1 = vpack.c.bf16 %v2148_v40, %v2150_v7  ;;  %v1142_v54 = vpop.permute.xlu1 %1141  ;;  %v1219_v38 = vsel %vm2640_vm4, %v2150_v7, 0.0  ;;  %vm3412_vm4 = vnez %v3376_v21 }
 0x369   :  { %2161 = vpow2.f32 %v1201_v49  ;;  %v1207_v14 = vmul.f32 1.442695, %v1180_v17  ;;  %v1179_v41 = vsub.f32 %v2798_v63, %v1142_v54  ;;  %1269 = vadd.xlane.f32.xlu0 %v1219_v38  ;;  %v2152_v22 = vpop.eup %2151 }
 0x36a   :  { %2074 = vmatmul.mubr.msk.bf16.vlgmr.msra.gmra.mrb[16].mxu1 %vm1872_vm11, %v1873_v1  ;;  %v1157_v43 = vpop.permute.xlu0 %1156 }
 0x36b   :  { %v2154_v30 = vpop.eup %2153  ;;  %2163 = vpow2.f32 %v1207_v14  ;;  %v1205_v50 = vmul.f32 1.442695, %v1179_v41  ;;  %v1182_v4 = vsub.f32 %v2808_v25, %v1157_v43 }
 0x36c   :  { %v1152_v58 = vpop.permute.xlu1 %1151  ;;  %v1876_v12 = vpack.c.bf16 %v2152_v22, %v2154_v30  ;;  %v1221_v46 = vsel %vm2658_vm9, %v2154_v30, 0.0  ;;  %vm3414_vm9 = vnez %v3380_v48  ;;  %v3415_v30 = vsub.f32 %v2842_v47, %v2853_v56 }
 0x36d   :  { %v2156_v63 = vpop.eup %2155  ;;  %2165 = vpow2.f32 %v1205_v50  ;;  %v1211_v60 = vmul.f32 1.442695, %v1182_v4  ;;  %v1181_v15 = vsub.f32 %v2818_v44, %v1152_v58  ;;  %1267 = vadd.xlane.f32.xlu0 %v1218_v51  ;;  %v3417_v4 = vsub.f32 %v2835_v3, %v2838_v62 }
 0x36e   :  { %2077 = vmatprep.mubr.msk.bf16.mxu1 %vm1875_vm15, %v1876_v12  ;;  %v1167_v20 = vpop.permute.xlu0 %1166  ;;  %v1224_v25 = vsel %vm2665_vm10, %v2156_v63, 0.0  ;;  %v1059_v50 = vmul.f32 1.442695, %v3415_v30  ;;  %v3418_v48 = vsub.f32 %v2872_v32, %v2889_v28  ;;  %v3419_v47 = vsub.f32 %v2840_v45, %v2850_v2  ;;  %v3425_v12 = vld [vmem:[#allocation39_spill] sm:$0xff] }
 0x36f   :  { %v2158_v31 = vpop.eup %2157  ;;  %v1209_v40 = vmul.f32 1.442695, %v1181_v15  ;;  %v1184_v10 = vsub.f32 %v2827_v33, %v1167_v20  ;;  %1279 = vadd.xlane.f32.xlu1 %v1224_v25  ;;  %2167 = vpow2.f32 %v1211_v60  ;;  %v1222_v33 = vsel %vm2648_vm5, %v2152_v22, 0.0  ;;  %v3427_v15 = vld [vmem:[#allocation33_spill] sm:$0xff] }
 0x370   :  { %v1162_v52 = vpop.permute.xlu1 %1161  ;;  %v1223_v44 = vsel %vm2681_vm12, %v2158_v31, 0.0  ;;  %v1879_v35 = vpack.c.bf16 %v2156_v63, %v2158_v31  ;;  %vm3413_vm5 = vnez %v3378_v39  ;;  %vm1887_vm12 = vmpackc.low %vm3414_vm9, %vm2800_vm13  ;;  %v1057_v58 = vmul.f32 1.442695, %v3417_v4  ;;  %v1235_v4 = vld [vmem:[#allocation3 + $0x10] sm:$0xff] }
 0x371   :  { %2169 = vpow2.f32 %v1209_v40  ;;  %v1215_v29 = vmul.f32 1.442695, %v1184_v10  ;;  %v1183_v16 = vsub.f32 %v2832_v55, %v1162_v52  ;;  %1277 = vadd.xlane.f32.xlu0 %v1223_v44  ;;  %v2160_v6 = vpop.eup %2159  ;;  %vm1884_vm10 = vmpackc.low %vm3412_vm4, %vm3413_vm5  ;;  %v1065_v42 = vmul.f32 1.442695, %v3418_v48  ;;  %v3433_v52 = vld [vmem:[#allocation35_spill] sm:$0xff]  ;;  %v3434_v44 = vld [vmem:[#allocation37_spill] sm:$0xff] }
 0x372   :  { %2078 = vmatmul.mubr.msk.bf16.gmra.mrb[20].mxu1 %vm1878_vm1, %v1879_v35  ;;  %v1226_v1 = vsel %vm2690_vm3, %v2160_v6, 0.0  ;;  %vm1890_vm3 = vmpackc.low %vm2810_vm6, %vm2821_vm7  ;;  %v1063_v56 = vmul.f32 1.442695, %v3419_v47  ;;  %v3420_v51 = vsub.f32 %v2892_v24, %v2909_v23  ;;  %v3421_v3 = vsub.f32 %v2867_v53, %v2879_v34  ;;  %v3424_v23 = vld [vmem:[#allocation36_spill] sm:$0xff] }
 0x373   :  { %v2162_v59 = vpop.eup %2161  ;;  %2171 = vpow2.f32 %v1215_v29  ;;  %v1213_v37 = vmul.f32 1.442695, %v1183_v16  ;;  %1275 = vadd.xlane.f32.xlu1 %v1222_v33  ;;  %v3422_v28 = vsub.f32 %v2912_v18, %v2929_v36  ;;  %v3423_v24 = vsub.f32 %v2882_v26, %v2899_v13  ;;  %v3428_v18 = vld [vmem:[#allocation34_spill] sm:$0xff]  ;;  %v3430_v26 = vld [vmem:[#allocation40_spill] sm:$0xff]  ;;  %v3431_v13 = vld [vmem:[#allocation43_spill] sm:$0xff] }
 0x374   :  { %v1882_v8 = vpack.c.bf16 %v2160_v6, %v2162_v59  ;;  %v1225_v21 = vsel %vm2704_vm8, %v2162_v59, 0.0  ;;  %v1069_v9 = vmul.f32 1.442695, %v3420_v51  ;;  %v1067_v62 = vmul.f32 1.442695, %v3421_v3  ;;  %v3436_v16 = vld [vmem:[#allocation44_spill] sm:$0xff]  ;;  %vm3445_vm8 = vmmov %vm3387_vm0 }
 0x375   :  { %v2164_v55 = vpop.eup %2163  ;;  %2173 = vpow2.f32 %v1213_v37  ;;  %1273 = vadd.xlane.f32.xlu0 %v1221_v46  ;;  %v1073_v32 = vmul.f32 1.442695, %v3422_v28  ;;  %v1071_v2 = vmul.f32 1.442695, %v3423_v24  ;;  %v3426_v63 = vsub.f32 %v3424_v23, %v3425_v12  ;;  %v3437_v6 = vld [vmem:[#allocation46_spill] sm:$0xff]  ;;  %v1239_v28 = vld [vmem:[#allocation3 + $0x30] sm:$0xff] }
 0x376   :  { %2081 = vmatprep.mubr.msk.bf16.mxu1 %vm1881_vm2, %v1882_v8  ;;  %v1228_v5 = vsel %vm3412_vm4, %v2164_v55, 0.0  ;;  %2175 = vpow2.f32 %v1059_v50  ;;  %v3429_v36 = vsub.f32 %v3427_v15, %v3428_v18  ;;  %v3432_v25 = vsub.f32 %v3430_v26, %v3431_v13  ;;  %v3439_v8 = vld [vmem:[#allocation38_spill] sm:$0xff]  ;;  %v1237_v15 = vld [vmem:[#allocation3 + $0x20] sm:$0xff]  ;;  %v1244_v26 = vld [vmem:[#allocation3 + $0x58] sm:$0xff] }
 0x377   :  { %v2166_v7 = vpop.eup %2165  ;;  %1287 = vadd.xlane.f32.xlu1 %v1228_v5  ;;  %2177 = vpow2.f32 %v1061_v27  ;;  %v1077_v34 = vmul.f32 1.442695, %v3426_v63  ;;  %v3435_v35 = vsub.f32 %v3433_v52, %v3434_v44  ;;  %v3438_v33 = vsub.f32 %v3436_v16, %v3437_v6  ;;  %v1238_v23 = vld [vmem:[#allocation3 + $0x28] sm:$0xff] }
 0x378   :  { %v1227_v49 = vsel %vm3413_vm5, %v2166_v7, 0.0  ;;  %v1885_v19 = vpack.c.bf16 %v2164_v55, %v2166_v7  ;;  %2179 = vpow2.f32 %v1057_v58  ;;  %v1075_v20 = vmul.f32 1.442695, %v3429_v36  ;;  %v3440_v55 = vld [vmem:[#allocation41_spill] sm:$0xff] }
 0x379   :  { %1285 = vadd.xlane.f32.xlu0 %v1227_v49  ;;  %v2168_v17 = vpop.eup %2167  ;;  %2181 = vpow2.f32 %v1065_v42  ;;  %v1081_v31 = vmul.f32 1.442695, %v3432_v25  ;;  %v1079_v29 = vmul.f32 1.442695, %v3435_v35  ;;  %v1085_v59 = vmul.f32 1.442695, %v3438_v33 }
 0x37a   :  { %2082 = vmatmul.mubr.msk.bf16.gmra.mrb[24].mxu1 %vm1884_vm10, %v1885_v19  ;;  %v1230_v11 = vsel %vm3414_vm9, %v2168_v17, 0.0  ;;  %2183 = vpow2.f32 %v1063_v56  ;;  %v3441_v5 = vsub.f32 %v3439_v8, %v3440_v55  ;;  %v1234_v56 = vld [vmem:[#allocation3 + $0x8] sm:$0xff] }
 0x37b   :  { %v2170_v54 = vpop.eup %2169  ;;  %1283 = vadd.xlane.f32.xlu1 %v1226_v1  ;;  %2185 = vpow2.f32 %v1069_v9  ;;  %v3443_v1 = vld [vmem:[#allocation45_spill] sm:$0xff]  ;;  %v1240_v9 = vld [vmem:[#allocation3 + $0x38] sm:$0xff]  ;;  %v1242_v33 = vld [vmem:[#allocation3 + $0x48] sm:$0xff] }
 0x37c   :  { %v1888_v38 = vpack.c.bf16 %v2168_v17, %v2170_v54  ;;  %v1229_v57 = vsel %vm2800_vm13, %v2170_v54, 0.0  ;;  %2187 = vpow2.f32 %v1067_v62  ;;  %v1083_v7 = vmul.f32 1.442695, %v3441_v5  ;;  %v3442_v17 = vld [vmem:[#allocation42_spill] sm:$0xff]  ;;  %vm3447_vm13 = vmmov %vm3387_vm0  ;;  %v1241_v5 = vld [vmem:[#allocation3 + $0x40] sm:$0xff] }
 0x37d   :  { %v2172_v39 = vpop.eup %2171  ;;  %1281 = vadd.xlane.f32.xlu0 %v1225_v21  ;;  %2189 = vpow2.f32 %v1073_v32  ;;  %v3444_v54 = vsub.f32 %v3442_v17, %v3443_v1 }
 0x37e   :  { %2085 = vmatprep.mubr.msk.bf16.mxu1 %vm1887_vm12, %v1888_v38  ;;  %v1232_v14 = vsel %vm2810_vm6, %v2172_v39, 0.0  ;;  %2191 = vpow2.f32 %v1071_v2  ;;  %vm3448_vm6 = vmmov %vm3387_vm0 }
 0x37f   :  { %v2174_v41 = vpop.eup %2173  ;;  %1295 = vadd.xlane.f32.xlu1 %v1232_v14  ;;  %2193 = vpow2.f32 %v1077_v34  ;;  %v1087_v21 = vmul.f32 1.442695, %v3444_v54  ;;  %vm3449_vm14 = vmmov %vm3448_vm6 }
 0x380   :  { %v1891_v22 = vpack.c.bf16 %v2172_v39, %v2174_v41  ;;  %v1231_v43 = vsel %vm2821_vm7, %v2174_v41, 0.0  ;;  %v3093_v61 = vpop.eup %2175  ;;  %2195 = vpow2.f32 %v1075_v20  ;;  %vm3446_vm7 = vmmov %vm3387_vm0 }
 0x381   :  { %1289 = vadd.xlane.f32.xlu0 %v1229_v57  ;;  %v2178_v45 = vpop.eup %2177  ;;  %2197 = vpow2.f32 %v1081_v31  ;;  %v1250_v3 = vmul.f32 %v3093_v61, %v1234_v56  ;;  %vm3450_vm15 = vmmov %vm3448_vm6 }
 0x382   :  { %2086 = vmatmul.mubr.msk.bf16.gmra.mrb[28].mxu1 %vm1890_vm3, %v1891_v22  ;;  %v2180_v53 = vpop.eup %2179  ;;  %2199 = vpow2.f32 %v1079_v29  ;;  %v1251_v42 = vmul.f32 %v2178_v45, %v1235_v4  ;;  %vm3451_vm2 = vmmov %vm3448_vm6 }
 0x383   :  { %1291 = vadd.xlane.f32.xlu1 %v1230_v11  ;;  %v3108_v60 = vpop.eup %2181  ;;  %2201 = vpow2.f32 %v1085_v59  ;;  %v1233_v11 = vld [vmem:[#allocation3] sm:$0xff]  ;;  %vm3452_vm5 = vmmov %vm3451_vm2 }
 0x384   :  { %v2184_v40 = vpop.eup %2183  ;;  %2203 = vpow2.f32 %v1083_v7  ;;  %v1253_v31 = vmul.f32 %v3108_v60, %v1237_v15  ;;  %vm3453_vm9 = vmmov %vm3451_vm2 }
 0x385   :  { %1293 = vadd.xlane.f32.xlu0 %v1231_v43  ;;  %v2186_v10 = vpop.eup %2185  ;;  %2205 = vpow2.f32 %v1087_v21  ;;  %v1249_v43 = vmul.f32 %v2180_v53, %v1233_v11  ;;  %v1252_v27 = vmul.f32 %v2184_v40, %v1236_v0  ;;  %v1248_v21 = vld [vmem:[#allocation3 + $0x78] sm:$0xff]  ;;  %vm3454_vm3 = vmmov %vm3451_vm2  ;;  %v1245_v0 = vld [vmem:[#allocation3 + $0x60] sm:$0xff] }
 0x386   :  { %v2188_v37 = vpop.eup %2187  ;;  %v1255_v63 = vmul.f32 %v2186_v10, %v1239_v28 }
 0x387   :  { %v3123_v46 = vpop.eup %2189  ;;  %v1254_v36 = vmul.f32 %v2188_v37, %v1238_v23 }
 0x388   :  { %v2192_v49 = vpop.eup %2191 }
 0x389   :  { %v3129_v19 = vpop.eup %2193  ;;  %v1256_v24 = vmul.f32 %v2192_v49, %v1240_v9 }
 0x38a   :  { %v3135_v38 = vpop.eup %2195 }
 0x38b   :  { %v3137_v39 = vpop.eup %2197 }
 0x38c   :  { %v2200_v14 = vpop.eup %2199  ;;  %v1261_v56 = vmul.f32 %v3137_v39, %v1245_v0 }
 0x38d   :  { %v3141_v41 = vpop.eup %2201  ;;  %v1260_v29 = vmul.f32 %v2200_v14, %v1244_v26 }
 0x38e   :  { %v3144_v57 = vpop.eup %2203 }
 0x38f   :  { %v3147_v22 = vpop.eup %2205 }
 0x394   :  { %1353 = vperm.xlu1 %2126, %v3093_v61  }
 0x398   :  { %1358 = vperm.xlu1 %2126, %v2178_v45  }
 0x39b   :  { %1348 = vperm.xlu0 %2125, %v2180_v53  }
 0x39c   :  { %1368 = vperm.xlu1 %2126, %v3108_v60  }
 0x39f   :  { %1363 = vperm.xlu0 %2125, %v2184_v40  }
 0x3a0   :  { %1378 = vperm.xlu1 %2126, %v2186_v10   ;;  %v1243_v10 = vld [vmem:[#allocation3 + $0x50] sm:$0xff] }
 0x3a3   :  { %1373 = vperm.xlu0 %2125, %v2188_v37   ;;  %v1259_v37 = vmul.f32 %v3129_v19, %v1243_v10 }
 0x3a4   :  { %1388 = vperm.xlu1 %2126, %v3123_v46  }
 0x3a7   :  { %1383 = vperm.xlu0 %2125, %v2192_v49   ;;  %v1258_v49 = vmul.f32 %v3135_v38, %v1242_v33 }
 0x3a8   :  { %1398 = vperm.xlu1 %2126, %v3129_v19  }
 0x3ab   :  { %1393 = vperm.xlu0 %2125, %v3135_v38  }
 0x3ac   :  { %1408 = vperm.xlu1 %2126, %v3137_v39  }
 0x3af   :  { %1403 = vperm.xlu0 %2125, %v2200_v14   ;;  %v1257_v14 = vmul.f32 %v3123_v46, %v1241_v5 }
 0x3b0   :  { %1418 = vperm.xlu1 %2126, %v3141_v41  }
 0x3b3   :  { %1413 = vperm.xlu0 %2125, %v3144_v57  }
 0x3b7   :  { %1423 = vperm.xlu0 %2125, %v3147_v22  }
 0x3ee   :  { %v1266_v30 = vpop.xlane.xlu1 %1265 }
 0x3ef   :  { %v1297_v50 = vadd.f32 %v1266_v30, %v1249_v43 }
 0x3f1   :  { %1314 = vst.msk [vmem:[#allocation3] sm:$0xff] %vm3445_vm8, %v1297_v50 }
 0x3f3   :  { %v1272_v58 = vpop.xlane.xlu1 %1271 }
 0x3f4   :  { %v1300_v48 = vadd.f32 %v1272_v58, %v1252_v27  ;;  %v1264_v27 = vmul.f32 %v3147_v22, %v1248_v21 }
 0x3f6   :  { %1317 = vst.msk [vmem:[#allocation3 + $0x18] sm:$0xff] %vm3446_vm7, %v1300_v48  ;;  %v1270_v47 = vpop.xlane.xlu0 %1269  ;;  %vm3455_vm7 = vmmov %vm3451_vm2 }
 0x3f7   :  { %v1299_v51 = vadd.f32 %v1270_v47, %v1251_v42  ;;  %v1246_v42 = vld [vmem:[#allocation3 + $0x68] sm:$0xff] }
 0x3f8   :  { %v1606_v12 = vld [vmem:[#allocation3] sm:$0xff]  ;;  %v1262_v28 = vmul.f32 %v3144_v57, %v1246_v42 }
 0x3f9   :  { %1316 = vst.msk [vmem:[#allocation3 + $0x10] sm:$0xff] %vm3447_vm13, %v1299_v51  ;;  %vm1622_vm11 = vcmp.gt.f32.partialorder %v1606_v12, 0.0 }
 0x3fa   :  { %v1268_v62 = vpop.xlane.xlu0 %1267  ;;  %v1638_v44 = vsel %vm1622_vm11, %v1606_v12, 1.0 }
 0x3fb   :  { %v1298_v32 = vadd.f32 %v1268_v62, %v1250_v3  ;;  %v1247_v62 = vld [vmem:[#allocation3 + $0x70] sm:$0xff] }
 0x3fc   :  { %v1280_v2 = vpop.xlane.xlu1 %1279 }
 0x3fd   :  { %1315 = vst.msk [vmem:[#allocation3 + $0x8] sm:$0xff] %vm3448_vm6, %v1298_v32  ;;  %v1304_v45 = vadd.f32 %v1280_v2, %v1256_v24  ;;  %v1609_v34 = vld [vmem:[#allocation3 + $0x18] sm:$0xff]  ;;  %vm3456_vm6 = vmmov %vm3451_vm2 }
 0x3fe   :  { %v1278_v53 = vpop.xlane.xlu0 %1277  ;;  %vm1625_vm0 = vcmp.gt.f32.partialorder %v1609_v34, 0.0 }
 0x3ff   :  { %1321 = vst.msk [vmem:[#allocation3 + $0x38] sm:$0xff] %vm3449_vm14, %v1304_v45  ;;  %v1303_v18 = vadd.f32 %v1278_v53, %v1255_v63  ;;  %v1641_v61 = vsel %vm1625_vm0, %v1609_v34, 1.0  ;;  %vm3457_vm14 = vmmov %vm3451_vm2  ;;  %v1263_v45 = vmul.f32 %v3141_v41, %v1247_v62 }
 0x400   :  { %v1276_v20 = vpop.xlane.xlu1 %1275  ;;  %2207 = vrcp.f32 %v1641_v61  ;;  %v1608_v13 = vld [vmem:[#allocation3 + $0x10] sm:$0xff] }
 0x401   :  { %1320 = vst.msk [vmem:[#allocation3 + $0x30] sm:$0xff] %vm3450_vm15, %v1303_v18  ;;  %v1302_v25 = vadd.f32 %v1276_v20, %v1254_v36  ;;  %vm1624_vm1 = vcmp.gt.f32.partialorder %v1608_v13, 0.0  ;;  %vm3458_vm15 = vmmov %vm3451_vm2 }
 0x402   :  { %v1274_v40 = vpop.xlane.xlu0 %1273  ;;  %v1640_v52 = vsel %vm1624_vm1, %v1608_v13, 1.0 }
 0x403   :  { %1319 = vst.msk [vmem:[#allocation3 + $0x28] sm:$0xff] %vm3451_vm2, %v1302_v25  ;;  %v1301_v35 = vadd.f32 %v1274_v40, %v1253_v31  ;;  %2209 = vrcp.f32 %v1640_v52 }
 0x404   :  { %v1607_v16 = vld [vmem:[#allocation3 + $0x8] sm:$0xff]  ;;  %v1288_v6 = vpop.xlane.xlu1 %1287  ;;  %2211 = vrcp.f32 %v1638_v44 }
 0x405   :  { %vm1623_vm4 = vcmp.gt.f32.partialorder %v1607_v16, 0.0  ;;  %1318 = vst.msk [vmem:[#allocation3 + $0x20] sm:$0xff] %vm3452_vm5, %v1301_v35  ;;  %v1308_v59 = vadd.f32 %v1288_v6, %v1260_v29  ;;  %vm3459_vm5 = vmmov %vm3451_vm2 }
 0x406   :  { %v1639_v60 = vsel %vm1623_vm4, %v1607_v16, 1.0  ;;  %v1613_v8 = vld [vmem:[#allocation3 + $0x38] sm:$0xff]  ;;  %v1286_v55 = vpop.xlane.xlu0 %1285 }
 0x407   :  { %2213 = vrcp.f32 %v1639_v60  ;;  %vm1629_vm10 = vcmp.gt.f32.partialorder %v1613_v8, 0.0  ;;  %1325 = vst.msk [vmem:[#allocation3 + $0x58] sm:$0xff] %vm3453_vm9, %v1308_v59  ;;  %v1307_v7 = vadd.f32 %v1286_v55, %v1259_v37 }
 0x408   :  { %v1645_v17 = vsel %vm1629_vm10, %v1613_v8, 1.0  ;;  %v1612_v1 = vld [vmem:[#allocation3 + $0x30] sm:$0xff]  ;;  %v1284_v54 = vpop.xlane.xlu1 %1283 }
 0x409   :  { %vm1628_vm12 = vcmp.gt.f32.partialorder %v1612_v1, 0.0  ;;  %1324 = vst.msk [vmem:[#allocation3 + $0x50] sm:$0xff] %vm3454_vm3, %v1307_v7  ;;  %v1306_v19 = vadd.f32 %v1284_v54, %v1258_v49  ;;  %2215 = vrcp.f32 %v1645_v17 }
 0x40a   :  { %v2208_v11 = vpop.eup %2207  ;;  %v1644_v43 = vsel %vm1628_vm12, %v1612_v1, 1.0  ;;  %v1611_v30 = vld [vmem:[#allocation3 + $0x28] sm:$0xff]  ;;  %v1282_v50 = vpop.xlane.xlu0 %1281 }
 0x40b   :  { %2217 = vrcp.f32 %v1644_v43  ;;  %vm1627_vm8 = vcmp.gt.f32.partialorder %v1611_v30, 0.0  ;;  %1323 = vst.msk [vmem:[#allocation3 + $0x48] sm:$0xff] %vm3455_vm7, %v1306_v19  ;;  %1703 = vperm.xlu0 %2125, %v2208_v11   ;;  %v1305_v38 = vadd.f32 %v1282_v50, %v1257_v14 }
 0x40c   :  { %v1643_v4 = vsel %vm1627_vm8, %v1611_v30, 1.0  ;;  %v1610_v58 = vld [vmem:[#allocation3 + $0x20] sm:$0xff]  ;;  %v1296_v48 = vpop.xlane.xlu1 %1295 }
 0x40d   :  { %v2210_v47 = vpop.eup %2209  ;;  %vm1626_vm13 = vcmp.gt.f32.partialorder %v1610_v58, 0.0  ;;  %1322 = vst.msk [vmem:[#allocation3 + $0x40] sm:$0xff] %vm3456_vm6, %v1305_v38  ;;  %v1312_v46 = vadd.f32 %v1296_v48, %v1264_v27  ;;  %2219 = vrcp.f32 %v1643_v4 }
 0x40e   :  { %v1642_v51 = vsel %vm1626_vm13, %v1610_v58, 1.0  ;;  %v1617_v9 = vld [vmem:[#allocation3 + $0x58] sm:$0xff]  ;;  %1698 = vperm.xlu1 %2126, %v2210_v47   ;;  %v1290_v3 = vpop.xlane.xlu0 %1289  ;;  %v2212_v32 = vpop.eup %2211 }
 0x40f   :  { %2221 = vrcp.f32 %v1642_v51  ;;  %vm1633_vm0 = vcmp.gt.f32.partialorder %v1617_v9, 0.0  ;;  %1329 = vst.msk [vmem:[#allocation3 + $0x78] sm:$0xff] %vm3457_vm14, %v1312_v46  ;;  %v1309_v22 = vadd.f32 %v1290_v3, %v1261_v56 }
 0x410   :  { %v1649_v24 = vsel %vm1633_vm0, %v1617_v9, 1.0  ;;  %v1616_v2 = vld [vmem:[#allocation3 + $0x50] sm:$0xff]  ;;  %v1292_v23 = vpop.xlane.xlu1 %1291 }
 0x411   :  { %v2214_v12 = vpop.eup %2213  ;;  %vm1632_vm11 = vcmp.gt.f32.partialorder %v1616_v2, 0.0  ;;  %1326 = vst.msk [vmem:[#allocation3 + $0x60] sm:$0xff] %vm3458_vm15, %v1309_v22  ;;  %v1310_v39 = vadd.f32 %v1292_v23, %v1262_v28  ;;  %2223 = vrcp.f32 %v1649_v24 }
 0x412   :  { %v1648_v63 = vsel %vm1632_vm11, %v1616_v2, 1.0  ;;  %v1615_v34 = vld [vmem:[#allocation3 + $0x48] sm:$0xff]  ;;  %1688 = vperm.xlu1 %2126, %v2212_v32   ;;  %1693 = vperm.xlu0 %2125, %v2214_v12   ;;  %v1294_v53 = vpop.xlane.xlu0 %1293 }
 0x413   :  { %2225 = vrcp.f32 %v1648_v63  ;;  %vm1631_vm1 = vcmp.gt.f32.partialorder %v1615_v34, 0.0  ;;  %1327 = vst.msk [vmem:[#allocation3 + $0x68] sm:$0xff] %vm3451_vm2, %v1310_v39  ;;  %v1311_v57 = vadd.f32 %v1294_v53, %v1263_v45  ;;  %v2216_v15 = vpop.eup %2215 }
 0x414   :  { %v1647_v18 = vsel %vm1631_vm1, %v1615_v34, 1.0  ;;  %v1614_v36 = vld [vmem:[#allocation3 + $0x40] sm:$0xff]  ;;  %v1354_v4 = vpop.permute.xlu1 %1353  ;;  %v3460_v34 = vld [vmem:[#allocation19_spill] sm:$0xff] }
 0x415   :  { %v2218_v61 = vpop.eup %2217  ;;  %vm1630_vm4 = vcmp.gt.f32.partialorder %v1614_v36, 0.0  ;;  %1328 = vst.msk [vmem:[#allocation3 + $0x70] sm:$0xff] %vm3459_vm5, %v1311_v57  ;;  %2227 = vrcp.f32 %v1647_v18 }
 0x416   :  { %v1646_v41 = vsel %vm1630_vm4, %v1614_v36, 1.0  ;;  %1723 = vperm.xlu0 %2125, %v2216_v15   ;;  %1718 = vperm.xlu1 %2126, %v2218_v61   ;;  %v1621_v26 = vld [vmem:[#allocation3 + $0x78] sm:$0xff]  ;;  %v1427_v15 = vmul.f32 0.0, %v1354_v4 }
 0x417   :  { %2229 = vrcp.f32 %v1646_v41  ;;  %v2220_v20 = vpop.eup %2219  ;;  %vm1637_vm9 = vcmp.gt.f32.partialorder %v1621_v26, 0.0 }
 0x418   :  { %v1618_v13 = vld [vmem:[#allocation3 + $0x60] sm:$0xff]  ;;  %v1653_v29 = vsel %vm1637_vm9, %v1621_v26, 1.0  ;;  %v1359_v48 = vpop.permute.xlu1 %1358 }
 0x419   :  { %v2222_v25 = vpop.eup %2221  ;;  %vm1634_vm10 = vcmp.gt.f32.partialorder %v1618_v13, 0.0  ;;  %v1428_v12 = vmul.f32 0.0, %v1359_v48  ;;  %v3461_v26 = vld [vmem:[#allocation17_spill] sm:$0xff] }
 0x41a   :  { %v1650_v31 = vsel %vm1634_vm10, %v1618_v13, 1.0  ;;  %v1619_v40 = vld [vmem:[#allocation3 + $0x68] sm:$0xff]  ;;  %1713 = vperm.xlu0 %2125, %v2220_v20   ;;  %1708 = vperm.xlu1 %2126, %v2222_v25   ;;  %v1349_v27 = vpop.permute.xlu0 %1348 }
 0x41b   :  { %2231 = vrcp.f32 %v1650_v31  ;;  %vm1635_vm12 = vcmp.gt.f32.partialorder %v1619_v40, 0.0  ;;  %v2224_v10 = vpop.eup %2223  ;;  %v1426_v18 = vmul.f32 0.0, %v1349_v27 }
 0x41c   :  { %v1651_v52 = vsel %vm1635_vm12, %v1619_v40, 1.0  ;;  %v1620_v44 = vld [vmem:[#allocation3 + $0x70] sm:$0xff]  ;;  %v1369_v47 = vpop.permute.xlu1 %1368 }
 0x41d   :  { %v2226_v35 = vpop.eup %2225  ;;  %2233 = vrcp.f32 %v1651_v52  ;;  %vm1636_vm3 = vcmp.gt.f32.partialorder %v1620_v44, 0.0 }
 0x41e   :  { %v1652_v16 = vsel %vm1636_vm3, %v1620_v44, 1.0  ;;  %1743 = vperm.xlu0 %2125, %v2224_v10   ;;  %1738 = vperm.xlu1 %2126, %v2226_v35   ;;  %v1364_v58 = vpop.permute.xlu0 %1363 }
 0x41f   :  { %2235 = vrcp.f32 %v1652_v16  ;;  %v2228_v6 = vpop.eup %2227  ;;  %v1429_v24 = vmul.f32 0.0, %v1364_v58 }
 0x420   :  { %2237 = vrcp.f32 %v1653_v29  ;;  %v1379_v56 = vpop.permute.xlu1 %1378 }
 0x421   :  { %v2230_v33 = vpop.eup %2229  ;;  %v1432_v25 = vmul.f32 0.0, %v1379_v56 }
 0x422   :  { %1733 = vperm.xlu0 %2125, %v2228_v6   ;;  %1728 = vperm.xlu1 %2126, %v2230_v33   ;;  %v1374_v42 = vpop.permute.xlu0 %1373  ;;  %v3462_v6 = vld [vmem:[#allocation18_spill] sm:$0xff] }
 0x424   :  { %v3195_v9 = vpop.permute.xlu1 %1388 }
 0x425   :  { %v2232_v59 = vpop.eup %2231 }
 0x426   :  { %1748 = vperm.xlu1 %2126, %v2232_v59   ;;  %v1384_v46 = vpop.permute.xlu0 %1383  ;;  %v3463_v59 = vld [vmem:[#allocation20_spill] sm:$0xff] }
 0x427   :  { %v2234_v37 = vpop.eup %2233  ;;  %v1433_v10 = vmul.f32 0.0, %v1384_v46 }
 0x428   :  { %1753 = vperm.xlu0 %2125, %v2234_v37   ;;  %v1399_v62 = vpop.permute.xlu1 %1398 }
 0x429   :  { %v2236_v60 = vpop.eup %2235  ;;  %v1436_v46 = vmul.f32 0.0, %v1399_v62  ;;  %v3466_v62 = vld [vmem:[#allocation22_spill] sm:$0xff] }
 0x42a   :  { %1758 = vperm.xlu1 %2126, %v2236_v60   ;;  %v2238_v8 = vpop.eup %2237  ;;  %v3193_v51 = vpop.permute.xlu0 %1393  ;;  %v1430_v60 = vmul.f32 0.0, %v1369_v47 }
 0x42c   :  { %1763 = vperm.xlu0 %2125, %v2238_v8   ;;  %v3199_v28 = vpop.permute.xlu1 %1408  ;;  %v1431_v8 = vmul.f32 0.0, %v1374_v42  ;;  %v3465_v42 = vld [vmem:[#allocation23_spill] sm:$0xff] }
 0x42e   :  { %v1404_v3 = vpop.permute.xlu0 %1403 }
 0x42f   :  { %v1437_v56 = vmul.f32 0.0, %v1404_v3 }
 0x430   :  { %v3203_v2 = vpop.permute.xlu1 %1418 }
 0x432   :  { %v3197_v22 = vpop.permute.xlu0 %1413 }
 0x436   :  { %v3201_v32 = vpop.permute.xlu0 %1423 }
 0x43d   :  { %v2075_v55 = vpop.f32.mrb[16].mxu1 }
 0x43e   :  { %v1492_v5 = vpop.f32.mrb[17].mxu1  ;;  %v1557_v63 = vadd.f32 %v2075_v55, %v1428_v12 }
 0x43f   :  { %v2076_v7 = vpop.f32.mrb[18].mxu1  ;;  %v1555_v41 = vadd.f32 %v1492_v5, %v1426_v18 }
 0x440   :  { %v1495_v49 = vpop.f32.mrb[19].mxu1  ;;  %v1558_v23 = vadd.f32 %v2076_v7, %v1429_v24 }
 0x441   :  { %v1556_v20 = vadd.f32 %v1495_v49, %v1427_v15  ;;  %v1435_v15 = vmul.f32 0.0, %v3193_v51 }
 0x445   :  { %v2079_v17 = vpop.f32.mrb[20].mxu1 }
 0x446   :  { %v3175_v1 = vpop.f32.mrb[21].mxu1  ;;  %v1561_v29 = vadd.f32 %v2079_v17, %v1432_v25 }
 0x447   :  { %v2080_v54 = vpop.f32.mrb[22].mxu1  ;;  %v1559_v58 = vadd.f32 %v3175_v1, %v1430_v60 }
 0x448   :  { %v1511_v21 = vpop.f32.mrb[23].mxu1  ;;  %v1562_v16 = vadd.f32 %v2080_v54, %v1433_v10  ;;  %v3464_v54 = vld [vmem:[#allocation21_spill] sm:$0xff] }
 0x449   :  { %v1560_v17 = vadd.f32 %v1511_v21, %v1431_v8 }
 0x44d   :  { %v3177_v19 = vpop.f32.mrb[24].mxu1 }
 0x44e   :  { %v3179_v14 = vpop.f32.mrb[25].mxu1 }
 0x44f   :  { %v3181_v11 = vpop.f32.mrb[26].mxu1 }
 0x450   :  { %v3183_v43 = vpop.f32.mrb[27].mxu1 }
 0x455   :  { %v3185_v30 = vpop.f32.mrb[28].mxu1 }
 0x456   :  { %v3187_v50 = vpop.f32.mrb[29].mxu1 }
 0x457   :  { %v3189_v0 = vpop.f32.mrb[30].mxu1 }
 0x458   :  { %v3191_v38 = vpop.f32.mrb[31].mxu1 }
 0x48a   :  { %v1704_v39 = vpop.permute.xlu0 %1703 }
 0x48b   :  { %v1769_v45 = vmul.f32 %v1704_v39, %v1558_v23 }
 0x48d   :  { %v1801_v53 = vadd.f32 %v1769_v45, %v3460_v34  ;;  %v1699_v57 = vpop.permute.xlu1 %1698  ;;  %v1565_v45 = vadd.f32 %v3177_v19, %v1436_v46  ;;  %v3467_v34 = vld [vmem:[#allocation24_spill] sm:$0xff] }
 0x48e   :  { %v1768_v36 = vmul.f32 %v1699_v57, %v1557_v63  ;;  %v1566_v63 = vadd.f32 %v3181_v11, %v1437_v56  ;;  %v1434_v57 = vmul.f32 0.0, %v3195_v9  ;;  %v3468_v9 = vld [vmem:[#allocation25_spill] sm:$0xff] }
 0x48f   :  { %v1817_v61 = vmax.f32 %v1801_v53, 0.0 }
 0x490   :  { %v1800_v13 = vadd.f32 %v1768_v36, %v3461_v26  ;;  %v1564_v26 = vadd.f32 %v3183_v43, %v1435_v15 }
 0x491   :  { %1833 = vst [vmem:[%s3289_s5 + $0x18] sm:$0xff] %v1817_v61  ;;  %v1689_v31 = vpop.permute.xlu1 %1688  ;;  %v1694_v40 = vpop.permute.xlu0 %1693 }
 0x492   :  { %v1816_v52 = vmax.f32 %v1800_v13, 0.0  ;;  %v1766_v44 = vmul.f32 %v1689_v31, %v1555_v41  ;;  %v1767_v35 = vmul.f32 %v1694_v40, %v1556_v20  ;;  %v1563_v20 = vadd.f32 %v3179_v14, %v1434_v57  ;;  %v3469_v13 = vld [vmem:[#allocation27_spill] sm:$0xff] }
 0x493   :  { %v1438_v31 = vmul.f32 0.0, %v3199_v28 }
 0x494   :  { %1832 = vst [vmem:[%s3289_s5 + $0x10] sm:$0xff] %v1816_v52  ;;  %v1798_v33 = vadd.f32 %v1766_v44, %v3462_v6  ;;  %v1799_v37 = vadd.f32 %v1767_v35, %v3463_v59  ;;  %v1439_v35 = vmul.f32 0.0, %v3197_v22  ;;  %v3471_v6 = vld [vmem:[#allocation28_spill] sm:$0xff]  ;;  %v1440_v59 = vmul.f32 0.0, %v3203_v2  ;;  %v3472_v2 = vld [vmem:[#allocation30_spill] sm:$0xff] }
 0x495   :  { %v1719_v55 = vpop.permute.xlu1 %1718  ;;  %v1724_v5 = vpop.permute.xlu0 %1723 }
 0x496   :  { %v1814_v7 = vmax.f32 %v1798_v33, 0.0  ;;  %v1815_v49 = vmax.f32 %v1799_v37, 0.0  ;;  %v1772_v27 = vmul.f32 %v1719_v55, %v1561_v29  ;;  %v1773_v4 = vmul.f32 %v1724_v5, %v1562_v16  ;;  %v3470_v16 = vld [vmem:[#allocation26_spill] sm:$0xff] }
 0x497   :  { %v1567_v29 = vadd.f32 %v3187_v50, %v1438_v31  ;;  %v1568_v60 = vadd.f32 %v3191_v38, %v1439_v35  ;;  %v1441_v5 = vmul.f32 0.0, %v3201_v32 }
 0x498   :  { %1830 = vst [vmem:[%s3289_s5] sm:$0xff] %v1814_v7  ;;  %1831 = vst [vmem:[%s3289_s5 + $0x8] sm:$0xff] %v1815_v49  ;;  %v1804_v48 = vadd.f32 %v1772_v27, %v3464_v54  ;;  %v1805_v47 = vadd.f32 %v1773_v4, %v3465_v42  ;;  %v1569_v7 = vadd.f32 %v3185_v30, %v1440_v59  ;;  %v3474_v42 = vld [vmem:[#allocation29_spill] sm:$0xff] }
 0x499   :  { %v1709_v24 = vpop.permute.xlu1 %1708  ;;  %v1714_v23 = vpop.permute.xlu0 %1713  ;;  %v1570_v4 = vadd.f32 %v3189_v0, %v1441_v5 }
 0x49a   :  { %v1820_v12 = vmax.f32 %v1804_v48, 0.0  ;;  %v1821_v39 = vmax.f32 %v1805_v47, 0.0  ;;  %v1770_v1 = vmul.f32 %v1709_v24, %v1559_v58  ;;  %v1771_v21 = vmul.f32 %v1714_v23, %v1560_v17  ;;  %v3473_v17 = vld [vmem:[#allocation32_spill] sm:$0xff]  ;;  %v3475_v24 = vld [vmem:[#allocation31_spill] sm:$0xff] }
 0x49c   :  { %1836 = vst [vmem:[%s3289_s5 + $0x30] sm:$0xff] %v1820_v12  ;;  %1837 = vst [vmem:[%s3289_s5 + $0x38] sm:$0xff] %v1821_v39  ;;  %v1802_v3 = vadd.f32 %v1770_v1, %v3466_v62  ;;  %v1803_v53 = vadd.f32 %v1771_v21, %v3467_v34 }
 0x49d   :  { %v1739_v18 = vpop.permute.xlu1 %1738  ;;  %v1744_v19 = vpop.permute.xlu0 %1743 }
 0x49e   :  { %v1818_v36 = vmax.f32 %v1802_v3, 0.0  ;;  %v1819_v11 = vmax.f32 %v1803_v53, 0.0  ;;  %v1776_v61 = vmul.f32 %v1739_v18, %v1565_v45  ;;  %v1777_v41 = vmul.f32 %v1744_v19, %v1566_v63 }
 0x4a0   :  { %1834 = vst [vmem:[%s3289_s5 + $0x20] sm:$0xff] %v1818_v36  ;;  %1835 = vst [vmem:[%s3289_s5 + $0x28] sm:$0xff] %v1819_v11  ;;  %v1808_v51 = vadd.f32 %v1776_v61, %v3468_v9  ;;  %v1809_v25 = vadd.f32 %v1777_v41, %v3469_v13 }
 0x4a1   :  { %v1729_v40 = vpop.permute.xlu1 %1728  ;;  %v1734_v10 = vpop.permute.xlu0 %1733 }
 0x4a2   :  { %v1824_v52 = vmax.f32 %v1808_v51, 0.0  ;;  %v1825_v14 = vmax.f32 %v1809_v25, 0.0  ;;  %v1774_v44 = vmul.f32 %v1729_v40, %v1563_v20  ;;  %v1775_v43 = vmul.f32 %v1734_v10, %v1564_v26 }
 0x4a4   :  { %1840 = vst [vmem:[%s3289_s5 + $0x50] sm:$0xff] %v1824_v52  ;;  %1841 = vst [vmem:[%s3289_s5 + $0x58] sm:$0xff] %v1825_v14  ;;  %v1806_v28 = vadd.f32 %v1774_v44, %v3470_v16  ;;  %v1807_v33 = vadd.f32 %v1775_v43, %v3471_v6 }
 0x4a5   :  { %v1749_v37 = vpop.permute.xlu1 %1748 }
 0x4a6   :  { %v1822_v22 = vmax.f32 %v1806_v28, 0.0  ;;  %v1823_v8 = vmax.f32 %v1807_v33, 0.0  ;;  %v1778_v50 = vmul.f32 %v1749_v37, %v1567_v29 }
 0x4a7   :  { %v1754_v55 = vpop.permute.xlu0 %1753 }
 0x4a8   :  { %1838 = vst [vmem:[%s3289_s5 + $0x40] sm:$0xff] %v1822_v22  ;;  %1839 = vst [vmem:[%s3289_s5 + $0x48] sm:$0xff] %v1823_v8  ;;  %v1810_v49 = vadd.f32 %v1778_v50, %v3472_v2  ;;  %v1779_v27 = vmul.f32 %v1754_v55, %v1568_v60 }
 0x4a9   :  { %v1759_v38 = vpop.permute.xlu1 %1758 }
 0x4aa   :  { %v1826_v58 = vmax.f32 %v1810_v49, 0.0  ;;  %v1811_v54 = vadd.f32 %v1779_v27, %v3473_v17  ;;  %v1780_v32 = vmul.f32 %v1759_v38, %v1569_v7 }
 0x4ab   :  { %v1764_v48 = vpop.permute.xlu0 %1763 }
 0x4ac   :  { %1842 = vst [vmem:[%s3289_s5 + $0x60] sm:$0xff] %v1826_v58  ;;  %v1827_v30 = vmax.f32 %v1811_v54, 0.0  ;;  %v1812_v47 = vadd.f32 %v1780_v32, %v3474_v42  ;;  %v1781_v46 = vmul.f32 %v1764_v48, %v1570_v4 }
 0x4ae   :  { %1843 = vst [vmem:[%s3289_s5 + $0x68] sm:$0xff] %v1827_v30  ;;  %v1828_v56 = vmax.f32 %v1812_v47, 0.0  ;;  %v1813_v0 = vadd.f32 %v1781_v46, %v3475_v24 }
 0x4b0   :  { %1844 = vst [vmem:[%s3289_s5 + $0x70] sm:$0xff] %v1828_v56  ;;  %v1829_v23 = vmax.f32 %v1813_v0, 0.0 }
 0x4b2   :  { %1845 = vst [vmem:[%s3289_s5 + $0x78] sm:$0xff] %v1829_v23 }
 0x4b3   :  { %1850 = vsyncpa [#allocation8], 1 }
 0x4b4   :  { %1851 = vsyncpa [#allocation10], 1 }
 0x4b5   :  { %1852 = vsyncpa [#allocation13], 1 }

</bundles_post_ra>
